<compile_context>
chip_gen: v7x
topology: tpu7x:2x2x1
jax: 0.10.0
libtpu: 0.0.40
codegen_flags: <defaults>
</compile_context>

<pallas_src>
import jax
import jax.numpy as jnp
import numpy as np
from jax import lax
from jax.experimental import pallas as pl
from jax.experimental.pallas import tpu as pltpu

H = 64         # embedding / LSTM hidden size
GLOVE_D = 300  # glove embedding dim (wrapper / reference only)


def model2_kernel(embs1_ref, cf1_ref, embs2_ref, xlen_ref,
                  b1_ref,
                  wcomb_ref, bcomb_ref,      # (H, 8H), (1, 8H): both-direction input proj + folded biases
                  whf_ref, whb_ref,          # (H, 4H) recurrent weights per direction, gate order [i,f,o,g]
                  w2a_ref, w2b_ref, b2_ref,
                  wda_ref, wdb_ref, bd_ref,
                  out_ref,
                  gf_ref, gb_ref,            # VMEM scratch (T, BT, 4H) per direction
                  accf_ref, accb_ref):       # VMEM scratch (BT, H) masked-pool accumulators
    T, B, _ = embs2_ref.shape                # B == batch tile

    # ---- glove branch: w1 already folded into the table, so this is just
    #      mean-pool (sum / count) + bias + ReLU ----
    label = jnp.maximum(
        jnp.sum(embs1_ref[...], axis=1) / cf1_ref[...] + b1_ref[...], 0.0)   # (B, H)

    # ---- hoisted LSTM input projection: one matmul for both directions, biases folded ----
    x_flat = embs2_ref[...].reshape(T * B, H)                                # (T*B, 64)
    gates_in = (jnp.dot(x_flat, wcomb_ref[...], preferred_element_type=jnp.float32)
                + bcomb_ref[...])                                            # (T*B, 512)
    gf_ref[...] = gates_in[:, : 4 * H].reshape(T, B, 4 * H)
    gb_ref[...] = gates_in[:, 4 * H:].reshape(T, B, 4 * H)

    accf_ref[...] = jnp.zeros_like(accf_ref)
    accb_ref[...] = jnp.zeros_like(accb_ref)

    xlen = xlen_ref[...]                                                     # (B, 1) int32

    def cell(gin, h, c, wh_ref):
        # gate columns are [i, f, o, g]: one sigmoid over 3H lanes, one tanh over H
        g = gin + jnp.dot(h, wh_ref[...], preferred_element_type=jnp.float32)
        s = jax.nn.sigmoid(g[:, : 3 * H])
        gg = jnp.tanh(g[:, 3 * H:])
        c_new = s[:, H:2 * H] * c + s[:, :H] * gg
        h_new = s[:, 2 * H:] * jnp.tanh(c_new)
        return h_new, c_new

    z = jnp.zeros((B, H), jnp.float32)

    # ---- fused bidirectional recurrence with length-masked pooling into VMEM scratch ----
    def body(k, carry):
        hf, cf_, hb, cb_ = carry
        tb = T - 1 - k
        hf, cf_ = cell(gf_ref[k], hf, cf_, whf_ref)      # forward step at t = k
        hb, cb_ = cell(gb_ref[tb], hb, cb_, whb_ref)     # backward step at t = T-1-k
        accf_ref[...] += jnp.where(xlen > k, hf, 0.0)    # mask_t = (t < len)
        accb_ref[...] += jnp.where(xlen > tb, hb, 0.0)
        return (hf, cf_, hb, cb_)

    unroll = True if T <= 16 else 2
    lax.fori_loop(0, T, body, (z, z, z, z), unroll=unroll)

    cf2 = jnp.maximum(xlen.astype(jnp.float32), 1.0)                         # (B, 1)
    pool_f = accf_ref[...] / cf2
    pool_b = accb_ref[...] / cf2

    # ln2 on concat([pool_f, pool_b]) via split weights (avoids in-kernel lane concat)
    context = jnp.maximum(
        jnp.dot(pool_f, w2a_ref[...], preferred_element_type=jnp.float32)
        + jnp.dot(pool_b, w2b_ref[...], preferred_element_type=jnp.float32)
        + b2_ref[...], 0.0)                                                  # (B, 64)

    # dff on concat([label, context]) (split weights) + LogSoftmax(dim=1).
    # Padded class columns carry bias -1e30 so they contribute 0 to the denominator.
    logits = (jnp.dot(label, wda_ref[...], preferred_element_type=jnp.float32)
              + jnp.dot(context, wdb_ref[...], preferred_element_type=jnp.float32)
              + bd_ref[...])                                                 # (B, CP)
    m = jnp.max(logits, axis=1, keepdims=True)
    lse = jnp.log(jnp.sum(jnp.exp(logits - m), axis=1, keepdims=True)) + m
    out_ref[...] = logits - lse


def _ceil_to(n, m):
    return -(-n // m) * m


def model2_forward(l, x, params):
    """Wrapper: fold ln1 into the glove table, embedding gathers (glue), layout prep,
    pallas_call with a batch grid."""
    B, L1 = l.shape
    T = x.shape[1]
    classes = params["bd"].shape[-1]
    CP = _ceil_to(classes, 128)                                   # lane-dense class width

    # fold Linear(300->64) into the glove table (mean-pool and linear map commute)
    glove_proj = jnp.dot(params["glove"], params["w1"])           # (gvocab+1, 64)

    # gate-column reorder (i, f, g, o) -> (i, f, o, g) so the sigmoid gates are contiguous
    def reorder_gates(w):
        return jnp.concatenate(
            [w[..., : 2 * H], w[..., 3 * H: 4 * H], w[..., 2 * H: 3 * H]], axis=-1)

    wcomb = jnp.concatenate([reorder_gates(params["wif"]),
                             reorder_gates(params["wib"])], axis=1)   # (64, 512)
    bcomb = jnp.concatenate([reorder_gates(params["bgf"]),
                             reorder_gates(params["bgb"])], axis=1)   # (1, 512)
    whf = reorder_gates(params["whf"])
    whb = reorder_gates(params["whb"])

    # class padding: zero weight columns, -1e30 bias -> softmax denominator unchanged
    wda_p = jnp.pad(params["wda"], ((0, 0), (0, CP - classes)))
    wdb_p = jnp.pad(params["wdb"], ((0, 0), (0, CP - classes)))
    bd_p = jnp.pad(params["bd"], ((0, 0), (0, CP - classes)), constant_values=-1e30)

    # batch tile: multiple of 8 sublanes; >= 2 grid steps when B > 16 so the "parallel"
    # axis can shard across both TensorCores on v7x (cheap pipelining on v5e/v6e too)
    if B > 64:
        BT = 64
    elif B > 16:
        BT = _ceil_to((B + 1) // 2, 8)
    else:
        BT = _ceil_to(max(B, 1), 8)
    B_pad = _ceil_to(B, BT)
    if B_pad != B:
        l = jnp.pad(l, ((0, B_pad - B), (0, 0)))   # pad token 0 -> zero-length rows
        x = jnp.pad(x, ((0, B_pad - B), (0, 0)))

    # TODO(synk): embedding-table lookups (nn.Embedding gathers) stay as XLA glue;
    # a data-dependent in-kernel gather would need manual DMA and is not worth it here.
    embs1p = jnp.take(glove_proj, l, axis=0)                              # (B_pad, L1, 64)
    cf1 = jnp.maximum(jnp.sum(l != 0, axis=1), 1).astype(jnp.float32)[:, None]   # (B_pad, 1)
    embs2_tm = jnp.take(params["emb"], x.T, axis=0)                       # (T, B_pad, 64)
    # per-row sequence lengths replace the (T, B, 1) per-step mask stream
    # (assumes token-0 padding is terminal, the standard padding_idx usage)
    xlen = jnp.sum(x != 0, axis=1).astype(jnp.int32)[:, None]             # (B_pad, 1)

    args = (embs1p, cf1, embs2_tm, xlen,
            params["b1"], wcomb, bcomb, whf, whb,
            params["w2a"], params["w2b"], params["b2"],
            wda_p, wdb_p, bd_p)

    def full_spec(a):
        nd = a.ndim
        return pl.BlockSpec(a.shape, lambda i, _nd=nd: (0,) * _nd)

    in_specs = [
        pl.BlockSpec((BT, L1, H), lambda i: (i, 0, 0)),   # pre-projected glove gather
        pl.BlockSpec((BT, 1), lambda i: (i, 0)),          # cf1
        pl.BlockSpec((T, BT, H), lambda i: (0, i, 0)),    # embs2 (time-major)
        pl.BlockSpec((BT, 1), lambda i: (i, 0)),          # sequence lengths
    ] + [full_spec(a) for a in args[4:]]                  # weights: whole-array VMEM

    # VMEM budget: double-buffered tiles + weights + scratch, 25% headroom,
    # floor 16 MiB, cap 64 MiB (v7x per-TC VMEM)
    def vmem_bytes(shape, itemsize=4):
        s = list(shape)
        s[-1] = _ceil_to(s[-1], 128)
        if len(s) >= 2:
            s[-2] = _ceil_to(s[-2], 8)
        return int(np.prod(s)) * itemsize

    tile_bytes = (vmem_bytes((BT, L1, H)) + 2 * vmem_bytes((BT, 1))
                  + vmem_bytes((T, BT, H)) + vmem_bytes((BT, CP)))
    weight_bytes = sum(vmem_bytes(a.shape) for a in args[4:])
    scratch_bytes = 2 * vmem_bytes((T, BT, 4 * H)) + 2 * vmem_bytes((BT, H))
    vmem_need = 2 * tile_bytes + 2 * weight_bytes + scratch_bytes
    vmem_limit = int(min(max(int(1.25 * vmem_need), 16 * 2 ** 20), 64 * 2 ** 20))

    out = pl.pallas_call(
        model2_kernel,
        out_shape=jax.ShapeDtypeStruct((B_pad, CP), jnp.float32),
        grid=(B_pad // BT,),
        in_specs=in_specs,
        out_specs=pl.BlockSpec((BT, CP), lambda i: (i, 0)),
        scratch_shapes=[pltpu.VMEM((T, BT, 4 * H), jnp.float32),
                        pltpu.VMEM((T, BT, 4 * H), jnp.float32),
                        pltpu.VMEM((BT, H), jnp.float32),
                        pltpu.VMEM((BT, H), jnp.float32)],
        compiler_params=pltpu.CompilerParams(
            dimension_semantics=("parallel",),
            vmem_limit_bytes=vmem_limit),
    )(*args)
    return out[:B, :classes]


def model2_ref(l, x, p):
    """Pure-JAX reference mirroring the PyTorch forward (original gate order/weights)."""
    embs1 = p["glove"][l]
    pool1 = embs1.sum(axis=1)
    cf1 = jnp.maximum((l != 0).sum(axis=1), 1).astype(jnp.float32)[:, None]
    pool1 = pool1 / cf1
    label = jax.nn.relu(pool1 @ p["w1"] + p["b1"])

    embs2 = p["emb"][x]
    B, T, _ = embs2.shape

    def run_dir(wi, wh, bg, reverse):
        h = jnp.zeros((B, H)); c = jnp.zeros((B, H))
        out = [None] * T
        order = range(T - 1, -1, -1) if reverse else range(T)
        for t in order:
            gates = embs2[:, t, :] @ wi + h @ wh + bg
            i = jax.nn.sigmoid(gates[:, :H]); f = jax.nn.sigmoid(gates[:, H:2 * H])
            g = jnp.tanh(gates[:, 2 * H:3 * H]); o = jax.nn.sigmoid(gates[:, 3 * H:])
            c = f * c + i * g
            h = o * jnp.tanh(c)
            out[t] = h
        return jnp.stack(out, axis=1)

    out_f = run_dir(p["wif"], p["whf"], p["bgf"], False)
    out_b = run_dir(p["wib"], p["whb"], p["bgb"], True)
    out = jnp.concatenate([out_f, out_b], axis=2)                 # (B, T, 128)
    xmask = (x != 0).astype(jnp.float32)[:, :, None]
    pool2 = (out * xmask).sum(axis=1)
    cf2 = jnp.maximum(xmask.sum(axis=1), 1.0)
    pool2 = pool2 / cf2
    w2 = jnp.concatenate([p["w2a"], p["w2b"]], axis=0)
    context = jax.nn.relu(pool2 @ w2 + p["b2"])
    wd = jnp.concatenate([p["wda"], p["wdb"]], axis=0)
    logits = jnp.concatenate([label, context], axis=1) @ wd + p["bd"]
    return jax.nn.log_softmax(logits, axis=1)


if __name__ == "__main__":
    B, L1, L2 = 2, 6, 8
    gvocab, vocab, classes = 40, 50, 5

    key = jax.random.PRNGKey(0)
    ks = jax.random.split(key, 16)

    def init(k, shape, scale=0.1):
        return (scale * jax.random.normal(k, shape)).astype(jnp.float32)

    params = dict(
        glove=init(ks[0], (gvocab + 1, GLOVE_D)).at[0].set(0.0),   # padding_idx=0
        emb=init(ks[1], (vocab + 1, H)).at[0].set(0.0),            # padding_idx=0
        w1=init(ks[2], (GLOVE_D, H)), b1=init(ks[3], (1, H)),
        wif=init(ks[4], (H, 4 * H)), whf=init(ks[5], (H, 4 * H)), bgf=init(ks[6], (1, 4 * H)),
        wib=init(ks[7], (H, 4 * H)), whb=init(ks[8], (H, 4 * H)), bgb=init(ks[9], (1, 4 * H)),
        w2a=init(ks[10], (H, H)), w2b=init(ks[11], (H, H)), b2=init(ks[12], (1, H)),
        wda=init(ks[13], (H, classes)), wdb=init(ks[14], (H, classes)), bd=init(ks[15], (1, classes)),
    )

    l = jax.random.randint(jax.random.PRNGKey(1), (B, L1), 1, gvocab + 1)
    x = jax.random.randint(jax.random.PRNGKey(2), (B, L2), 1, vocab + 1)
    l = l.at[0, L1 - 2:].set(0)   # terminal padding tokens
    x = x.at[1, L2 - 3:].set(0)

    out = jax.block_until_ready(model2_forward(l, x, params))
    ref = model2_ref(l, x, params)
    np.testing.assert_allclose(np.asarray(out), np.asarray(ref), rtol=1e-4, atol=1e-4)
    print("KERNEL_OK")
</pallas_src>

<mosaic_0001>
module attributes {stable_mosaic.version = 11 : i64} {
  func.func @model2_kernel(%arg0: i32, %arg1: memref<8x6x64xf32, #tpu.memory_space<vmem>>, %arg2: memref<8x1xf32, #tpu.memory_space<vmem>>, %arg3: memref<8x8x64xf32, #tpu.memory_space<vmem>>, %arg4: memref<8x1xi32, #tpu.memory_space<vmem>>, %arg5: memref<1x64xf32, #tpu.memory_space<vmem>>, %arg6: memref<64x512xf32, #tpu.memory_space<vmem>>, %arg7: memref<1x512xf32, #tpu.memory_space<vmem>>, %arg8: memref<64x256xf32, #tpu.memory_space<vmem>>, %arg9: memref<64x256xf32, #tpu.memory_space<vmem>>, %arg10: memref<64x64xf32, #tpu.memory_space<vmem>>, %arg11: memref<64x64xf32, #tpu.memory_space<vmem>>, %arg12: memref<1x64xf32, #tpu.memory_space<vmem>>, %arg13: memref<64x128xf32, #tpu.memory_space<vmem>>, %arg14: memref<64x128xf32, #tpu.memory_space<vmem>>, %arg15: memref<1x128xf32, #tpu.memory_space<vmem>>, %arg16: memref<8x128xf32, #tpu.memory_space<vmem>>, %arg17: memref<8x8x256xf32, #tpu.memory_space<vmem>>, %arg18: memref<8x8x256xf32, #tpu.memory_space<vmem>>, %arg19: memref<8x64xf32, #tpu.memory_space<vmem>>, %arg20: memref<8x64xf32, #tpu.memory_space<vmem>>) attributes {dimension_semantics = [#tpu.dimension_semantics<parallel>], iteration_bounds = array<i64: 1>, scalar_prefetch = 0 : i64, scratch_operands = 4 : i64, tpu.core_type = #tpu.core_type<tc>, window_params = [{transform_indices = @transform_0, window_bounds = array<i64: 8, 6, 64>}, {transform_indices = @transform_1, window_bounds = array<i64: 8, 1>}, {transform_indices = @transform_2, window_bounds = array<i64: 8, 8, 64>}, {transform_indices = @transform_3, window_bounds = array<i64: 8, 1>}, {pipeline_mode = #tpu.pipeline_mode<synchronous>, transform_indices = @transform_4, window_bounds = array<i64: 1, 64>}, {pipeline_mode = #tpu.pipeline_mode<synchronous>, transform_indices = @transform_5, window_bounds = array<i64: 64, 512>}, {pipeline_mode = #tpu.pipeline_mode<synchronous>, transform_indices = @transform_6, window_bounds = array<i64: 1, 512>}, {pipeline_mode = #tpu.pipeline_mode<synchronous>, transform_indices = @transform_7, window_bounds = array<i64: 64, 256>}, {pipeline_mode = #tpu.pipeline_mode<synchronous>, transform_indices = @transform_8, window_bounds = array<i64: 64, 256>}, {pipeline_mode = #tpu.pipeline_mode<synchronous>, transform_indices = @transform_9, window_bounds = array<i64: 64, 64>}, {pipeline_mode = #tpu.pipeline_mode<synchronous>, transform_indices = @transform_10, window_bounds = array<i64: 64, 64>}, {pipeline_mode = #tpu.pipeline_mode<synchronous>, transform_indices = @transform_11, window_bounds = array<i64: 1, 64>}, {pipeline_mode = #tpu.pipeline_mode<synchronous>, transform_indices = @transform_12, window_bounds = array<i64: 64, 128>}, {pipeline_mode = #tpu.pipeline_mode<synchronous>, transform_indices = @transform_13, window_bounds = array<i64: 64, 128>}, {pipeline_mode = #tpu.pipeline_mode<synchronous>, transform_indices = @transform_14, window_bounds = array<i64: 1, 128>}, {transform_indices = @transform_15, window_bounds = array<i64: 8, 128>}]} {
    %c0 = arith.constant 0 : index
    %c0_0 = arith.constant 0 : index
    %c0_1 = arith.constant 0 : index
    %0 = vector.load %arg1[%c0, %c0_0, %c0_1] : memref<8x6x64xf32, #tpu.memory_space<vmem>>, vector<8x6x64xf32>
    %cst = arith.constant dense<0.000000e+00> : vector<8x64xf32>
    %1 = vector.multi_reduction <add>, %0, %cst [1] : vector<8x6x64xf32> to vector<8x64xf32>
    %c0_2 = arith.constant 0 : index
    %c0_3 = arith.constant 0 : index
    %2 = vector.load %arg2[%c0_2, %c0_3] : memref<8x1xf32, #tpu.memory_space<vmem>>, vector<8x1xf32>
    %3 = vector.broadcast %2 : vector<8x1xf32> to vector<8x64xf32>
    %4 = arith.divf %1, %3 : vector<8x64xf32>
    %c0_4 = arith.constant 0 : index
    %c0_5 = arith.constant 0 : index
    %5 = vector.load %arg5[%c0_4, %c0_5] : memref<1x64xf32, #tpu.memory_space<vmem>>, vector<1x64xf32>
    %6 = vector.broadcast %5 : vector<1x64xf32> to vector<8x64xf32>
    %7 = arith.addf %4, %6 : vector<8x64xf32>
    %cst_6 = arith.constant 0.000000e+00 : f32
    %8 = vector.broadcast %cst_6 : f32 to vector<8x64xf32>
    %9 = arith.maximumf %7, %8 : vector<8x64xf32>
    %c0_7 = arith.constant 0 : index
    %c0_8 = arith.constant 0 : index
    %c0_9 = arith.constant 0 : index
    %10 = vector.load %arg3[%c0_7, %c0_8, %c0_9] : memref<8x8x64xf32, #tpu.memory_space<vmem>>, vector<8x8x64xf32>
    %11 = vector.shape_cast %10 : vector<8x8x64xf32> to vector<64x64xf32>
    %c0_10 = arith.constant 0 : index
    %c0_11 = arith.constant 0 : index
    %12 = vector.load %arg6[%c0_10, %c0_11] : memref<64x512xf32, #tpu.memory_space<vmem>>, vector<64x512xf32>
    %cst_12 = arith.constant dense<0.000000e+00> : vector<64x512xf32>
    %13 = tpu.matmul %11, %12, %cst_12 {dimension_numbers = #tpu.dot_dimension_numbers<[1], [0], [0], [1], [0, 0, 1, 1], [], []>} : vector<64x64xf32>, vector<64x512xf32>, vector<64x512xf32> -> vector<64x512xf32>
    %c0_13 = arith.constant 0 : index
    %c0_14 = arith.constant 0 : index
    %14 = vector.load %arg7[%c0_13, %c0_14] : memref<1x512xf32, #tpu.memory_space<vmem>>, vector<1x512xf32>
    %15 = vector.broadcast %14 : vector<1x512xf32> to vector<64x512xf32>
    %16 = arith.addf %13, %15 : vector<64x512xf32>
    %17 = vector.extract_strided_slice %16 {offsets = [0, 0], sizes = [64, 256], strides = [1, 1]} : vector<64x512xf32> to vector<64x256xf32>
    %18 = vector.shape_cast %17 : vector<64x256xf32> to vector<8x8x256xf32>
    %c0_15 = arith.constant 0 : index
    %c0_16 = arith.constant 0 : index
    %c0_17 = arith.constant 0 : index
    %19 = vector.load %arg17[%c0_15, %c0_16, %c0_17] : memref<8x8x256xf32, #tpu.memory_space<vmem>>, vector<8x8x256xf32>
    tpu.vector_store %arg17[%c0_15, %c0_16, %c0_17], %18 {strides = array<i32>} : memref<8x8x256xf32, #tpu.memory_space<vmem>>, vector<8x8x256xf32>,
    %20 = vector.extract_strided_slice %16 {offsets = [0, 256], sizes = [64, 256], strides = [1, 1]} : vector<64x512xf32> to vector<64x256xf32>
    %21 = vector.shape_cast %20 : vector<64x256xf32> to vector<8x8x256xf32>
    %c0_18 = arith.constant 0 : index
    %c0_19 = arith.constant 0 : index
    %c0_20 = arith.constant 0 : index
    %22 = vector.load %arg18[%c0_18, %c0_19, %c0_20] : memref<8x8x256xf32, #tpu.memory_space<vmem>>, vector<8x8x256xf32>
    tpu.vector_store %arg18[%c0_18, %c0_19, %c0_20], %21 {strides = array<i32>} : memref<8x8x256xf32, #tpu.memory_space<vmem>>, vector<8x8x256xf32>,
    %cst_21 = arith.constant 0.000000e+00 : f32
    %23 = vector.broadcast %cst_21 : f32 to vector<8x64xf32>
    %c0_22 = arith.constant 0 : index
    %c0_23 = arith.constant 0 : index
    %24 = vector.load %arg19[%c0_22, %c0_23] : memref<8x64xf32, #tpu.memory_space<vmem>>, vector<8x64xf32>
    tpu.vector_store %arg19[%c0_22, %c0_23], %23 {strides = array<i32>} : memref<8x64xf32, #tpu.memory_space<vmem>>, vector<8x64xf32>,
    %cst_24 = arith.constant 0.000000e+00 : f32
    %25 = vector.broadcast %cst_24 : f32 to vector<8x64xf32>
    %c0_25 = arith.constant 0 : index
    %c0_26 = arith.constant 0 : index
    %26 = vector.load %arg20[%c0_25, %c0_26] : memref<8x64xf32, #tpu.memory_space<vmem>>, vector<8x64xf32>
    tpu.vector_store %arg20[%c0_25, %c0_26], %25 {strides = array<i32>} : memref<8x64xf32, #tpu.memory_space<vmem>>, vector<8x64xf32>,
    %c0_27 = arith.constant 0 : index
    %c0_28 = arith.constant 0 : index
    %27 = vector.load %arg4[%c0_27, %c0_28] : memref<8x1xi32, #tpu.memory_space<vmem>>, vector<8x1xi32>
    %cst_29 = arith.constant 0.000000e+00 : f32
    %28 = vector.broadcast %cst_29 : f32 to vector<8x64xf32>
    %c0_i32 = arith.constant 0 : i32
    %c7_i32 = arith.constant 7 : i32
    %29 = arith.subi %c7_i32, %c0_i32 : i32
    %30 = arith.index_cast %c0_i32 : i32 to index
    %c0_30 = arith.constant 0 : index
    %c0_31 = arith.constant 0 : index
    %31 = vector.load %arg17[%30, %c0_30, %c0_31] : memref<8x8x256xf32, #tpu.memory_space<vmem>>, vector<1x8x256xf32>
    %32 = vector.shape_cast %31 : vector<1x8x256xf32> to vector<8x256xf32>
    %c0_32 = arith.constant 0 : index
    %c0_33 = arith.constant 0 : index
    %33 = vector.load %arg8[%c0_32, %c0_33] : memref<64x256xf32, #tpu.memory_space<vmem>>, vector<64x256xf32>
    %cst_34 = arith.constant dense<0.000000e+00> : vector<8x256xf32>
    %34 = tpu.matmul %28, %33, %cst_34 {dimension_numbers = #tpu.dot_dimension_numbers<[1], [0], [0], [1], [0, 0, 1, 1], [], []>} : vector<8x64xf32>, vector<64x256xf32>, vector<8x256xf32> -> vector<8x256xf32>
    %35 = arith.addf %32, %34 : vector<8x256xf32>
    %36 = vector.extract_strided_slice %35 {offsets = [0, 0], sizes = [8, 192], strides = [1, 1]} : vector<8x256xf32> to vector<8x192xf32>
    %37 = arith.negf %36 : vector<8x192xf32>
    %38 = math.exp %37 : vector<8x192xf32>
    %cst_35 = arith.constant 1.000000e+00 : f32
    %39 = vector.broadcast %cst_35 : f32 to vector<8x192xf32>
    %40 = arith.addf %39, %38 : vector<8x192xf32>
    %41 = arith.divf %39, %40 : vector<8x192xf32>
    %42 = vector.extract_strided_slice %35 {offsets = [0, 192], sizes = [8, 64], strides = [1, 1]} : vector<8x256xf32> to vector<8x64xf32>
    %43 = math.tanh %42 : vector<8x64xf32>
    %44 = vector.extract_strided_slice %41 {offsets = [0, 64], sizes = [8, 64], strides = [1, 1]} : vector<8x192xf32> to vector<8x64xf32>
    %45 = arith.mulf %44, %28 : vector<8x64xf32>
    %46 = vector.extract_strided_slice %41 {offsets = [0, 0], sizes = [8, 64], strides = [1, 1]} : vector<8x192xf32> to vector<8x64xf32>
    %47 = arith.mulf %46, %43 : vector<8x64xf32>
    %48 = arith.addf %45, %47 : vector<8x64xf32>
    %49 = vector.extract_strided_slice %41 {offsets = [0, 128], sizes = [8, 64], strides = [1, 1]} : vector<8x192xf32> to vector<8x64xf32>
    %50 = math.tanh %48 : vector<8x64xf32>
    %51 = arith.mulf %49, %50 : vector<8x64xf32>
    %52 = arith.index_cast %29 : i32 to index
    %c0_36 = arith.constant 0 : index
    %c0_37 = arith.constant 0 : index
    %53 = vector.load %arg18[%52, %c0_36, %c0_37] : memref<8x8x256xf32, #tpu.memory_space<vmem>>, vector<1x8x256xf32>
    %54 = vector.shape_cast %53 : vector<1x8x256xf32> to vector<8x256xf32>
    %c0_38 = arith.constant 0 : index
    %c0_39 = arith.constant 0 : index
    %55 = vector.load %arg9[%c0_38, %c0_39] : memref<64x256xf32, #tpu.memory_space<vmem>>, vector<64x256xf32>
    %cst_40 = arith.constant dense<0.000000e+00> : vector<8x256xf32>
    %56 = tpu.matmul %28, %55, %cst_40 {dimension_numbers = #tpu.dot_dimension_numbers<[1], [0], [0], [1], [0, 0, 1, 1], [], []>} : vector<8x64xf32>, vector<64x256xf32>, vector<8x256xf32> -> vector<8x256xf32>
    %57 = arith.addf %54, %56 : vector<8x256xf32>
    %58 = vector.extract_strided_slice %57 {offsets = [0, 0], sizes = [8, 192], strides = [1, 1]} : vector<8x256xf32> to vector<8x192xf32>
    %59 = arith.negf %58 : vector<8x192xf32>
    %60 = math.exp %59 : vector<8x192xf32>
    %cst_41 = arith.constant 1.000000e+00 : f32
    %61 = vector.broadcast %cst_41 : f32 to vector<8x192xf32>
    %62 = arith.addf %61, %60 : vector<8x192xf32>
    %63 = arith.divf %61, %62 : vector<8x192xf32>
    %64 = vector.extract_strided_slice %57 {offsets = [0, 192], sizes = [8, 64], strides = [1, 1]} : vector<8x256xf32> to vector<8x64xf32>
    %65 = math.tanh %64 : vector<8x64xf32>
    %66 = vector.extract_strided_slice %63 {offsets = [0, 64], sizes = [8, 64], strides = [1, 1]} : vector<8x192xf32> to vector<8x64xf32>
    %67 = arith.mulf %66, %28 : vector<8x64xf32>
    %68 = vector.extract_strided_slice %63 {offsets = [0, 0], sizes = [8, 64], strides = [1, 1]} : vector<8x192xf32> to vector<8x64xf32>
    %69 = arith.mulf %68, %65 : vector<8x64xf32>
    %70 = arith.addf %67, %69 : vector<8x64xf32>
    %71 = vector.extract_strided_slice %63 {offsets = [0, 128], sizes = [8, 64], strides = [1, 1]} : vector<8x192xf32> to vector<8x64xf32>
    %72 = math.tanh %70 : vector<8x64xf32>
    %73 = arith.mulf %71, %72 : vector<8x64xf32>
    %c0_42 = arith.constant 0 : index
    %c0_43 = arith.constant 0 : index
    %74 = vector.load %arg19[%c0_42, %c0_43] : memref<8x64xf32, #tpu.memory_space<vmem>>, vector<8x64xf32>
    %75 = vector.broadcast %c0_i32 : i32 to vector<8x1xi32>
    %76 = arith.cmpi sgt, %27, %75 : vector<8x1xi32>
    %cst_44 = arith.constant 0.000000e+00 : f32
    %77 = vector.shape_cast %76 : vector<8x1xi1> to vector<8x1xi1>
    %78 = vector.broadcast %77 : vector<8x1xi1> to vector<8x64xi1>
    %79 = vector.broadcast %cst_44 : f32 to vector<8x64xf32>
    %80 = arith.select %78, %51, %79 : vector<8x64xi1>, vector<8x64xf32>
    %81 = arith.addf %74, %80 : vector<8x64xf32>
    %c0_45 = arith.constant 0 : index
    %c0_46 = arith.constant 0 : index
    %82 = vector.load %arg19[%c0_45, %c0_46] : memref<8x64xf32, #tpu.memory_space<vmem>>, vector<8x64xf32>
    tpu.vector_store %arg19[%c0_45, %c0_46], %81 {strides = array<i32>} : memref<8x64xf32, #tpu.memory_space<vmem>>, vector<8x64xf32>,
    %c0_47 = arith.constant 0 : index
    %c0_48 = arith.constant 0 : index
    %83 = vector.load %arg20[%c0_47, %c0_48] : memref<8x64xf32, #tpu.memory_space<vmem>>, vector<8x64xf32>
    %84 = vector.broadcast %29 : i32 to vector<8x1xi32>
    %85 = arith.cmpi sgt, %27, %84 : vector<8x1xi32>
    %cst_49 = arith.constant 0.000000e+00 : f32
    %86 = vector.shape_cast %85 : vector<8x1xi1> to vector<8x1xi1>
    %87 = vector.broadcast %86 : vector<8x1xi1> to vector<8x64xi1>
    %88 = vector.broadcast %cst_49 : f32 to vector<8x64xf32>
    %89 = arith.select %87, %73, %88 : vector<8x64xi1>, vector<8x64xf32>
    %90 = arith.addf %83, %89 : vector<8x64xf32>
    %c0_50 = arith.constant 0 : index
    %c0_51 = arith.constant 0 : index
    %91 = vector.load %arg20[%c0_50, %c0_51] : memref<8x64xf32, #tpu.memory_space<vmem>>, vector<8x64xf32>
    tpu.vector_store %arg20[%c0_50, %c0_51], %90 {strides = array<i32>} : memref<8x64xf32, #tpu.memory_space<vmem>>, vector<8x64xf32>,
    %c1_i32 = arith.constant 1 : i32
    %c7_i32_52 = arith.constant 7 : i32
    %92 = arith.subi %c7_i32_52, %c1_i32 : i32
    %93 = arith.index_cast %c1_i32 : i32 to index
    %c0_53 = arith.constant 0 : index
    %c0_54 = arith.constant 0 : index
    %94 = vector.load %arg17[%93, %c0_53, %c0_54] : memref<8x8x256xf32, #tpu.memory_space<vmem>>, vector<1x8x256xf32>
    %95 = vector.shape_cast %94 : vector<1x8x256xf32> to vector<8x256xf32>
    %c0_55 = arith.constant 0 : index
    %c0_56 = arith.constant 0 : index
    %96 = vector.load %arg8[%c0_55, %c0_56] : memref<64x256xf32, #tpu.memory_space<vmem>>, vector<64x256xf32>
    %cst_57 = arith.constant dense<0.000000e+00> : vector<8x256xf32>
    %97 = tpu.matmul %51, %96, %cst_57 {dimension_numbers = #tpu.dot_dimension_numbers<[1], [0], [0], [1], [0, 0, 1, 1], [], []>} : vector<8x64xf32>, vector<64x256xf32>, vector<8x256xf32> -> vector<8x256xf32>
    %98 = arith.addf %95, %97 : vector<8x256xf32>
    %99 = vector.extract_strided_slice %98 {offsets = [0, 0], sizes = [8, 192], strides = [1, 1]} : vector<8x256xf32> to vector<8x192xf32>
    %100 = arith.negf %99 : vector<8x192xf32>
    %101 = math.exp %100 : vector<8x192xf32>
    %cst_58 = arith.constant 1.000000e+00 : f32
    %102 = vector.broadcast %cst_58 : f32 to vector<8x192xf32>
    %103 = arith.addf %102, %101 : vector<8x192xf32>
    %104 = arith.divf %102, %103 : vector<8x192xf32>
    %105 = vector.extract_strided_slice %98 {offsets = [0, 192], sizes = [8, 64], strides = [1, 1]} : vector<8x256xf32> to vector<8x64xf32>
    %106 = math.tanh %105 : vector<8x64xf32>
    %107 = vector.extract_strided_slice %104 {offsets = [0, 64], sizes = [8, 64], strides = [1, 1]} : vector<8x192xf32> to vector<8x64xf32>
    %108 = arith.mulf %107, %48 : vector<8x64xf32>
    %109 = vector.extract_strided_slice %104 {offsets = [0, 0], sizes = [8, 64], strides = [1, 1]} : vector<8x192xf32> to vector<8x64xf32>
    %110 = arith.mulf %109, %106 : vector<8x64xf32>
    %111 = arith.addf %108, %110 : vector<8x64xf32>
    %112 = vector.extract_strided_slice %104 {offsets = [0, 128], sizes = [8, 64], strides = [1, 1]} : vector<8x192xf32> to vector<8x64xf32>
    %113 = math.tanh %111 : vector<8x64xf32>
    %114 = arith.mulf %112, %113 : vector<8x64xf32>
    %115 = arith.index_cast %92 : i32 to index
    %c0_59 = arith.constant 0 : index
    %c0_60 = arith.constant 0 : index
    %116 = vector.load %arg18[%115, %c0_59, %c0_60] : memref<8x8x256xf32, #tpu.memory_space<vmem>>, vector<1x8x256xf32>
    %117 = vector.shape_cast %116 : vector<1x8x256xf32> to vector<8x256xf32>
    %c0_61 = arith.constant 0 : index
    %c0_62 = arith.constant 0 : index
    %118 = vector.load %arg9[%c0_61, %c0_62] : memref<64x256xf32, #tpu.memory_space<vmem>>, vector<64x256xf32>
    %cst_63 = arith.constant dense<0.000000e+00> : vector<8x256xf32>
    %119 = tpu.matmul %73, %118, %cst_63 {dimension_numbers = #tpu.dot_dimension_numbers<[1], [0], [0], [1], [0, 0, 1, 1], [], []>} : vector<8x64xf32>, vector<64x256xf32>, vector<8x256xf32> -> vector<8x256xf32>
    %120 = arith.addf %117, %119 : vector<8x256xf32>
    %121 = vector.extract_strided_slice %120 {offsets = [0, 0], sizes = [8, 192], strides = [1, 1]} : vector<8x256xf32> to vector<8x192xf32>
    %122 = arith.negf %121 : vector<8x192xf32>
    %123 = math.exp %122 : vector<8x192xf32>
    %cst_64 = arith.constant 1.000000e+00 : f32
    %124 = vector.broadcast %cst_64 : f32 to vector<8x192xf32>
    %125 = arith.addf %124, %123 : vector<8x192xf32>
    %126 = arith.divf %124, %125 : vector<8x192xf32>
    %127 = vector.extract_strided_slice %120 {offsets = [0, 192], sizes = [8, 64], strides = [1, 1]} : vector<8x256xf32> to vector<8x64xf32>
    %128 = math.tanh %127 : vector<8x64xf32>
    %129 = vector.extract_strided_slice %126 {offsets = [0, 64], sizes = [8, 64], strides = [1, 1]} : vector<8x192xf32> to vector<8x64xf32>
    %130 = arith.mulf %129, %70 : vector<8x64xf32>
    %131 = vector.extract_strided_slice %126 {offsets = [0, 0], sizes = [8, 64], strides = [1, 1]} : vector<8x192xf32> to vector<8x64xf32>
    %132 = arith.mulf %131, %128 : vector<8x64xf32>
    %133 = arith.addf %130, %132 : vector<8x64xf32>
    %134 = vector.extract_strided_slice %126 {offsets = [0, 128], sizes = [8, 64], strides = [1, 1]} : vector<8x192xf32> to vector<8x64xf32>
    %135 = math.tanh %133 : vector<8x64xf32>
    %136 = arith.mulf %134, %135 : vector<8x64xf32>
    %c0_65 = arith.constant 0 : index
    %c0_66 = arith.constant 0 : index
    %137 = vector.load %arg19[%c0_65, %c0_66] : memref<8x64xf32, #tpu.memory_space<vmem>>, vector<8x64xf32>
    %138 = vector.broadcast %c1_i32 : i32 to vector<8x1xi32>
    %139 = arith.cmpi sgt, %27, %138 : vector<8x1xi32>
    %cst_67 = arith.constant 0.000000e+00 : f32
    %140 = vector.shape_cast %139 : vector<8x1xi1> to vector<8x1xi1>
    %141 = vector.broadcast %140 : vector<8x1xi1> to vector<8x64xi1>
    %142 = vector.broadcast %cst_67 : f32 to vector<8x64xf32>
    %143 = arith.select %141, %114, %142 : vector<8x64xi1>, vector<8x64xf32>
    %144 = arith.addf %137, %143 : vector<8x64xf32>
    %c0_68 = arith.constant 0 : index
    %c0_69 = arith.constant 0 : index
    %145 = vector.load %arg19[%c0_68, %c0_69] : memref<8x64xf32, #tpu.memory_space<vmem>>, vector<8x64xf32>
    tpu.vector_store %arg19[%c0_68, %c0_69], %144 {strides = array<i32>} : memref<8x64xf32, #tpu.memory_space<vmem>>, vector<8x64xf32>,
    %c0_70 = arith.constant 0 : index
    %c0_71 = arith.constant 0 : index
    %146 = vector.load %arg20[%c0_70, %c0_71] : memref<8x64xf32, #tpu.memory_space<vmem>>, vector<8x64xf32>
    %147 = vector.broadcast %92 : i32 to vector<8x1xi32>
    %148 = arith.cmpi sgt, %27, %147 : vector<8x1xi32>
    %cst_72 = arith.constant 0.000000e+00 : f32
    %149 = vector.shape_cast %148 : vector<8x1xi1> to vector<8x1xi1>
    %150 = vector.broadcast %149 : vector<8x1xi1> to vector<8x64xi1>
    %151 = vector.broadcast %cst_72 : f32 to vector<8x64xf32>
    %152 = arith.select %150, %136, %151 : vector<8x64xi1>, vector<8x64xf32>
    %153 = arith.addf %146, %152 : vector<8x64xf32>
    %c0_73 = arith.constant 0 : index
    %c0_74 = arith.constant 0 : index
    %154 = vector.load %arg20[%c0_73, %c0_74] : memref<8x64xf32, #tpu.memory_space<vmem>>, vector<8x64xf32>
    tpu.vector_store %arg20[%c0_73, %c0_74], %153 {strides = array<i32>} : memref<8x64xf32, #tpu.memory_space<vmem>>, vector<8x64xf32>,
    %c2_i32 = arith.constant 2 : i32
    %c7_i32_75 = arith.constant 7 : i32
    %155 = arith.subi %c7_i32_75, %c2_i32 : i32
    %156 = arith.index_cast %c2_i32 : i32 to index
    %c0_76 = arith.constant 0 : index
    %c0_77 = arith.constant 0 : index
    %157 = vector.load %arg17[%156, %c0_76, %c0_77] : memref<8x8x256xf32, #tpu.memory_space<vmem>>, vector<1x8x256xf32>
    %158 = vector.shape_cast %157 : vector<1x8x256xf32> to vector<8x256xf32>
    %c0_78 = arith.constant 0 : index
    %c0_79 = arith.constant 0 : index
    %159 = vector.load %arg8[%c0_78, %c0_79] : memref<64x256xf32, #tpu.memory_space<vmem>>, vector<64x256xf32>
    %cst_80 = arith.constant dense<0.000000e+00> : vector<8x256xf32>
    %160 = tpu.matmul %114, %159, %cst_80 {dimension_numbers = #tpu.dot_dimension_numbers<[1], [0], [0], [1], [0, 0, 1, 1], [], []>} : vector<8x64xf32>, vector<64x256xf32>, vector<8x256xf32> -> vector<8x256xf32>
    %161 = arith.addf %158, %160 : vector<8x256xf32>
    %162 = vector.extract_strided_slice %161 {offsets = [0, 0], sizes = [8, 192], strides = [1, 1]} : vector<8x256xf32> to vector<8x192xf32>
    %163 = arith.negf %162 : vector<8x192xf32>
    %164 = math.exp %163 : vector<8x192xf32>
    %cst_81 = arith.constant 1.000000e+00 : f32
    %165 = vector.broadcast %cst_81 : f32 to vector<8x192xf32>
    %166 = arith.addf %165, %164 : vector<8x192xf32>
    %167 = arith.divf %165, %166 : vector<8x192xf32>
    %168 = vector.extract_strided_slice %161 {offsets = [0, 192], sizes = [8, 64], strides = [1, 1]} : vector<8x256xf32> to vector<8x64xf32>
    %169 = math.tanh %168 : vector<8x64xf32>
    %170 = vector.extract_strided_slice %167 {offsets = [0, 64], sizes = [8, 64], strides = [1, 1]} : vector<8x192xf32> to vector<8x64xf32>
    %171 = arith.mulf %170, %111 : vector<8x64xf32>
    %172 = vector.extract_strided_slice %167 {offsets = [0, 0], sizes = [8, 64], strides = [1, 1]} : vector<8x192xf32> to vector<8x64xf32>
    %173 = arith.mulf %172, %169 : vector<8x64xf32>
    %174 = arith.addf %171, %173 : vector<8x64xf32>
    %175 = vector.extract_strided_slice %167 {offsets = [0, 128], sizes = [8, 64], strides = [1, 1]} : vector<8x192xf32> to vector<8x64xf32>
    %176 = math.tanh %174 : vector<8x64xf32>
    %177 = arith.mulf %175, %176 : vector<8x64xf32>
    %178 = arith.index_cast %155 : i32 to index
    %c0_82 = arith.constant 0 : index
    %c0_83 = arith.constant 0 : index
    %179 = vector.load %arg18[%178, %c0_82, %c0_83] : memref<8x8x256xf32, #tpu.memory_space<vmem>>, vector<1x8x256xf32>
    %180 = vector.shape_cast %179 : vector<1x8x256xf32> to vector<8x256xf32>
    %c0_84 = arith.constant 0 : index
    %c0_85 = arith.constant 0 : index
    %181 = vector.load %arg9[%c0_84, %c0_85] : memref<64x256xf32, #tpu.memory_space<vmem>>, vector<64x256xf32>
    %cst_86 = arith.constant dense<0.000000e+00> : vector<8x256xf32>
    %182 = tpu.matmul %136, %181, %cst_86 {dimension_numbers = #tpu.dot_dimension_numbers<[1], [0], [0], [1], [0, 0, 1, 1], [], []>} : vector<8x64xf32>, vector<64x256xf32>, vector<8x256xf32> -> vector<8x256xf32>
    %183 = arith.addf %180, %182 : vector<8x256xf32>
    %184 = vector.extract_strided_slice %183 {offsets = [0, 0], sizes = [8, 192], strides = [1, 1]} : vector<8x256xf32> to vector<8x192xf32>
    %185 = arith.negf %184 : vector<8x192xf32>
    %186 = math.exp %185 : vector<8x192xf32>
    %cst_87 = arith.constant 1.000000e+00 : f32
    %187 = vector.broadcast %cst_87 : f32 to vector<8x192xf32>
    %188 = arith.addf %187, %186 : vector<8x192xf32>
    %189 = arith.divf %187, %188 : vector<8x192xf32>
    %190 = vector.extract_strided_slice %183 {offsets = [0, 192], sizes = [8, 64], strides = [1, 1]} : vector<8x256xf32> to vector<8x64xf32>
    %191 = math.tanh %190 : vector<8x64xf32>
    %192 = vector.extract_strided_slice %189 {offsets = [0, 64], sizes = [8, 64], strides = [1, 1]} : vector<8x192xf32> to vector<8x64xf32>
    %193 = arith.mulf %192, %133 : vector<8x64xf32>
    %194 = vector.extract_strided_slice %189 {offsets = [0, 0], sizes = [8, 64], strides = [1, 1]} : vector<8x192xf32> to vector<8x64xf32>
    %195 = arith.mulf %194, %191 : vector<8x64xf32>
    %196 = arith.addf %193, %195 : vector<8x64xf32>
    %197 = vector.extract_strided_slice %189 {offsets = [0, 128], sizes = [8, 64], strides = [1, 1]} : vector<8x192xf32> to vector<8x64xf32>
    %198 = math.tanh %196 : vector<8x64xf32>
    %199 = arith.mulf %197, %198 : vector<8x64xf32>
    %c0_88 = arith.constant 0 : index
    %c0_89 = arith.constant 0 : index
    %200 = vector.load %arg19[%c0_88, %c0_89] : memref<8x64xf32, #tpu.memory_space<vmem>>, vector<8x64xf32>
    %201 = vector.broadcast %c2_i32 : i32 to vector<8x1xi32>
    %202 = arith.cmpi sgt, %27, %201 : vector<8x1xi32>
    %cst_90 = arith.constant 0.000000e+00 : f32
    %203 = vector.shape_cast %202 : vector<8x1xi1> to vector<8x1xi1>
    %204 = vector.broadcast %203 : vector<8x1xi1> to vector<8x64xi1>
    %205 = vector.broadcast %cst_90 : f32 to vector<8x64xf32>
    %206 = arith.select %204, %177, %205 : vector<8x64xi1>, vector<8x64xf32>
    %207 = arith.addf %200, %206 : vector<8x64xf32>
    %c0_91 = arith.constant 0 : index
    %c0_92 = arith.constant 0 : index
    %208 = vector.load %arg19[%c0_91, %c0_92] : memref<8x64xf32, #tpu.memory_space<vmem>>, vector<8x64xf32>
    tpu.vector_store %arg19[%c0_91, %c0_92], %207 {strides = array<i32>} : memref<8x64xf32, #tpu.memory_space<vmem>>, vector<8x64xf32>,
    %c0_93 = arith.constant 0 : index
    %c0_94 = arith.constant 0 : index
    %209 = vector.load %arg20[%c0_93, %c0_94] : memref<8x64xf32, #tpu.memory_space<vmem>>, vector<8x64xf32>
    %210 = vector.broadcast %155 : i32 to vector<8x1xi32>
    %211 = arith.cmpi sgt, %27, %210 : vector<8x1xi32>
    %cst_95 = arith.constant 0.000000e+00 : f32
    %212 = vector.shape_cast %211 : vector<8x1xi1> to vector<8x1xi1>
    %213 = vector.broadcast %212 : vector<8x1xi1> to vector<8x64xi1>
    %214 = vector.broadcast %cst_95 : f32 to vector<8x64xf32>
    %215 = arith.select %213, %199, %214 : vector<8x64xi1>, vector<8x64xf32>
    %216 = arith.addf %209, %215 : vector<8x64xf32>
    %c0_96 = arith.constant 0 : index
    %c0_97 = arith.constant 0 : index
    %217 = vector.load %arg20[%c0_96, %c0_97] : memref<8x64xf32, #tpu.memory_space<vmem>>, vector<8x64xf32>
    tpu.vector_store %arg20[%c0_96, %c0_97], %216 {strides = array<i32>} : memref<8x64xf32, #tpu.memory_space<vmem>>, vector<8x64xf32>,
    %c3_i32 = arith.constant 3 : i32
    %c7_i32_98 = arith.constant 7 : i32
    %218 = arith.subi %c7_i32_98, %c3_i32 : i32
    %219 = arith.index_cast %c3_i32 : i32 to index
    %c0_99 = arith.constant 0 : index
    %c0_100 = arith.constant 0 : index
    %220 = vector.load %arg17[%219, %c0_99, %c0_100] : memref<8x8x256xf32, #tpu.memory_space<vmem>>, vector<1x8x256xf32>
    %221 = vector.shape_cast %220 : vector<1x8x256xf32> to vector<8x256xf32>
    %c0_101 = arith.constant 0 : index
    %c0_102 = arith.constant 0 : index
    %222 = vector.load %arg8[%c0_101, %c0_102] : memref<64x256xf32, #tpu.memory_space<vmem>>, vector<64x256xf32>
    %cst_103 = arith.constant dense<0.000000e+00> : vector<8x256xf32>
    %223 = tpu.matmul %177, %222, %cst_103 {dimension_numbers = #tpu.dot_dimension_numbers<[1], [0], [0], [1], [0, 0, 1, 1], [], []>} : vector<8x64xf32>, vector<64x256xf32>, vector<8x256xf32> -> vector<8x256xf32>
    %224 = arith.addf %221, %223 : vector<8x256xf32>
    %225 = vector.extract_strided_slice %224 {offsets = [0, 0], sizes = [8, 192], strides = [1, 1]} : vector<8x256xf32> to vector<8x192xf32>
    %226 = arith.negf %225 : vector<8x192xf32>
    %227 = math.exp %226 : vector<8x192xf32>
    %cst_104 = arith.constant 1.000000e+00 : f32
    %228 = vector.broadcast %cst_104 : f32 to vector<8x192xf32>
    %229 = arith.addf %228, %227 : vector<8x192xf32>
    %230 = arith.divf %228, %229 : vector<8x192xf32>
    %231 = vector.extract_strided_slice %224 {offsets = [0, 192], sizes = [8, 64], strides = [1, 1]} : vector<8x256xf32> to vector<8x64xf32>
    %232 = math.tanh %231 : vector<8x64xf32>
    %233 = vector.extract_strided_slice %230 {offsets = [0, 64], sizes = [8, 64], strides = [1, 1]} : vector<8x192xf32> to vector<8x64xf32>
    %234 = arith.mulf %233, %174 : vector<8x64xf32>
    %235 = vector.extract_strided_slice %230 {offsets = [0, 0], sizes = [8, 64], strides = [1, 1]} : vector<8x192xf32> to vector<8x64xf32>
    %236 = arith.mulf %235, %232 : vector<8x64xf32>
    %237 = arith.addf %234, %236 : vector<8x64xf32>
    %238 = vector.extract_strided_slice %230 {offsets = [0, 128], sizes = [8, 64], strides = [1, 1]} : vector<8x192xf32> to vector<8x64xf32>
    %239 = math.tanh %237 : vector<8x64xf32>
    %240 = arith.mulf %238, %239 : vector<8x64xf32>
    %241 = arith.index_cast %218 : i32 to index
    %c0_105 = arith.constant 0 : index
    %c0_106 = arith.constant 0 : index
    %242 = vector.load %arg18[%241, %c0_105, %c0_106] : memref<8x8x256xf32, #tpu.memory_space<vmem>>, vector<1x8x256xf32>
    %243 = vector.shape_cast %242 : vector<1x8x256xf32> to vector<8x256xf32>
    %c0_107 = arith.constant 0 : index
    %c0_108 = arith.constant 0 : index
    %244 = vector.load %arg9[%c0_107, %c0_108] : memref<64x256xf32, #tpu.memory_space<vmem>>, vector<64x256xf32>
    %cst_109 = arith.constant dense<0.000000e+00> : vector<8x256xf32>
    %245 = tpu.matmul %199, %244, %cst_109 {dimension_numbers = #tpu.dot_dimension_numbers<[1], [0], [0], [1], [0, 0, 1, 1], [], []>} : vector<8x64xf32>, vector<64x256xf32>, vector<8x256xf32> -> vector<8x256xf32>
    %246 = arith.addf %243, %245 : vector<8x256xf32>
    %247 = vector.extract_strided_slice %246 {offsets = [0, 0], sizes = [8, 192], strides = [1, 1]} : vector<8x256xf32> to vector<8x192xf32>
    %248 = arith.negf %247 : vector<8x192xf32>
    %249 = math.exp %248 : vector<8x192xf32>
    %cst_110 = arith.constant 1.000000e+00 : f32
    %250 = vector.broadcast %cst_110 : f32 to vector<8x192xf32>
    %251 = arith.addf %250, %249 : vector<8x192xf32>
    %252 = arith.divf %250, %251 : vector<8x192xf32>
    %253 = vector.extract_strided_slice %246 {offsets = [0, 192], sizes = [8, 64], strides = [1, 1]} : vector<8x256xf32> to vector<8x64xf32>
    %254 = math.tanh %253 : vector<8x64xf32>
    %255 = vector.extract_strided_slice %252 {offsets = [0, 64], sizes = [8, 64], strides = [1, 1]} : vector<8x192xf32> to vector<8x64xf32>
    %256 = arith.mulf %255, %196 : vector<8x64xf32>
    %257 = vector.extract_strided_slice %252 {offsets = [0, 0], sizes = [8, 64], strides = [1, 1]} : vector<8x192xf32> to vector<8x64xf32>
    %258 = arith.mulf %257, %254 : vector<8x64xf32>
    %259 = arith.addf %256, %258 : vector<8x64xf32>
    %260 = vector.extract_strided_slice %252 {offsets = [0, 128], sizes = [8, 64], strides = [1, 1]} : vector<8x192xf32> to vector<8x64xf32>
    %261 = math.tanh %259 : vector<8x64xf32>
    %262 = arith.mulf %260, %261 : vector<8x64xf32>
    %c0_111 = arith.constant 0 : index
    %c0_112 = arith.constant 0 : index
    %263 = vector.load %arg19[%c0_111, %c0_112] : memref<8x64xf32, #tpu.memory_space<vmem>>, vector<8x64xf32>
    %264 = vector.broadcast %c3_i32 : i32 to vector<8x1xi32>
    %265 = arith.cmpi sgt, %27, %264 : vector<8x1xi32>
    %cst_113 = arith.constant 0.000000e+00 : f32
    %266 = vector.shape_cast %265 : vector<8x1xi1> to vector<8x1xi1>
    %267 = vector.broadcast %266 : vector<8x1xi1> to vector<8x64xi1>
    %268 = vector.broadcast %cst_113 : f32 to vector<8x64xf32>
    %269 = arith.select %267, %240, %268 : vector<8x64xi1>, vector<8x64xf32>
    %270 = arith.addf %263, %269 : vector<8x64xf32>
    %c0_114 = arith.constant 0 : index
    %c0_115 = arith.constant 0 : index
    %271 = vector.load %arg19[%c0_114, %c0_115] : memref<8x64xf32, #tpu.memory_space<vmem>>, vector<8x64xf32>
    tpu.vector_store %arg19[%c0_114, %c0_115], %270 {strides = array<i32>} : memref<8x64xf32, #tpu.memory_space<vmem>>, vector<8x64xf32>,
    %c0_116 = arith.constant 0 : index
    %c0_117 = arith.constant 0 : index
    %272 = vector.load %arg20[%c0_116, %c0_117] : memref<8x64xf32, #tpu.memory_space<vmem>>, vector<8x64xf32>
    %273 = vector.broadcast %218 : i32 to vector<8x1xi32>
    %274 = arith.cmpi sgt, %27, %273 : vector<8x1xi32>
    %cst_118 = arith.constant 0.000000e+00 : f32
    %275 = vector.shape_cast %274 : vector<8x1xi1> to vector<8x1xi1>
    %276 = vector.broadcast %275 : vector<8x1xi1> to vector<8x64xi1>
    %277 = vector.broadcast %cst_118 : f32 to vector<8x64xf32>
    %278 = arith.select %276, %262, %277 : vector<8x64xi1>, vector<8x64xf32>
    %279 = arith.addf %272, %278 : vector<8x64xf32>
    %c0_119 = arith.constant 0 : index
    %c0_120 = arith.constant 0 : index
    %280 = vector.load %arg20[%c0_119, %c0_120] : memref<8x64xf32, #tpu.memory_space<vmem>>, vector<8x64xf32>
    tpu.vector_store %arg20[%c0_119, %c0_120], %279 {strides = array<i32>} : memref<8x64xf32, #tpu.memory_space<vmem>>, vector<8x64xf32>,
    %c4_i32 = arith.constant 4 : i32
    %c7_i32_121 = arith.constant 7 : i32
    %281 = arith.subi %c7_i32_121, %c4_i32 : i32
    %282 = arith.index_cast %c4_i32 : i32 to index
    %c0_122 = arith.constant 0 : index
    %c0_123 = arith.constant 0 : index
    %283 = vector.load %arg17[%282, %c0_122, %c0_123] : memref<8x8x256xf32, #tpu.memory_space<vmem>>, vector<1x8x256xf32>
    %284 = vector.shape_cast %283 : vector<1x8x256xf32> to vector<8x256xf32>
    %c0_124 = arith.constant 0 : index
    %c0_125 = arith.constant 0 : index
    %285 = vector.load %arg8[%c0_124, %c0_125] : memref<64x256xf32, #tpu.memory_space<vmem>>, vector<64x256xf32>
    %cst_126 = arith.constant dense<0.000000e+00> : vector<8x256xf32>
    %286 = tpu.matmul %240, %285, %cst_126 {dimension_numbers = #tpu.dot_dimension_numbers<[1], [0], [0], [1], [0, 0, 1, 1], [], []>} : vector<8x64xf32>, vector<64x256xf32>, vector<8x256xf32> -> vector<8x256xf32>
    %287 = arith.addf %284, %286 : vector<8x256xf32>
    %288 = vector.extract_strided_slice %287 {offsets = [0, 0], sizes = [8, 192], strides = [1, 1]} : vector<8x256xf32> to vector<8x192xf32>
    %289 = arith.negf %288 : vector<8x192xf32>
    %290 = math.exp %289 : vector<8x192xf32>
    %cst_127 = arith.constant 1.000000e+00 : f32
    %291 = vector.broadcast %cst_127 : f32 to vector<8x192xf32>
    %292 = arith.addf %291, %290 : vector<8x192xf32>
    %293 = arith.divf %291, %292 : vector<8x192xf32>
    %294 = vector.extract_strided_slice %287 {offsets = [0, 192], sizes = [8, 64], strides = [1, 1]} : vector<8x256xf32> to vector<8x64xf32>
    %295 = math.tanh %294 : vector<8x64xf32>
    %296 = vector.extract_strided_slice %293 {offsets = [0, 64], sizes = [8, 64], strides = [1, 1]} : vector<8x192xf32> to vector<8x64xf32>
    %297 = arith.mulf %296, %237 : vector<8x64xf32>
    %298 = vector.extract_strided_slice %293 {offsets = [0, 0], sizes = [8, 64], strides = [1, 1]} : vector<8x192xf32> to vector<8x64xf32>
    %299 = arith.mulf %298, %295 : vector<8x64xf32>
    %300 = arith.addf %297, %299 : vector<8x64xf32>
    %301 = vector.extract_strided_slice %293 {offsets = [0, 128], sizes = [8, 64], strides = [1, 1]} : vector<8x192xf32> to vector<8x64xf32>
    %302 = math.tanh %300 : vector<8x64xf32>
    %303 = arith.mulf %301, %302 : vector<8x64xf32>
    %304 = arith.index_cast %281 : i32 to index
    %c0_128 = arith.constant 0 : index
    %c0_129 = arith.constant 0 : index
    %305 = vector.load %arg18[%304, %c0_128, %c0_129] : memref<8x8x256xf32, #tpu.memory_space<vmem>>, vector<1x8x256xf32>
    %306 = vector.shape_cast %305 : vector<1x8x256xf32> to vector<8x256xf32>
    %c0_130 = arith.constant 0 : index
    %c0_131 = arith.constant 0 : index
    %307 = vector.load %arg9[%c0_130, %c0_131] : memref<64x256xf32, #tpu.memory_space<vmem>>, vector<64x256xf32>
    %cst_132 = arith.constant dense<0.000000e+00> : vector<8x256xf32>
    %308 = tpu.matmul %262, %307, %cst_132 {dimension_numbers = #tpu.dot_dimension_numbers<[1], [0], [0], [1], [0, 0, 1, 1], [], []>} : vector<8x64xf32>, vector<64x256xf32>, vector<8x256xf32> -> vector<8x256xf32>
    %309 = arith.addf %306, %308 : vector<8x256xf32>
    %310 = vector.extract_strided_slice %309 {offsets = [0, 0], sizes = [8, 192], strides = [1, 1]} : vector<8x256xf32> to vector<8x192xf32>
    %311 = arith.negf %310 : vector<8x192xf32>
    %312 = math.exp %311 : vector<8x192xf32>
    %cst_133 = arith.constant 1.000000e+00 : f32
    %313 = vector.broadcast %cst_133 : f32 to vector<8x192xf32>
    %314 = arith.addf %313, %312 : vector<8x192xf32>
    %315 = arith.divf %313, %314 : vector<8x192xf32>
    %316 = vector.extract_strided_slice %309 {offsets = [0, 192], sizes = [8, 64], strides = [1, 1]} : vector<8x256xf32> to vector<8x64xf32>
    %317 = math.tanh %316 : vector<8x64xf32>
    %318 = vector.extract_strided_slice %315 {offsets = [0, 64], sizes = [8, 64], strides = [1, 1]} : vector<8x192xf32> to vector<8x64xf32>
    %319 = arith.mulf %318, %259 : vector<8x64xf32>
    %320 = vector.extract_strided_slice %315 {offsets = [0, 0], sizes = [8, 64], strides = [1, 1]} : vector<8x192xf32> to vector<8x64xf32>
    %321 = arith.mulf %320, %317 : vector<8x64xf32>
    %322 = arith.addf %319, %321 : vector<8x64xf32>
    %323 = vector.extract_strided_slice %315 {offsets = [0, 128], sizes = [8, 64], strides = [1, 1]} : vector<8x192xf32> to vector<8x64xf32>
    %324 = math.tanh %322 : vector<8x64xf32>
    %325 = arith.mulf %323, %324 : vector<8x64xf32>
    %c0_134 = arith.constant 0 : index
    %c0_135 = arith.constant 0 : index
    %326 = vector.load %arg19[%c0_134, %c0_135] : memref<8x64xf32, #tpu.memory_space<vmem>>, vector<8x64xf32>
    %327 = vector.broadcast %c4_i32 : i32 to vector<8x1xi32>
    %328 = arith.cmpi sgt, %27, %327 : vector<8x1xi32>
    %cst_136 = arith.constant 0.000000e+00 : f32
    %329 = vector.shape_cast %328 : vector<8x1xi1> to vector<8x1xi1>
    %330 = vector.broadcast %329 : vector<8x1xi1> to vector<8x64xi1>
    %331 = vector.broadcast %cst_136 : f32 to vector<8x64xf32>
    %332 = arith.select %330, %303, %331 : vector<8x64xi1>, vector<8x64xf32>
    %333 = arith.addf %326, %332 : vector<8x64xf32>
    %c0_137 = arith.constant 0 : index
    %c0_138 = arith.constant 0 : index
    %334 = vector.load %arg19[%c0_137, %c0_138] : memref<8x64xf32, #tpu.memory_space<vmem>>, vector<8x64xf32>
    tpu.vector_store %arg19[%c0_137, %c0_138], %333 {strides = array<i32>} : memref<8x64xf32, #tpu.memory_space<vmem>>, vector<8x64xf32>,
    %c0_139 = arith.constant 0 : index
    %c0_140 = arith.constant 0 : index
    %335 = vector.load %arg20[%c0_139, %c0_140] : memref<8x64xf32, #tpu.memory_space<vmem>>, vector<8x64xf32>
    %336 = vector.broadcast %281 : i32 to vector<8x1xi32>
    %337 = arith.cmpi sgt, %27, %336 : vector<8x1xi32>
    %cst_141 = arith.constant 0.000000e+00 : f32
    %338 = vector.shape_cast %337 : vector<8x1xi1> to vector<8x1xi1>
    %339 = vector.broadcast %338 : vector<8x1xi1> to vector<8x64xi1>
    %340 = vector.broadcast %cst_141 : f32 to vector<8x64xf32>
    %341 = arith.select %339, %325, %340 : vector<8x64xi1>, vector<8x64xf32>
    %342 = arith.addf %335, %341 : vector<8x64xf32>
    %c0_142 = arith.constant 0 : index
    %c0_143 = arith.constant 0 : index
    %343 = vector.load %arg20[%c0_142, %c0_143] : memref<8x64xf32, #tpu.memory_space<vmem>>, vector<8x64xf32>
    tpu.vector_store %arg20[%c0_142, %c0_143], %342 {strides = array<i32>} : memref<8x64xf32, #tpu.memory_space<vmem>>, vector<8x64xf32>,
    %c5_i32 = arith.constant 5 : i32
    %c7_i32_144 = arith.constant 7 : i32
    %344 = arith.subi %c7_i32_144, %c5_i32 : i32
    %345 = arith.index_cast %c5_i32 : i32 to index
    %c0_145 = arith.constant 0 : index
    %c0_146 = arith.constant 0 : index
    %346 = vector.load %arg17[%345, %c0_145, %c0_146] : memref<8x8x256xf32, #tpu.memory_space<vmem>>, vector<1x8x256xf32>
    %347 = vector.shape_cast %346 : vector<1x8x256xf32> to vector<8x256xf32>
    %c0_147 = arith.constant 0 : index
    %c0_148 = arith.constant 0 : index
    %348 = vector.load %arg8[%c0_147, %c0_148] : memref<64x256xf32, #tpu.memory_space<vmem>>, vector<64x256xf32>
    %cst_149 = arith.constant dense<0.000000e+00> : vector<8x256xf32>
    %349 = tpu.matmul %303, %348, %cst_149 {dimension_numbers = #tpu.dot_dimension_numbers<[1], [0], [0], [1], [0, 0, 1, 1], [], []>} : vector<8x64xf32>, vector<64x256xf32>, vector<8x256xf32> -> vector<8x256xf32>
    %350 = arith.addf %347, %349 : vector<8x256xf32>
    %351 = vector.extract_strided_slice %350 {offsets = [0, 0], sizes = [8, 192], strides = [1, 1]} : vector<8x256xf32> to vector<8x192xf32>
    %352 = arith.negf %351 : vector<8x192xf32>
    %353 = math.exp %352 : vector<8x192xf32>
    %cst_150 = arith.constant 1.000000e+00 : f32
    %354 = vector.broadcast %cst_150 : f32 to vector<8x192xf32>
    %355 = arith.addf %354, %353 : vector<8x192xf32>
    %356 = arith.divf %354, %355 : vector<8x192xf32>
    %357 = vector.extract_strided_slice %350 {offsets = [0, 192], sizes = [8, 64], strides = [1, 1]} : vector<8x256xf32> to vector<8x64xf32>
    %358 = math.tanh %357 : vector<8x64xf32>
    %359 = vector.extract_strided_slice %356 {offsets = [0, 64], sizes = [8, 64], strides = [1, 1]} : vector<8x192xf32> to vector<8x64xf32>
    %360 = arith.mulf %359, %300 : vector<8x64xf32>
    %361 = vector.extract_strided_slice %356 {offsets = [0, 0], sizes = [8, 64], strides = [1, 1]} : vector<8x192xf32> to vector<8x64xf32>
    %362 = arith.mulf %361, %358 : vector<8x64xf32>
    %363 = arith.addf %360, %362 : vector<8x64xf32>
    %364 = vector.extract_strided_slice %356 {offsets = [0, 128], sizes = [8, 64], strides = [1, 1]} : vector<8x192xf32> to vector<8x64xf32>
    %365 = math.tanh %363 : vector<8x64xf32>
    %366 = arith.mulf %364, %365 : vector<8x64xf32>
    %367 = arith.index_cast %344 : i32 to index
    %c0_151 = arith.constant 0 : index
    %c0_152 = arith.constant 0 : index
    %368 = vector.load %arg18[%367, %c0_151, %c0_152] : memref<8x8x256xf32, #tpu.memory_space<vmem>>, vector<1x8x256xf32>
    %369 = vector.shape_cast %368 : vector<1x8x256xf32> to vector<8x256xf32>
    %c0_153 = arith.constant 0 : index
    %c0_154 = arith.constant 0 : index
    %370 = vector.load %arg9[%c0_153, %c0_154] : memref<64x256xf32, #tpu.memory_space<vmem>>, vector<64x256xf32>
    %cst_155 = arith.constant dense<0.000000e+00> : vector<8x256xf32>
    %371 = tpu.matmul %325, %370, %cst_155 {dimension_numbers = #tpu.dot_dimension_numbers<[1], [0], [0], [1], [0, 0, 1, 1], [], []>} : vector<8x64xf32>, vector<64x256xf32>, vector<8x256xf32> -> vector<8x256xf32>
    %372 = arith.addf %369, %371 : vector<8x256xf32>
    %373 = vector.extract_strided_slice %372 {offsets = [0, 0], sizes = [8, 192], strides = [1, 1]} : vector<8x256xf32> to vector<8x192xf32>
    %374 = arith.negf %373 : vector<8x192xf32>
    %375 = math.exp %374 : vector<8x192xf32>
    %cst_156 = arith.constant 1.000000e+00 : f32
    %376 = vector.broadcast %cst_156 : f32 to vector<8x192xf32>
    %377 = arith.addf %376, %375 : vector<8x192xf32>
    %378 = arith.divf %376, %377 : vector<8x192xf32>
    %379 = vector.extract_strided_slice %372 {offsets = [0, 192], sizes = [8, 64], strides = [1, 1]} : vector<8x256xf32> to vector<8x64xf32>
    %380 = math.tanh %379 : vector<8x64xf32>
    %381 = vector.extract_strided_slice %378 {offsets = [0, 64], sizes = [8, 64], strides = [1, 1]} : vector<8x192xf32> to vector<8x64xf32>
    %382 = arith.mulf %381, %322 : vector<8x64xf32>
    %383 = vector.extract_strided_slice %378 {offsets = [0, 0], sizes = [8, 64], strides = [1, 1]} : vector<8x192xf32> to vector<8x64xf32>
    %384 = arith.mulf %383, %380 : vector<8x64xf32>
    %385 = arith.addf %382, %384 : vector<8x64xf32>
    %386 = vector.extract_strided_slice %378 {offsets = [0, 128], sizes = [8, 64], strides = [1, 1]} : vector<8x192xf32> to vector<8x64xf32>
    %387 = math.tanh %385 : vector<8x64xf32>
    %388 = arith.mulf %386, %387 : vector<8x64xf32>
    %c0_157 = arith.constant 0 : index
    %c0_158 = arith.constant 0 : index
    %389 = vector.load %arg19[%c0_157, %c0_158] : memref<8x64xf32, #tpu.memory_space<vmem>>, vector<8x64xf32>
    %390 = vector.broadcast %c5_i32 : i32 to vector<8x1xi32>
    %391 = arith.cmpi sgt, %27, %390 : vector<8x1xi32>
    %cst_159 = arith.constant 0.000000e+00 : f32
    %392 = vector.shape_cast %391 : vector<8x1xi1> to vector<8x1xi1>
    %393 = vector.broadcast %392 : vector<8x1xi1> to vector<8x64xi1>
    %394 = vector.broadcast %cst_159 : f32 to vector<8x64xf32>
    %395 = arith.select %393, %366, %394 : vector<8x64xi1>, vector<8x64xf32>
    %396 = arith.addf %389, %395 : vector<8x64xf32>
    %c0_160 = arith.constant 0 : index
    %c0_161 = arith.constant 0 : index
    %397 = vector.load %arg19[%c0_160, %c0_161] : memref<8x64xf32, #tpu.memory_space<vmem>>, vector<8x64xf32>
    tpu.vector_store %arg19[%c0_160, %c0_161], %396 {strides = array<i32>} : memref<8x64xf32, #tpu.memory_space<vmem>>, vector<8x64xf32>,
    %c0_162 = arith.constant 0 : index
    %c0_163 = arith.constant 0 : index
    %398 = vector.load %arg20[%c0_162, %c0_163] : memref<8x64xf32, #tpu.memory_space<vmem>>, vector<8x64xf32>
    %399 = vector.broadcast %344 : i32 to vector<8x1xi32>
    %400 = arith.cmpi sgt, %27, %399 : vector<8x1xi32>
    %cst_164 = arith.constant 0.000000e+00 : f32
    %401 = vector.shape_cast %400 : vector<8x1xi1> to vector<8x1xi1>
    %402 = vector.broadcast %401 : vector<8x1xi1> to vector<8x64xi1>
    %403 = vector.broadcast %cst_164 : f32 to vector<8x64xf32>
    %404 = arith.select %402, %388, %403 : vector<8x64xi1>, vector<8x64xf32>
    %405 = arith.addf %398, %404 : vector<8x64xf32>
    %c0_165 = arith.constant 0 : index
    %c0_166 = arith.constant 0 : index
    %406 = vector.load %arg20[%c0_165, %c0_166] : memref<8x64xf32, #tpu.memory_space<vmem>>, vector<8x64xf32>
    tpu.vector_store %arg20[%c0_165, %c0_166], %405 {strides = array<i32>} : memref<8x64xf32, #tpu.memory_space<vmem>>, vector<8x64xf32>,
    %c6_i32 = arith.constant 6 : i32
    %c7_i32_167 = arith.constant 7 : i32
    %407 = arith.subi %c7_i32_167, %c6_i32 : i32
    %408 = arith.index_cast %c6_i32 : i32 to index
    %c0_168 = arith.constant 0 : index
    %c0_169 = arith.constant 0 : index
    %409 = vector.load %arg17[%408, %c0_168, %c0_169] : memref<8x8x256xf32, #tpu.memory_space<vmem>>, vector<1x8x256xf32>
    %410 = vector.shape_cast %409 : vector<1x8x256xf32> to vector<8x256xf32>
    %c0_170 = arith.constant 0 : index
    %c0_171 = arith.constant 0 : index
    %411 = vector.load %arg8[%c0_170, %c0_171] : memref<64x256xf32, #tpu.memory_space<vmem>>, vector<64x256xf32>
    %cst_172 = arith.constant dense<0.000000e+00> : vector<8x256xf32>
    %412 = tpu.matmul %366, %411, %cst_172 {dimension_numbers = #tpu.dot_dimension_numbers<[1], [0], [0], [1], [0, 0, 1, 1], [], []>} : vector<8x64xf32>, vector<64x256xf32>, vector<8x256xf32> -> vector<8x256xf32>
    %413 = arith.addf %410, %412 : vector<8x256xf32>
    %414 = vector.extract_strided_slice %413 {offsets = [0, 0], sizes = [8, 192], strides = [1, 1]} : vector<8x256xf32> to vector<8x192xf32>
    %415 = arith.negf %414 : vector<8x192xf32>
    %416 = math.exp %415 : vector<8x192xf32>
    %cst_173 = arith.constant 1.000000e+00 : f32
    %417 = vector.broadcast %cst_173 : f32 to vector<8x192xf32>
    %418 = arith.addf %417, %416 : vector<8x192xf32>
    %419 = arith.divf %417, %418 : vector<8x192xf32>
    %420 = vector.extract_strided_slice %413 {offsets = [0, 192], sizes = [8, 64], strides = [1, 1]} : vector<8x256xf32> to vector<8x64xf32>
    %421 = math.tanh %420 : vector<8x64xf32>
    %422 = vector.extract_strided_slice %419 {offsets = [0, 64], sizes = [8, 64], strides = [1, 1]} : vector<8x192xf32> to vector<8x64xf32>
    %423 = arith.mulf %422, %363 : vector<8x64xf32>
    %424 = vector.extract_strided_slice %419 {offsets = [0, 0], sizes = [8, 64], strides = [1, 1]} : vector<8x192xf32> to vector<8x64xf32>
    %425 = arith.mulf %424, %421 : vector<8x64xf32>
    %426 = arith.addf %423, %425 : vector<8x64xf32>
    %427 = vector.extract_strided_slice %419 {offsets = [0, 128], sizes = [8, 64], strides = [1, 1]} : vector<8x192xf32> to vector<8x64xf32>
    %428 = math.tanh %426 : vector<8x64xf32>
    %429 = arith.mulf %427, %428 : vector<8x64xf32>
    %430 = arith.index_cast %407 : i32 to index
    %c0_174 = arith.constant 0 : index
    %c0_175 = arith.constant 0 : index
    %431 = vector.load %arg18[%430, %c0_174, %c0_175] : memref<8x8x256xf32, #tpu.memory_space<vmem>>, vector<1x8x256xf32>
    %432 = vector.shape_cast %431 : vector<1x8x256xf32> to vector<8x256xf32>
    %c0_176 = arith.constant 0 : index
    %c0_177 = arith.constant 0 : index
    %433 = vector.load %arg9[%c0_176, %c0_177] : memref<64x256xf32, #tpu.memory_space<vmem>>, vector<64x256xf32>
    %cst_178 = arith.constant dense<0.000000e+00> : vector<8x256xf32>
    %434 = tpu.matmul %388, %433, %cst_178 {dimension_numbers = #tpu.dot_dimension_numbers<[1], [0], [0], [1], [0, 0, 1, 1], [], []>} : vector<8x64xf32>, vector<64x256xf32>, vector<8x256xf32> -> vector<8x256xf32>
    %435 = arith.addf %432, %434 : vector<8x256xf32>
    %436 = vector.extract_strided_slice %435 {offsets = [0, 0], sizes = [8, 192], strides = [1, 1]} : vector<8x256xf32> to vector<8x192xf32>
    %437 = arith.negf %436 : vector<8x192xf32>
    %438 = math.exp %437 : vector<8x192xf32>
    %cst_179 = arith.constant 1.000000e+00 : f32
    %439 = vector.broadcast %cst_179 : f32 to vector<8x192xf32>
    %440 = arith.addf %439, %438 : vector<8x192xf32>
    %441 = arith.divf %439, %440 : vector<8x192xf32>
    %442 = vector.extract_strided_slice %435 {offsets = [0, 192], sizes = [8, 64], strides = [1, 1]} : vector<8x256xf32> to vector<8x64xf32>
    %443 = math.tanh %442 : vector<8x64xf32>
    %444 = vector.extract_strided_slice %441 {offsets = [0, 64], sizes = [8, 64], strides = [1, 1]} : vector<8x192xf32> to vector<8x64xf32>
    %445 = arith.mulf %444, %385 : vector<8x64xf32>
    %446 = vector.extract_strided_slice %441 {offsets = [0, 0], sizes = [8, 64], strides = [1, 1]} : vector<8x192xf32> to vector<8x64xf32>
    %447 = arith.mulf %446, %443 : vector<8x64xf32>
    %448 = arith.addf %445, %447 : vector<8x64xf32>
    %449 = vector.extract_strided_slice %441 {offsets = [0, 128], sizes = [8, 64], strides = [1, 1]} : vector<8x192xf32> to vector<8x64xf32>
    %450 = math.tanh %448 : vector<8x64xf32>
    %451 = arith.mulf %449, %450 : vector<8x64xf32>
    %c0_180 = arith.constant 0 : index
    %c0_181 = arith.constant 0 : index
    %452 = vector.load %arg19[%c0_180, %c0_181] : memref<8x64xf32, #tpu.memory_space<vmem>>, vector<8x64xf32>
    %453 = vector.broadcast %c6_i32 : i32 to vector<8x1xi32>
    %454 = arith.cmpi sgt, %27, %453 : vector<8x1xi32>
    %cst_182 = arith.constant 0.000000e+00 : f32
    %455 = vector.shape_cast %454 : vector<8x1xi1> to vector<8x1xi1>
    %456 = vector.broadcast %455 : vector<8x1xi1> to vector<8x64xi1>
    %457 = vector.broadcast %cst_182 : f32 to vector<8x64xf32>
    %458 = arith.select %456, %429, %457 : vector<8x64xi1>, vector<8x64xf32>
    %459 = arith.addf %452, %458 : vector<8x64xf32>
    %c0_183 = arith.constant 0 : index
    %c0_184 = arith.constant 0 : index
    %460 = vector.load %arg19[%c0_183, %c0_184] : memref<8x64xf32, #tpu.memory_space<vmem>>, vector<8x64xf32>
    tpu.vector_store %arg19[%c0_183, %c0_184], %459 {strides = array<i32>} : memref<8x64xf32, #tpu.memory_space<vmem>>, vector<8x64xf32>,
    %c0_185 = arith.constant 0 : index
    %c0_186 = arith.constant 0 : index
    %461 = vector.load %arg20[%c0_185, %c0_186] : memref<8x64xf32, #tpu.memory_space<vmem>>, vector<8x64xf32>
    %462 = vector.broadcast %407 : i32 to vector<8x1xi32>
    %463 = arith.cmpi sgt, %27, %462 : vector<8x1xi32>
    %cst_187 = arith.constant 0.000000e+00 : f32
    %464 = vector.shape_cast %463 : vector<8x1xi1> to vector<8x1xi1>
    %465 = vector.broadcast %464 : vector<8x1xi1> to vector<8x64xi1>
    %466 = vector.broadcast %cst_187 : f32 to vector<8x64xf32>
    %467 = arith.select %465, %451, %466 : vector<8x64xi1>, vector<8x64xf32>
    %468 = arith.addf %461, %467 : vector<8x64xf32>
    %c0_188 = arith.constant 0 : index
    %c0_189 = arith.constant 0 : index
    %469 = vector.load %arg20[%c0_188, %c0_189] : memref<8x64xf32, #tpu.memory_space<vmem>>, vector<8x64xf32>
    tpu.vector_store %arg20[%c0_188, %c0_189], %468 {strides = array<i32>} : memref<8x64xf32, #tpu.memory_space<vmem>>, vector<8x64xf32>,
    %c7_i32_190 = arith.constant 7 : i32
    %c7_i32_191 = arith.constant 7 : i32
    %470 = arith.subi %c7_i32_191, %c7_i32_190 : i32
    %471 = arith.index_cast %c7_i32_190 : i32 to index
    %c0_192 = arith.constant 0 : index
    %c0_193 = arith.constant 0 : index
    %472 = vector.load %arg17[%471, %c0_192, %c0_193] : memref<8x8x256xf32, #tpu.memory_space<vmem>>, vector<1x8x256xf32>
    %473 = vector.shape_cast %472 : vector<1x8x256xf32> to vector<8x256xf32>
    %c0_194 = arith.constant 0 : index
    %c0_195 = arith.constant 0 : index
    %474 = vector.load %arg8[%c0_194, %c0_195] : memref<64x256xf32, #tpu.memory_space<vmem>>, vector<64x256xf32>
    %cst_196 = arith.constant dense<0.000000e+00> : vector<8x256xf32>
    %475 = tpu.matmul %429, %474, %cst_196 {dimension_numbers = #tpu.dot_dimension_numbers<[1], [0], [0], [1], [0, 0, 1, 1], [], []>} : vector<8x64xf32>, vector<64x256xf32>, vector<8x256xf32> -> vector<8x256xf32>
    %476 = arith.addf %473, %475 : vector<8x256xf32>
    %477 = vector.extract_strided_slice %476 {offsets = [0, 0], sizes = [8, 192], strides = [1, 1]} : vector<8x256xf32> to vector<8x192xf32>
    %478 = arith.negf %477 : vector<8x192xf32>
    %479 = math.exp %478 : vector<8x192xf32>
    %cst_197 = arith.constant 1.000000e+00 : f32
    %480 = vector.broadcast %cst_197 : f32 to vector<8x192xf32>
    %481 = arith.addf %480, %479 : vector<8x192xf32>
    %482 = arith.divf %480, %481 : vector<8x192xf32>
    %483 = vector.extract_strided_slice %476 {offsets = [0, 192], sizes = [8, 64], strides = [1, 1]} : vector<8x256xf32> to vector<8x64xf32>
    %484 = math.tanh %483 : vector<8x64xf32>
    %485 = vector.extract_strided_slice %482 {offsets = [0, 64], sizes = [8, 64], strides = [1, 1]} : vector<8x192xf32> to vector<8x64xf32>
    %486 = arith.mulf %485, %426 : vector<8x64xf32>
    %487 = vector.extract_strided_slice %482 {offsets = [0, 0], sizes = [8, 64], strides = [1, 1]} : vector<8x192xf32> to vector<8x64xf32>
    %488 = arith.mulf %487, %484 : vector<8x64xf32>
    %489 = arith.addf %486, %488 : vector<8x64xf32>
    %490 = vector.extract_strided_slice %482 {offsets = [0, 128], sizes = [8, 64], strides = [1, 1]} : vector<8x192xf32> to vector<8x64xf32>
    %491 = math.tanh %489 : vector<8x64xf32>
    %492 = arith.mulf %490, %491 : vector<8x64xf32>
    %493 = arith.index_cast %470 : i32 to index
    %c0_198 = arith.constant 0 : index
    %c0_199 = arith.constant 0 : index
    %494 = vector.load %arg18[%493, %c0_198, %c0_199] : memref<8x8x256xf32, #tpu.memory_space<vmem>>, vector<1x8x256xf32>
    %495 = vector.shape_cast %494 : vector<1x8x256xf32> to vector<8x256xf32>
    %c0_200 = arith.constant 0 : index
    %c0_201 = arith.constant 0 : index
    %496 = vector.load %arg9[%c0_200, %c0_201] : memref<64x256xf32, #tpu.memory_space<vmem>>, vector<64x256xf32>
    %cst_202 = arith.constant dense<0.000000e+00> : vector<8x256xf32>
    %497 = tpu.matmul %451, %496, %cst_202 {dimension_numbers = #tpu.dot_dimension_numbers<[1], [0], [0], [1], [0, 0, 1, 1], [], []>} : vector<8x64xf32>, vector<64x256xf32>, vector<8x256xf32> -> vector<8x256xf32>
    %498 = arith.addf %495, %497 : vector<8x256xf32>
    %499 = vector.extract_strided_slice %498 {offsets = [0, 0], sizes = [8, 192], strides = [1, 1]} : vector<8x256xf32> to vector<8x192xf32>
    %500 = arith.negf %499 : vector<8x192xf32>
    %501 = math.exp %500 : vector<8x192xf32>
    %cst_203 = arith.constant 1.000000e+00 : f32
    %502 = vector.broadcast %cst_203 : f32 to vector<8x192xf32>
    %503 = arith.addf %502, %501 : vector<8x192xf32>
    %504 = arith.divf %502, %503 : vector<8x192xf32>
    %505 = vector.extract_strided_slice %498 {offsets = [0, 192], sizes = [8, 64], strides = [1, 1]} : vector<8x256xf32> to vector<8x64xf32>
    %506 = math.tanh %505 : vector<8x64xf32>
    %507 = vector.extract_strided_slice %504 {offsets = [0, 64], sizes = [8, 64], strides = [1, 1]} : vector<8x192xf32> to vector<8x64xf32>
    %508 = arith.mulf %507, %448 : vector<8x64xf32>
    %509 = vector.extract_strided_slice %504 {offsets = [0, 0], sizes = [8, 64], strides = [1, 1]} : vector<8x192xf32> to vector<8x64xf32>
    %510 = arith.mulf %509, %506 : vector<8x64xf32>
    %511 = arith.addf %508, %510 : vector<8x64xf32>
    %512 = vector.extract_strided_slice %504 {offsets = [0, 128], sizes = [8, 64], strides = [1, 1]} : vector<8x192xf32> to vector<8x64xf32>
    %513 = math.tanh %511 : vector<8x64xf32>
    %514 = arith.mulf %512, %513 : vector<8x64xf32>
    %c0_204 = arith.constant 0 : index
    %c0_205 = arith.constant 0 : index
    %515 = vector.load %arg19[%c0_204, %c0_205] : memref<8x64xf32, #tpu.memory_space<vmem>>, vector<8x64xf32>
    %516 = vector.broadcast %c7_i32_190 : i32 to vector<8x1xi32>
    %517 = arith.cmpi sgt, %27, %516 : vector<8x1xi32>
    %cst_206 = arith.constant 0.000000e+00 : f32
    %518 = vector.shape_cast %517 : vector<8x1xi1> to vector<8x1xi1>
    %519 = vector.broadcast %518 : vector<8x1xi1> to vector<8x64xi1>
    %520 = vector.broadcast %cst_206 : f32 to vector<8x64xf32>
    %521 = arith.select %519, %492, %520 : vector<8x64xi1>, vector<8x64xf32>
    %522 = arith.addf %515, %521 : vector<8x64xf32>
    %c0_207 = arith.constant 0 : index
    %c0_208 = arith.constant 0 : index
    %523 = vector.load %arg19[%c0_207, %c0_208] : memref<8x64xf32, #tpu.memory_space<vmem>>, vector<8x64xf32>
    tpu.vector_store %arg19[%c0_207, %c0_208], %522 {strides = array<i32>} : memref<8x64xf32, #tpu.memory_space<vmem>>, vector<8x64xf32>,
    %c0_209 = arith.constant 0 : index
    %c0_210 = arith.constant 0 : index
    %524 = vector.load %arg20[%c0_209, %c0_210] : memref<8x64xf32, #tpu.memory_space<vmem>>, vector<8x64xf32>
    %525 = vector.broadcast %470 : i32 to vector<8x1xi32>
    %526 = arith.cmpi sgt, %27, %525 : vector<8x1xi32>
    %cst_211 = arith.constant 0.000000e+00 : f32
    %527 = vector.shape_cast %526 : vector<8x1xi1> to vector<8x1xi1>
    %528 = vector.broadcast %527 : vector<8x1xi1> to vector<8x64xi1>
    %529 = vector.broadcast %cst_211 : f32 to vector<8x64xf32>
    %530 = arith.select %528, %514, %529 : vector<8x64xi1>, vector<8x64xf32>
    %531 = arith.addf %524, %530 : vector<8x64xf32>
    %c0_212 = arith.constant 0 : index
    %c0_213 = arith.constant 0 : index
    %532 = vector.load %arg20[%c0_212, %c0_213] : memref<8x64xf32, #tpu.memory_space<vmem>>, vector<8x64xf32>
    tpu.vector_store %arg20[%c0_212, %c0_213], %531 {strides = array<i32>} : memref<8x64xf32, #tpu.memory_space<vmem>>, vector<8x64xf32>,
    %c8_i32 = arith.constant 8 : i32
    %533 = arith.sitofp %27 : vector<8x1xi32> to vector<8x1xf32>
    %cst_214 = arith.constant 1.000000e+00 : f32
    %534 = vector.broadcast %cst_214 : f32 to vector<8x1xf32>
    %535 = arith.maximumf %533, %534 : vector<8x1xf32>
    %c0_215 = arith.constant 0 : index
    %c0_216 = arith.constant 0 : index
    %536 = vector.load %arg19[%c0_215, %c0_216] : memref<8x64xf32, #tpu.memory_space<vmem>>, vector<8x64xf32>
    %537 = vector.broadcast %535 : vector<8x1xf32> to vector<8x64xf32>
    %538 = arith.divf %536, %537 : vector<8x64xf32>
    %c0_217 = arith.constant 0 : index
    %c0_218 = arith.constant 0 : index
    %539 = vector.load %arg20[%c0_217, %c0_218] : memref<8x64xf32, #tpu.memory_space<vmem>>, vector<8x64xf32>
    %540 = vector.broadcast %535 : vector<8x1xf32> to vector<8x64xf32>
    %541 = arith.divf %539, %540 : vector<8x64xf32>
    %c0_219 = arith.constant 0 : index
    %c0_220 = arith.constant 0 : index
    %542 = vector.load %arg10[%c0_219, %c0_220] : memref<64x64xf32, #tpu.memory_space<vmem>>, vector<64x64xf32>
    %cst_221 = arith.constant dense<0.000000e+00> : vector<8x64xf32>
    %543 = tpu.matmul %538, %542, %cst_221 {dimension_numbers = #tpu.dot_dimension_numbers<[1], [0], [0], [1], [0, 0, 1, 1], [], []>} : vector<8x64xf32>, vector<64x64xf32>, vector<8x64xf32> -> vector<8x64xf32>
    %c0_222 = arith.constant 0 : index
    %c0_223 = arith.constant 0 : index
    %544 = vector.load %arg11[%c0_222, %c0_223] : memref<64x64xf32, #tpu.memory_space<vmem>>, vector<64x64xf32>
    %cst_224 = arith.constant dense<0.000000e+00> : vector<8x64xf32>
    %545 = tpu.matmul %541, %544, %cst_224 {dimension_numbers = #tpu.dot_dimension_numbers<[1], [0], [0], [1], [0, 0, 1, 1], [], []>} : vector<8x64xf32>, vector<64x64xf32>, vector<8x64xf32> -> vector<8x64xf32>
    %546 = arith.addf %543, %545 : vector<8x64xf32>
    %c0_225 = arith.constant 0 : index
    %c0_226 = arith.constant 0 : index
    %547 = vector.load %arg12[%c0_225, %c0_226] : memref<1x64xf32, #tpu.memory_space<vmem>>, vector<1x64xf32>
    %548 = vector.broadcast %547 : vector<1x64xf32> to vector<8x64xf32>
    %549 = arith.addf %546, %548 : vector<8x64xf32>
    %cst_227 = arith.constant 0.000000e+00 : f32
    %550 = vector.broadcast %cst_227 : f32 to vector<8x64xf32>
    %551 = arith.maximumf %549, %550 : vector<8x64xf32>
    %c0_228 = arith.constant 0 : index
    %c0_229 = arith.constant 0 : index
    %552 = vector.load %arg13[%c0_228, %c0_229] : memref<64x128xf32, #tpu.memory_space<vmem>>, vector<64x128xf32>
    %cst_230 = arith.constant dense<0.000000e+00> : vector<8x128xf32>
    %553 = tpu.matmul %9, %552, %cst_230 {dimension_numbers = #tpu.dot_dimension_numbers<[1], [0], [0], [1], [0, 0, 1, 1], [], []>} : vector<8x64xf32>, vector<64x128xf32>, vector<8x128xf32> -> vector<8x128xf32>
    %c0_231 = arith.constant 0 : index
    %c0_232 = arith.constant 0 : index
    %554 = vector.load %arg14[%c0_231, %c0_232] : memref<64x128xf32, #tpu.memory_space<vmem>>, vector<64x128xf32>
    %cst_233 = arith.constant dense<0.000000e+00> : vector<8x128xf32>
    %555 = tpu.matmul %551, %554, %cst_233 {dimension_numbers = #tpu.dot_dimension_numbers<[1], [0], [0], [1], [0, 0, 1, 1], [], []>} : vector<8x64xf32>, vector<64x128xf32>, vector<8x128xf32> -> vector<8x128xf32>
    %556 = arith.addf %553, %555 : vector<8x128xf32>
    %c0_234 = arith.constant 0 : index
    %c0_235 = arith.constant 0 : index
    %557 = vector.load %arg15[%c0_234, %c0_235] : memref<1x128xf32, #tpu.memory_space<vmem>>, vector<1x128xf32>
    %558 = vector.broadcast %557 : vector<1x128xf32> to vector<8x128xf32>
    %559 = arith.addf %556, %558 : vector<8x128xf32>
    %cst_236 = arith.constant dense<0xFF800000> : vector<8xf32>
    %560 = vector.multi_reduction <maximumf>, %559, %cst_236 [1] : vector<8x128xf32> to vector<8xf32>
    %561 = vector.shape_cast %560 : vector<8xf32> to vector<8x1xf32>
    %562 = vector.broadcast %561 : vector<8x1xf32> to vector<8x128xf32>
    %563 = arith.subf %559, %562 : vector<8x128xf32>
    %564 = math.exp %563 : vector<8x128xf32>
    %cst_237 = arith.constant dense<0.000000e+00> : vector<8xf32>
    %565 = vector.multi_reduction <add>, %564, %cst_237 [1] : vector<8x128xf32> to vector<8xf32>
    %566 = vector.shape_cast %565 : vector<8xf32> to vector<8x1xf32>
    %567 = math.log %566 : vector<8x1xf32>
    %568 = arith.addf %567, %561 : vector<8x1xf32>
    %569 = vector.broadcast %568 : vector<8x1xf32> to vector<8x128xf32>
    %570 = arith.subf %559, %569 : vector<8x128xf32>
    %c0_238 = arith.constant 0 : index
    %c0_239 = arith.constant 0 : index
    %571 = vector.load %arg16[%c0_238, %c0_239] : memref<8x128xf32, #tpu.memory_space<vmem>>, vector<8x128xf32>
    tpu.vector_store %arg16[%c0_238, %c0_239], %570 {strides = array<i32>} : memref<8x128xf32, #tpu.memory_space<vmem>>, vector<8x128xf32>,
    return
  }
  func.func @transform_0(%arg0: i32) -> (i32, i32, i32) {
    %c0_i32 = arith.constant 0 : i32
    %c0_i32_0 = arith.constant 0 : i32
    %c0_i32_1 = arith.constant 0 : i32
    return %arg0, %c0_i32, %c0_i32_0 : i32, i32, i32
  }
  func.func @transform_1(%arg0: i32) -> (i32, i32) {
    %c0_i32 = arith.constant 0 : i32
    %c0_i32_0 = arith.constant 0 : i32
    return %arg0, %c0_i32 : i32, i32
  }
  func.func @transform_2(%arg0: i32) -> (i32, i32, i32) {
    %c0_i32 = arith.constant 0 : i32
    %c0_i32_0 = arith.constant 0 : i32
    %c0_i32_1 = arith.constant 0 : i32
    return %c0_i32, %arg0, %c0_i32_0 : i32, i32, i32
  }
  func.func @transform_3(%arg0: i32) -> (i32, i32) {
    %c0_i32 = arith.constant 0 : i32
    %c0_i32_0 = arith.constant 0 : i32
    return %arg0, %c0_i32 : i32, i32
  }
  func.func @transform_4(%arg0: i32) -> (i32, i32) {
    %c0_i32 = arith.constant 0 : i32
    %c0_i32_0 = arith.constant 0 : i32
    %c0_i32_1 = arith.constant 0 : i32
    return %c0_i32, %c0_i32_0 : i32, i32
  }
  func.func @transform_5(%arg0: i32) -> (i32, i32) {
    %c0_i32 = arith.constant 0 : i32
    %c0_i32_0 = arith.constant 0 : i32
    %c0_i32_1 = arith.constant 0 : i32
    return %c0_i32, %c0_i32_0 : i32, i32
  }
  func.func @transform_6(%arg0: i32) -> (i32, i32) {
    %c0_i32 = arith.constant 0 : i32
    %c0_i32_0 = arith.constant 0 : i32
    %c0_i32_1 = arith.constant 0 : i32
    return %c0_i32, %c0_i32_0 : i32, i32
  }
  func.func @transform_7(%arg0: i32) -> (i32, i32) {
    %c0_i32 = arith.constant 0 : i32
    %c0_i32_0 = arith.constant 0 : i32
    %c0_i32_1 = arith.constant 0 : i32
    return %c0_i32, %c0_i32_0 : i32, i32
  }
  func.func @transform_8(%arg0: i32) -> (i32, i32) {
    %c0_i32 = arith.constant 0 : i32
    %c0_i32_0 = arith.constant 0 : i32
    %c0_i32_1 = arith.constant 0 : i32
    return %c0_i32, %c0_i32_0 : i32, i32
  }
  func.func @transform_9(%arg0: i32) -> (i32, i32) {
    %c0_i32 = arith.constant 0 : i32
    %c0_i32_0 = arith.constant 0 : i32
    %c0_i32_1 = arith.constant 0 : i32
    return %c0_i32, %c0_i32_0 : i32, i32
  }
  func.func @transform_10(%arg0: i32) -> (i32, i32) {
    %c0_i32 = arith.constant 0 : i32
    %c0_i32_0 = arith.constant 0 : i32
    %c0_i32_1 = arith.constant 0 : i32
    return %c0_i32, %c0_i32_0 : i32, i32
  }
  func.func @transform_11(%arg0: i32) -> (i32, i32) {
    %c0_i32 = arith.constant 0 : i32
    %c0_i32_0 = arith.constant 0 : i32
    %c0_i32_1 = arith.constant 0 : i32
    return %c0_i32, %c0_i32_0 : i32, i32
  }
  func.func @transform_12(%arg0: i32) -> (i32, i32) {
    %c0_i32 = arith.constant 0 : i32
    %c0_i32_0 = arith.constant 0 : i32
    %c0_i32_1 = arith.constant 0 : i32
    return %c0_i32, %c0_i32_0 : i32, i32
  }
  func.func @transform_13(%arg0: i32) -> (i32, i32) {
    %c0_i32 = arith.constant 0 : i32
    %c0_i32_0 = arith.constant 0 : i32
    %c0_i32_1 = arith.constant 0 : i32
    return %c0_i32, %c0_i32_0 : i32, i32
  }
  func.func @transform_14(%arg0: i32) -> (i32, i32) {
    %c0_i32 = arith.constant 0 : i32
    %c0_i32_0 = arith.constant 0 : i32
    %c0_i32_1 = arith.constant 0 : i32
    return %c0_i32, %c0_i32_0 : i32, i32
  }
  func.func @transform_15(%arg0: i32) -> (i32, i32) {
    %c0_i32 = arith.constant 0 : i32
    %c0_i32_0 = arith.constant 0 : i32
    return %arg0, %c0_i32 : i32, i32
  }
}

</mosaic_0001>

<bundles_post_ra>
// kernel: tpu_custom_call.1
= control target key start
LH: loop header
LB: loop body
LE: loop exit
PB: predicated region body
PF: predicated region fallthrough
CT: control target
= control target key end

     0   :  { %s5045_s0 = inlined_call_operand.vmem [shape: f32[8,6,64], index: 0, kind: input, shape index: {}]   ;;  %s5046_s1 = inlined_call_operand.vmem [shape: f32[8,1], index: 1, kind: input, shape index: {}]   ;;  %s5047_s2 = inlined_call_operand.hbm [shape: f32[8,8,64], index: 2, kind: input, shape index: {}]   ;;  %s5048_s3 = inlined_call_operand.vmem [shape: s32[8,1], index: 3, kind: input, shape index: {}]   ;;  %s5049_s4 = inlined_call_operand.vmem [shape: f32[1,64], index: 4, kind: input, shape index: {}]   ;;  %s5050_s5 = inlined_call_operand.hbm [shape: f32[64,512], index: 5, kind: input, shape index: {}]   ;;  %s5051_s6 = inlined_call_operand.vmem [shape: f32[1,512], index: 6, kind: input, shape index: {}]   ;;  %s5052_s7 = inlined_call_operand.vmem [shape: f32[64,256], index: 7, kind: input, shape index: {}]   ;;  %s5053_s8 = inlined_call_operand.hbm [shape: f32[64,256], index: 8, kind: input, shape index: {}]   ;;  %s5054_s9 = inlined_call_operand.hbm [shape: f32[64,64], index: 9, kind: input, shape index: {}]   ;;  %s5055_s10 = inlined_call_operand.hbm [shape: f32[64,64], index: 10, kind: input, shape index: {}]   ;;  %s5056_s11 = inlined_call_operand.vmem [shape: f32[1,64], index: 11, kind: input, shape index: {}]   ;;  %s5057_s12 = inlined_call_operand.hbm [shape: f32[64,128], index: 12, kind: input, shape index: {}]   ;;  %s5058_s13 = inlined_call_operand.hbm [shape: f32[64,128], index: 13, kind: input, shape index: {}]   ;;  %s5059_s14 = inlined_call_operand.vmem [shape: f32[1,128], index: 14, kind: input, shape index: {}]   ;;  %s5060_s15 = inlined_call_operand.hbm [shape: f32[8,128], index: 15, kind: output, shape index: {}]  }
   0x1   :  { %5062 = sst [smem:[#allocation24_spill]] %s5060_s15 }
   0x2   :  { %20 = vsyncpa [#allocation7], 0 }
   0x3   :  { %21 = vsyncpa [#allocation10], 0 }
   0x4   :  { %22 = vsyncpa [#allocation13], 0 }
   0x5   :  { %23 = vsyncpa [#allocation16], 0 }
   0x6   :  { %24 = vsyncpa [#allocation8], 0  ;;  %s4138_s18 = smov [#allocation9]   ;;  %s3952_s22 = scalar_lea.hbm %s5050_s5, 4096 }
   0x7   :  { %s50_s19 = sshll.u32 %s4138_s18, 4  ;;  %p3953_p0 = scmp.ne.s32.totalorder %s5050_s5, %s3952_s22  ;;  %s51_s19 = int_to_ptr.vmem [resolvable:$true] %s50_s19 }
   0x8   :  { %p3956_p1 = scmp.lt.u32.totalorder %s3952_s22, %s5050_s5 }
   0xa   :  { %p3958_p2 = pnand %p3956_p1, %p3953_p0 }
   0xc   :  { %3961 = shalt.err (!%p3958_p2)
}
   0xd   :  { %s3962_s27 = scalar_lea.vmem %s51_s19, 4096  ;;  %p3967_p4 = scmp.lt.s32.totalorder %s51_s19, %s51_s19 }
   0xe   :  { %p3963_p3 = scmp.ne.s32.totalorder %s51_s19, %s3962_s27  ;;  %p3968_p5 = scmp.lt.s32.totalorder %s3962_s27, %s3962_s27 }
  0x10   :  { %p3969_p6 = por %p3968_p5, %p3967_p4 }
  0x12   :  { %p3970_p7 = pnand %p3969_p6, %p3963_p3 }
  0x14   :  { %3973 = shalt.err (!%p3970_p7)
}
  0x15   :  { %s4139_s28 = smov 512   ;;  %s4140_s29 = smov 32  }
  0x16   :  { %56 = dma.hbm_to_vmem [thread:$0]  %s5050_s5, 4096, %s51_s19, [#allocation10], %s4139_s28, %s4139_s28, %s4140_s29  }
  0x17   :  { %s4141_s17 = smov [#allocation12]   ;;  %s4142_s20 = smov [#allocation15]  }
  0x18   :  { %s78_s18 = sshll.u32 %s4141_s17, 4  ;;  %s104_s21 = sshll.u32 %s4142_s20, 4  ;;  %s79_s18 = int_to_ptr.vmem [resolvable:$true] %s78_s18  ;;  %s105_s21 = int_to_ptr.vmem [resolvable:$true] %s104_s21 }
  0x19   :  { %s3974_s24 = scalar_lea.hbm %s5054_s9, 1024 }
  0x1a   :  { %p3975_p8 = scmp.ne.s32.totalorder %s5054_s9, %s3974_s24  ;;  %p3978_p9 = scmp.lt.u32.totalorder %s3974_s24, %s5054_s9 }
  0x1c   :  { %p3980_p10 = pnand %p3978_p9, %p3975_p8 }
  0x1e   :  { %3983 = shalt.err (!%p3980_p10)
}
  0x1f   :  { %s3984_s5 = scalar_lea.vmem %s79_s18, 1024  ;;  %p3989_p12 = scmp.lt.s32.totalorder %s79_s18, %s79_s18 }
  0x20   :  { %p3985_p11 = scmp.ne.s32.totalorder %s79_s18, %s3984_s5  ;;  %p3990_p13 = scmp.lt.s32.totalorder %s3984_s5, %s3984_s5 }
  0x22   :  { %p3991_p0 = por %p3990_p13, %p3989_p12 }
  0x24   :  { %p3992_p1 = pnand %p3991_p0, %p3985_p11 }
  0x26   :  { %3995 = shalt.err (!%p3992_p1)
}
  0x27   :  { %s4143_s19 = smov 128   ;;  %s4144_s28 = smov 8  }
  0x28   :  { %84 = dma.hbm_to_vmem [thread:$0]  %s5054_s9, 1024, %s79_s18, [#allocation13], %s4143_s19, %s4143_s19, %s4144_s28  }
  0x29   :  { %s3996_s17 = scalar_lea.hbm %s5057_s12, 1024 }
  0x2a   :  { %p3997_p2 = scmp.ne.s32.totalorder %s5057_s12, %s3996_s17  ;;  %p4000_p3 = scmp.lt.u32.totalorder %s3996_s17, %s5057_s12 }
  0x2c   :  { %p4002_p4 = pnand %p4000_p3, %p3997_p2 }
  0x2e   :  { %4005 = shalt.err (!%p4002_p4)
}
  0x2f   :  { %s4006_s25 = scalar_lea.vmem %s105_s21, 1024  ;;  %p4011_p6 = scmp.lt.s32.totalorder %s105_s21, %s105_s21 }
  0x30   :  { %p4007_p5 = scmp.ne.s32.totalorder %s105_s21, %s4006_s25  ;;  %p4012_p7 = scmp.lt.s32.totalorder %s4006_s25, %s4006_s25 }
  0x32   :  { %p4013_p8 = por %p4012_p7, %p4011_p6 }
  0x34   :  { %p4014_p9 = pnand %p4013_p8, %p4007_p5 }
  0x36   :  { %4017 = shalt.err (!%p4014_p9)
}
  0x37   :  { %110 = dma.hbm_to_vmem [thread:$0]  %s5057_s12, 1024, %s105_s21, [#allocation16], %s4143_s19, %s4143_s19, %s4144_s28  }
  0x38   :  { %s4145_s26 = smov [#allocation6]   ;;  %s4146_s5 = smov [#allocation11]  }
  0x39   :  { %s34_s27 = sshll.u32 %s4145_s26, 4  ;;  %s66_s29 = sshll.u32 %s4146_s5, 4  ;;  %s35_s27 = int_to_ptr.vmem [resolvable:$true] %s34_s27  ;;  %s67_s29 = int_to_ptr.vmem [resolvable:$true] %s66_s29 }
  0x3a   :  { %s4018_s16 = scalar_lea.hbm %s5047_s2, 1024 }
  0x3b   :  { %p4019_p10 = scmp.ne.s32.totalorder %s5047_s2, %s4018_s16  ;;  %p4022_p11 = scmp.lt.u32.totalorder %s4018_s16, %s5047_s2 }
  0x3d   :  { %p4024_p12 = pnand %p4022_p11, %p4019_p10 }
  0x3f   :  { %4027 = shalt.err (!%p4024_p12)
}
  0x40   :  { %s4028_s12 = scalar_lea.vmem %s35_s27, 1024  ;;  %p4033_p0 = scmp.lt.s32.totalorder %s35_s27, %s35_s27 }
  0x41   :  { %p4029_p13 = scmp.ne.s32.totalorder %s35_s27, %s4028_s12  ;;  %p4034_p1 = scmp.lt.s32.totalorder %s4028_s12, %s4028_s12 }
  0x43   :  { %p4035_p2 = por %p4034_p1, %p4033_p0 }
  0x45   :  { %p4036_p3 = pnand %p4035_p2, %p4029_p13 }
  0x47   :  { %4039 = shalt.err (!%p4036_p3)
}
  0x48   :  { %40 = dma.hbm_to_vmem [thread:$0]  %s5047_s2, 1024, %s35_s27, [#allocation7], %s4143_s19, %s4143_s19, %s4144_s28  }
  0x49   :  { %s4040_s18 = scalar_lea.hbm %s5053_s8, 2048 }
  0x4a   :  { %p4041_p4 = scmp.ne.s32.totalorder %s5053_s8, %s4040_s18  ;;  %p4044_p5 = scmp.lt.u32.totalorder %s4040_s18, %s5053_s8 }
  0x4c   :  { %p4046_p6 = pnand %p4044_p5, %p4041_p4 }
  0x4e   :  { %4049 = shalt.err (!%p4046_p6)
}
  0x4f   :  { %s4050_s16 = scalar_lea.vmem %s67_s29, 2048  ;;  %p4055_p8 = scmp.lt.s32.totalorder %s67_s29, %s67_s29 }
  0x50   :  { %p4051_p7 = scmp.ne.s32.totalorder %s67_s29, %s4050_s16  ;;  %p4056_p9 = scmp.lt.s32.totalorder %s4050_s16, %s4050_s16 }
  0x52   :  { %p4057_p10 = por %p4056_p9, %p4055_p8 }
  0x54   :  { %p4058_p11 = pnand %p4057_p10, %p4051_p7 }
  0x56   :  { %4061 = shalt.err (!%p4058_p11)
}
  0x57   :  { %s4147_s2 = smov 256   ;;  %s4148_s27 = smov 16  }
  0x58   :  { %72 = dma.hbm_to_vmem [thread:$0]  %s5053_s8, 2048, %s67_s29, [#allocation10], %s4147_s2, %s4147_s2, %s4148_s27  }
  0x59   :  { %s4149_s22 = smov [#allocation14]   ;;  %s4150_s12 = smov [#allocation17]  }
  0x5a   :  { %s90_s23 = sshll.u32 %s4149_s22, 4  ;;  %s116_s21 = sshll.u32 %s4150_s12, 4  ;;  %s91_s23 = int_to_ptr.vmem [resolvable:$true] %s90_s23  ;;  %s117_s21 = int_to_ptr.vmem [resolvable:$true] %s116_s21 }
  0x5b   :  { %s4062_s9 = scalar_lea.hbm %s5055_s10, 1024 }
  0x5c   :  { %p4063_p12 = scmp.ne.s32.totalorder %s5055_s10, %s4062_s9  ;;  %p4066_p13 = scmp.lt.u32.totalorder %s4062_s9, %s5055_s10 }
  0x5e   :  { %p4068_p0 = pnand %p4066_p13, %p4063_p12 }
  0x60   :  { %4071 = shalt.err (!%p4068_p0)
}
  0x61   :  { %s4072_s8 = scalar_lea.vmem %s91_s23, 1024  ;;  %p4077_p2 = scmp.lt.s32.totalorder %s91_s23, %s91_s23 }
  0x62   :  { %p4073_p1 = scmp.ne.s32.totalorder %s91_s23, %s4072_s8  ;;  %p4078_p3 = scmp.lt.s32.totalorder %s4072_s8, %s4072_s8 }
  0x64   :  { %p4079_p4 = por %p4078_p3, %p4077_p2 }
  0x66   :  { %p4080_p5 = pnand %p4079_p4, %p4073_p1 }
  0x68   :  { %4083 = shalt.err (!%p4080_p5)
}
  0x69   :  { %96 = dma.hbm_to_vmem [thread:$0]  %s5055_s10, 1024, %s91_s23, [#allocation13], %s4143_s19, %s4143_s19, %s4144_s28  }
  0x6a   :  { %s4084_s27 = scalar_lea.hbm %s5058_s13, 1024 }
  0x6b   :  { %p4085_p6 = scmp.ne.s32.totalorder %s5058_s13, %s4084_s27  ;;  %p4088_p7 = scmp.lt.u32.totalorder %s4084_s27, %s5058_s13 }
  0x6d   :  { %p4090_p8 = pnand %p4088_p7, %p4085_p6 }
  0x6f   :  { %4093 = shalt.err (!%p4090_p8)
}
  0x70   :  { %s4094_s24 = scalar_lea.vmem %s117_s21, 1024  ;;  %p4099_p10 = scmp.lt.s32.totalorder %s117_s21, %s117_s21 }
  0x71   :  { %p4095_p9 = scmp.ne.s32.totalorder %s117_s21, %s4094_s24  ;;  %p4100_p11 = scmp.lt.s32.totalorder %s4094_s24, %s4094_s24 }
  0x73   :  { %p4101_p12 = por %p4100_p11, %p4099_p10 }
  0x75   :  { %p4102_p13 = pnand %p4101_p12, %p4095_p9 }
  0x77   :  { %4105 = shalt.err (!%p4102_p13)
}
  0x78   :  { %122 = dma.hbm_to_vmem [thread:$0]  %s5058_s13, 1024, %s117_s21, [#allocation16], %s4143_s19, %s4143_s19, %s4144_s28  }
  0x79   :  { %4128 = dma.done.wait [#allocation7], 1024  }
  0x7a   :  { %4129 = vsyncadd [#allocation7], 4294966272 }
  0x7b   :  { %4130 = dma.done.wait [#allocation10], 6144  }
  0x7c   :  { %4131 = vsyncadd [#allocation10], 4294961152 }
  0x7d   :  { %4132 = dma.done.wait [#allocation13], 2048  }
  0x7e   :  { %4133 = vsyncadd [#allocation13], 4294965248 }
  0x7f   :  { %4134 = dma.done.wait [#allocation16], 2048  }
  0x80   :  { %4135 = vsyncadd [#allocation16], 4294965248  ;;  %vm332_vm0 = vcmask 523264   ;;  %v4151_v0 = vmov 0.0   ;;  %v279_v1 = vld [vmem:[#allocation9 + $0x8] sm:$0xff]  ;;  %v281_v3 = vld [vmem:[#allocation9 + $0x18] sm:$0xff] }
  0x81   :  { %421 = vmatprep.mubr.f32.mxu0 %v4151_v0  ;;  %534 = vmatprep.mubr.f32.mxu1 %v4151_v0  ;;  %615 = vst.msk [vmem:[#allocation4] sm:$0xff] %vm332_vm0, %v4151_v0  ;;  %616 = vst.msk [vmem:[#allocation5] sm:$0xff] %vm332_vm0, %v4151_v0  ;;  %v283_v2 = vld [vmem:[#allocation9 + $0x28] sm:$0xff]  ;;  %v285_v5 = vld [vmem:[#allocation9 + $0x38] sm:$0xff]  ;;  %s4152_s29 = smov 64   ;;  %vm4155_vm11 = vmmov 0  }
  0x82   :  { %v3317_v4 = vpack.c.bf16 %v283_v2, %v279_v1  ;;  %v278_v6 = vld [vmem:[#allocation9] sm:$0xff]  ;;  %v3333_v8 = vpack.c.bf16 %v285_v5, %v281_v3  ;;  %v280_v10 = vld [vmem:[#allocation9 + $0x10] sm:$0xff]  ;;  %v287_v12 = vld [vmem:[#allocation9 + $0x48] sm:$0xff] }
  0x83   :  { %v282_v7 = vld [vmem:[#allocation9 + $0x20] sm:$0xff]  ;;  %v284_v11 = vld [vmem:[#allocation9 + $0x30] sm:$0xff]  ;;  %v291_v14 = vld [vmem:[#allocation9 + $0x68] sm:$0xff] }
  0x84   :  { %v3319_v9 = vpack.c.bf16 %v282_v7, %v278_v6  ;;  %3318 = vmatprep.subr.bf16.mxu0 %v3317_v4  ;;  %v3335_v13 = vpack.c.bf16 %v284_v11, %v280_v10  ;;  %v289_v15 = vld [vmem:[#allocation9 + $0x58] sm:$0xff]  ;;  %3334 = vmatprep.subr.bf16.mxu1 %v3333_v8  ;;  %v3321_v17 = vpack.c.bf16 %v291_v14, %v287_v12  ;;  %v286_v19 = vld [vmem:[#allocation9 + $0x40] sm:$0xff]  ;;  %v288_v21 = vld [vmem:[#allocation9 + $0x50] sm:$0xff] }
  0x85   :  { %v293_v16 = vld [vmem:[#allocation9 + $0x78] sm:$0xff]  ;;  %v290_v20 = vld [vmem:[#allocation9 + $0x60] sm:$0xff]  ;;  %v292_v23 = vld [vmem:[#allocation9 + $0x70] sm:$0xff] }
  0x86   :  { %3320 = vmatpush1.bf16.msra.mxu0 %v3319_v9  ;;  %v3337_v18 = vpack.c.bf16 %v293_v16, %v289_v15  ;;  %3336 = vmatpush1.bf16.msra.mxu1 %v3335_v13  ;;  %v3323_v22 = vpack.c.bf16 %v290_v20, %v286_v19  ;;  %v295_v24 = vld [vmem:[#allocation9 + $0x88] sm:$0xff]  ;;  %v3339_v26 = vpack.c.bf16 %v292_v23, %v288_v21  ;;  %v297_v28 = vld [vmem:[#allocation9 + $0x98] sm:$0xff]  ;;  %v294_v30 = vld [vmem:[#allocation9 + $0x80] sm:$0xff] }
  0x87   :  { %v299_v25 = vld [vmem:[#allocation9 + $0xa8] sm:$0xff]  ;;  %3322 = vmatprep.subr.bf16.mxu0 %v3321_v17  ;;  %v301_v29 = vld [vmem:[#allocation9 + $0xb8] sm:$0xff]  ;;  %v298_v32 = vld [vmem:[#allocation9 + $0xa0] sm:$0xff] }
  0x88   :  { %3338 = vmatprep.subr.bf16.mxu1 %v3337_v18  ;;  %v3325_v27 = vpack.c.bf16 %v299_v25, %v295_v24  ;;  %v3341_v31 = vpack.c.bf16 %v301_v29, %v297_v28  ;;  %v296_v33 = vld [vmem:[#allocation9 + $0x90] sm:$0xff]  ;;  %v3327_v35 = vpack.c.bf16 %v298_v32, %v294_v30  ;;  %v303_v36 = vld [vmem:[#allocation9 + $0xc8] sm:$0xff]  ;;  %v305_v38 = vld [vmem:[#allocation9 + $0xd8] sm:$0xff] }
  0x89   :  { %v300_v34 = vld [vmem:[#allocation9 + $0xb0] sm:$0xff]  ;;  %v307_v37 = vld [vmem:[#allocation9 + $0xe8] sm:$0xff]  ;;  %v309_v41 = vld [vmem:[#allocation9 + $0xf8] sm:$0xff] }
  0x8a   :  { %3324 = vmatpush1.bf16.msra.mxu0 %v3323_v22  ;;  %3340 = vmatpush1.bf16.msra.mxu1 %v3339_v26  ;;  %v3343_v39 = vpack.c.bf16 %v300_v34, %v296_v33  ;;  %v3329_v40 = vpack.c.bf16 %v307_v37, %v303_v36  ;;  %v302_v42 = vld [vmem:[#allocation9 + $0xc0] sm:$0xff]  ;;  %v3345_v44 = vpack.c.bf16 %v309_v41, %v305_v38  ;;  %v304_v45 = vld [vmem:[#allocation9 + $0xd0] sm:$0xff]  ;;  %v621_v47 = vld [vmem:[%s5052_s7 + $0x8] sm:$0xff] }
  0x8b   :  { %3326 = vmatprep.subr.bf16.mxu0 %v3325_v27  ;;  %v306_v43 = vld [vmem:[#allocation9 + $0xe0] sm:$0xff]  ;;  %3342 = vmatprep.subr.bf16.mxu1 %v3341_v31  ;;  %v308_v46 = vld [vmem:[#allocation9 + $0xf0] sm:$0xff]  ;;  %v623_v48 = vld [vmem:[%s5052_s7 + $0x18] sm:$0xff] }
  0x8c   :  { %v746_v49 = vld [vmem:[#allocation11 + $0x8] sm:$0xff]  ;;  %v3331_v50 = vpack.c.bf16 %v306_v43, %v302_v42  ;;  %v748_v51 = vld [vmem:[#allocation11 + $0x18] sm:$0xff]  ;;  %v3347_v52 = vpack.c.bf16 %v308_v46, %v304_v45  ;;  %v4348_v53 = vpack.c.bf16 %v623_v48, %v621_v47  ;;  %v620_v54 = vld [vmem:[%s5052_s7] sm:$0xff]  ;;  %v312_v42 = vlaneseq }
  0x8d   :  { %v622_v55 = vld [vmem:[%s5052_s7 + $0x10] sm:$0xff]  ;;  %v4356_v56 = vpack.c.bf16 %v748_v51, %v746_v49  ;;  %v747_v58 = vld [vmem:[#allocation11 + $0x10] sm:$0xff]  ;;  %v625_v59 = vld [vmem:[%s5052_s7 + $0x28] sm:$0xff] }
  0x8e   :  { %3328 = vmatpush1.bf16.msra.mxu0 %v3327_v35  ;;  %3344 = vmatpush1.bf16.msra.mxu1 %v3343_v39  ;;  %v745_v57 = vld [vmem:[#allocation11] sm:$0xff]  ;;  %v627_v60 = vld [vmem:[%s5052_s7 + $0x38] sm:$0xff]  ;;  %v4364_v62 = vpack.c.bf16 %v622_v55, %v620_v54  ;;  %v752_v1 = vld [vmem:[#allocation11 + $0x38] sm:$0xff]  ;;  %v313_v43 = vshrl.u32 %v312_v42, 7 }
  0x8f   :  { %3330 = vmatprep.subr.bf16.mxu0 %v3329_v40  ;;  %3346 = vmatprep.subr.bf16.mxu1 %v3345_v44  ;;  %v270_v61 = vld [vmem:[#allocation6] sm:$0xff]  ;;  %v750_v63 = vld [vmem:[#allocation11 + $0x28] sm:$0xff]  ;;  %v4367_v2 = vpack.c.bf16 %v747_v58, %v745_v57  ;;  %v4370_v3 = vpack.c.bf16 %v627_v60, %v625_v59  ;;  %v624_v4 = vld [vmem:[%s5052_s7 + $0x20] sm:$0xff] }
  0x90   :  { %v626_v5 = vld [vmem:[%s5052_s7 + $0x30] sm:$0xff]  ;;  %v4379_v7 = vpack.c.bf16 %v752_v1, %v750_v63  ;;  %v751_v8 = vld [vmem:[#allocation11 + $0x30] sm:$0xff]  ;;  %v629_v9 = vld [vmem:[%s5052_s7 + $0x48] sm:$0xff]  ;;  %v318_v44 = vsub.s32 1, %v313_v43  ;;  %v326_v47 = vsub.s32 3, %v313_v43  ;;  %v314_v59 = vsub.s32 0, %v313_v43 }
  0x91   :  { %v749_v6 = vld [vmem:[#allocation11 + $0x20] sm:$0xff]  ;;  %v631_v10 = vld [vmem:[%s5052_s7 + $0x58] sm:$0xff]  ;;  %v756_v13 = vld [vmem:[#allocation11 + $0x58] sm:$0xff]  ;;  %v4391_v14 = vpack.c.bf16 %v626_v5, %v624_v4 }
  0x92   :  { %3332 = vmatpush1.bf16.msra.mxu0 %v3331_v50  ;;  %3348 = vmatpush1.bf16.msra.mxu1 %v3347_v52  ;;  %v271_v11 = vld [vmem:[#allocation6 + $0x8] sm:$0xff]  ;;  %v4395_v15 = vpack.c.bf16 %v751_v8, %v749_v6  ;;  %v4397_v16 = vpack.c.bf16 %v631_v10, %v629_v9  ;;  %v628_v17 = vld [vmem:[%s5052_s7 + $0x40] sm:$0xff]  ;;  %v630_v18 = vld [vmem:[%s5052_s7 + $0x50] sm:$0xff] }
  0x93   :  { %3350 = vmatprep.subr.bf16.mxu0 %v4348_v53  ;;  %3366 = vmatprep.subr.bf16.mxu1 %v4356_v56  ;;  %v754_v12 = vld [vmem:[#allocation11 + $0x48] sm:$0xff]  ;;  %v753_v19 = vld [vmem:[#allocation11 + $0x40] sm:$0xff]  ;;  %v755_v21 = vld [vmem:[#allocation11 + $0x50] sm:$0xff]  ;;  %v4419_v27 = vpack.c.bf16 %v630_v18, %v628_v17 }
  0x94   :  { %v4407_v20 = vpack.c.bf16 %v756_v13, %v754_v12  ;;  %v633_v22 = vld [vmem:[%s5052_s7 + $0x68] sm:$0xff]  ;;  %v635_v23 = vld [vmem:[%s5052_s7 + $0x78] sm:$0xff]  ;;  %v272_v24 = vld [vmem:[#allocation6 + $0x10] sm:$0xff]  ;;  %v4423_v28 = vpack.c.bf16 %v755_v21, %v753_v19 }
  0x95   :  { %3137 = vmatmul.mubr.msk.f32.vlgmr.msra.gmra.mrb[0].mxu0 %vm332_vm0, %v270_v61  ;;  %3145 = vmatmul.mubr.msk.f32.vlgmr.msra.gmra.mrb[0].mxu1 %vm332_vm0, %v270_v61  ;;  %v758_v25 = vld [vmem:[#allocation11 + $0x68] sm:$0xff]  ;;  %v760_v26 = vld [vmem:[#allocation11 + $0x78] sm:$0xff]  ;;  %v4425_v29 = vpack.c.bf16 %v635_v23, %v633_v22  ;;  %v632_v30 = vld [vmem:[%s5052_s7 + $0x60] sm:$0xff]  ;;  %v322_v61 = vsub.s32 2, %v313_v43 }
  0x96   :  { %3352 = vmatpush1.bf16.msra.mxu0 %v4364_v62  ;;  %3368 = vmatpush1.bf16.msra.mxu1 %v4367_v2  ;;  %v634_v31 = vld [vmem:[%s5052_s7 + $0x70] sm:$0xff]  ;;  %v4435_v32 = vpack.c.bf16 %v760_v26, %v758_v25  ;;  %v759_v34 = vld [vmem:[#allocation11 + $0x70] sm:$0xff]  ;;  %v273_v35 = vld [vmem:[#allocation6 + $0x18] sm:$0xff] }
  0x97   :  { %427 = vmatprep.mubr.f32.mxu0 %v4151_v0  ;;  %540 = vmatprep.mubr.f32.mxu1 %v4151_v0  ;;  %v757_v33 = vld [vmem:[#allocation11 + $0x60] sm:$0xff]  ;;  %v4441_v36 = vpack.c.bf16 %v634_v31, %v632_v30  ;;  %v275_v39 = vld [vmem:[#allocation6 + $0x28] sm:$0xff]  ;;  %v276_v40 = vld [vmem:[#allocation6 + $0x30] sm:$0xff] }
  0x98   :  { %3354 = vmatprep.subr.bf16.mxu0 %v4370_v3  ;;  %3370 = vmatprep.subr.bf16.mxu1 %v4379_v7  ;;  %v4445_v37 = vpack.c.bf16 %v759_v34, %v757_v33  ;;  %v274_v38 = vld [vmem:[#allocation6 + $0x20] sm:$0xff]  ;;  %v277_v41 = vld [vmem:[#allocation6 + $0x38] sm:$0xff]  ;;  %v310_v45 = vld [vmem:[%s5051_s6] sm:$0xf] }
  0x99   :  { %3138 = vmatmul.mubr.msk.f32.gmra.mrb[2].mxu0 %vm332_vm0, %v271_v11  ;;  %3146 = vmatmul.mubr.msk.f32.gmra.mrb[2].mxu1 %vm332_vm0, %v271_v11  ;;  %v4495_v46 = vrot.slane %v310_v45, %v318_v44  ;;  %v4498_v51 = vrot.slane %v310_v45, %v326_v47  ;;  %v4503_v60 = vrot.slane %v310_v45, %v314_v59 }
  0x9a   :  { %433 = vmatprep.mubr.f32.mxu0 %v4151_v0  ;;  %546 = vmatprep.mubr.f32.mxu1 %v4151_v0  ;;  %v4506_v1 = vrot.slane %v310_v45, %v322_v61 }
  0x9b   :  { %3356 = vmatpush1.bf16.msra.mxu0 %v4391_v14  ;;  %3372 = vmatpush1.bf16.msra.mxu1 %v4395_v15 }
  0x9c   :  { %3358 = vmatprep.subr.bf16.mxu0 %v4397_v16  ;;  %3374 = vmatprep.subr.bf16.mxu1 %v4407_v20 }
  0x9d   :  { %3139 = vmatmul.mubr.msk.f32.gmra.mrb[4].mxu0 %vm332_vm0, %v272_v24  ;;  %3147 = vmatmul.mubr.msk.f32.gmra.mrb[4].mxu1 %vm332_vm0, %v272_v24 }
  0x9e   :  { %439 = vmatprep.mubr.f32.mxu0 %v4151_v0  ;;  %552 = vmatprep.mubr.f32.mxu1 %v4151_v0 }
  0x9f   :  { %3360 = vmatpush1.bf16.msra.mxu0 %v4419_v27  ;;  %3376 = vmatpush1.bf16.msra.mxu1 %v4423_v28 }
  0xa0   :  { %3362 = vmatprep.subr.bf16.mxu0 %v4425_v29  ;;  %3378 = vmatprep.subr.bf16.mxu1 %v4435_v32 }
  0xa1   :  { %3140 = vmatmul.mubr.msk.f32.gmra.mrb[6].mxu0 %vm332_vm0, %v273_v35  ;;  %3148 = vmatmul.mubr.msk.f32.gmra.mrb[6].mxu1 %vm332_vm0, %v273_v35 }
  0xa2   :  { %445 = vmatprep.mubr.f32.mxu0 %v4151_v0  ;;  %558 = vmatprep.mubr.f32.mxu1 %v4151_v0 }
  0xa3   :  { %3364 = vmatpush1.bf16.msra.mxu0 %v4441_v36  ;;  %3380 = vmatpush1.bf16.msra.mxu1 %v4445_v37 }
  0xa4   :  { %3382 = vmatprep.subr.bf16.mxu0 %v4348_v53  ;;  %3398 = vmatprep.subr.bf16.mxu1 %v4356_v56 }
  0xa5   :  { %3141 = vmatmul.mubr.msk.f32.gmra.mrb[8].mxu0 %vm332_vm0, %v274_v38  ;;  %3149 = vmatmul.mubr.msk.f32.gmra.mrb[8].mxu1 %vm332_vm0, %v274_v38 }
  0xa6   :  { %451 = vmatprep.mubr.f32.mxu0 %v4151_v0  ;;  %564 = vmatprep.mubr.f32.mxu1 %v4151_v0 }
  0xa9   :  { %3142 = vmatmul.mubr.msk.f32.gmra.mrb[10].mxu0 %vm332_vm0, %v275_v39  ;;  %3150 = vmatmul.mubr.msk.f32.gmra.mrb[10].mxu1 %vm332_vm0, %v275_v39 }
  0xaa   :  { %457 = vmatprep.mubr.f32.mxu0 %v4151_v0  ;;  %570 = vmatprep.mubr.f32.mxu1 %v4151_v0 }
  0xad   :  { %3143 = vmatmul.mubr.msk.f32.gmra.mrb[12].mxu0 %vm332_vm0, %v276_v40  ;;  %3151 = vmatmul.mubr.msk.f32.gmra.mrb[12].mxu1 %vm332_vm0, %v276_v40 }
  0xae   :  { %463 = vmatprep.mubr.f32.mxu0 %v4151_v0  ;;  %576 = vmatprep.mubr.f32.mxu1 %v4151_v0 }
  0xb1   :  { %3144 = vmatmul.mubr.msk.f32.gmra.mrb[14].mxu0 %vm332_vm0, %v277_v41  ;;  %3152 = vmatmul.mubr.msk.f32.gmra.mrb[14].mxu1 %vm332_vm0, %v277_v41 }
  0xb2   :  { %703 = vmatprep.mubr.f32.mxu0 %v4151_v0  ;;  %825 = vmatprep.mubr.f32.mxu1 %v4151_v0 }
  0xb5   :  { %704 = vmatmul.mubr.f32.vlgmr.msra.gmra.mrb[0].mxu0 %v4151_v0 }
  0xb6   :  { %3384 = vmatpush1.bf16.msra.mxu0 %v4364_v62  ;;  %970 = vmatprep.mubr.f32.mxu0 %v4151_v0 }
  0xb7   :  { %3386 = vmatprep.subr.bf16.mxu0 %v4370_v3 }
  0xb9   :  { %826 = vmatmul.mubr.f32.vlgmr.msra.gmra.mrb[14].mxu1 %v4151_v0 }
  0xba   :  { %3388 = vmatpush1.bf16.msra.mxu0 %v4391_v14  ;;  %3400 = vmatpush1.bf16.msra.mxu1 %v4367_v2 }
  0xbb   :  { %3390 = vmatprep.subr.bf16.mxu0 %v4397_v16  ;;  %3402 = vmatprep.subr.bf16.mxu1 %v4379_v7 }
  0xbc   :  { %1095 = vmatprep.mubr.f32.mxu1 %v4151_v0 }
  0xbe   :  { %3392 = vmatpush1.bf16.msra.mxu0 %v4419_v27  ;;  %3404 = vmatpush1.bf16.msra.mxu1 %v4395_v15 }
  0xbf   :  { %3394 = vmatprep.subr.bf16.mxu0 %v4425_v29  ;;  %3406 = vmatprep.subr.bf16.mxu1 %v4407_v20 }
  0xc2   :  { %3396 = vmatpush1.bf16.msra.mxu0 %v4441_v36  ;;  %3408 = vmatpush1.bf16.msra.mxu1 %v4423_v28 }
  0xc3   :  { %3414 = vmatprep.subr.bf16.mxu0 %v4348_v53  ;;  %3410 = vmatprep.subr.bf16.mxu1 %v4435_v32 }
  0xc6   :  { %3412 = vmatpush1.bf16.msra.mxu1 %v4445_v37 }
  0xc7   :  { %3430 = vmatprep.subr.bf16.mxu1 %v4356_v56 }
 0x188   :  { %v705_v48 = vpop.f32.mrb[0].mxu0 }
 0x189   :  { %v707_v49 = vpop.f32.mrb[1].mxu0  ;;  %v3653_v63 = vadd.f32 %v705_v48, %v4503_v60 }
 0x18a   :  { %v3654_v50 = vadd.f32 %v707_v49, %v4495_v46 }
 0x18b   :  { %v3153_v4 = vmul.f32 -1.442695, %v3653_v63 }
 0x18c   :  { %3738 = vtanh.f32 %v3654_v50  ;;  %v827_v52 = vpop.f32.mrb[14].mxu1  ;;  %v3154_v34 = vmul.f32 -1.442695, %v3654_v50 }
 0x18d   :  { %v829_v54 = vpop.f32.mrb[15].mxu1  ;;  %v3683_v5 = vadd.f32 %v827_v52, %v4506_v1 }
 0x18e   :  { %v3684_v55 = vadd.f32 %v829_v54, %v4498_v51 }
 0x18f   :  { %v3155_v6 = vmul.f32 -1.442695, %v3683_v5 }
 0x190   :  { %3740 = vtanh.f32 %v3684_v55  ;;  %v3156_v35 = vmul.f32 -1.442695, %v3684_v55 }
 0x191   :  { %3742 = vpow2.f32 %v3153_v4 }
 0x192   :  { %3744 = vpow2.f32 %v3155_v6 }
 0x196   :  { %v3739_v57 = vpop.eup %3738 }
 0x197   :  { %727 = vrot.lane.b32.xlu0 %v3739_v57, %s4152_s29 }
 0x19a   :  { %v3741_v58 = vpop.eup %3740 }
 0x19b   :  { %849 = vrot.lane.b32.xlu0 %v3741_v58, %s4152_s29  ;;  %v3743_v8 = vpop.eup %3742 }
 0x19c   :  { %v718_v9 = vadd.f32 1.0, %v3743_v8  ;;  %v3745_v10 = vpop.eup %3744 }
 0x19d   :  { %v840_v11 = vadd.f32 1.0, %v3745_v10 }
 0x19e   :  { %3746 = vrcp.f32 %v718_v9 }
 0x19f   :  { %3748 = vrcp.f32 %v840_v11 }
 0x1a8   :  { %v3747_v12 = vpop.eup %3746 }
 0x1a9   :  { %v3749_v18 = vpop.eup %3748  ;;  %v725_v22 = vmul.f32 0.0, %v3747_v12 }
 0x1aa   :  { %v847_v25 = vmul.f32 0.0, %v3749_v18 }
 0x209   :  { %v728_v13 = vpop.permute.xlu0 %727 }
 0x20a   :  { %v730_v17 = vmul.f32 %v3747_v12, %v728_v13 }
 0x20c   :  { %732 = vrot.lane.b32.xlu1 %v730_v17, %s4152_s29 }
 0x20d   :  { %v850_v19 = vpop.permute.xlu0 %849 }
 0x20e   :  { %v852_v21 = vmul.f32 %v3749_v18, %v850_v19 }
 0x210   :  { %854 = vrot.lane.b32.xlu1 %v852_v21, %s4152_s29 }
 0x27e   :  { %v733_v23 = vpop.permute.xlu1 %732 }
 0x27f   :  { %v4511_v24 = vadd.f32 %v733_v23, %v725_v22 }
 0x281   :  { %3750 = vtanh.f32 %v4511_v24 }
 0x282   :  { %v855_v26 = vpop.permute.xlu1 %854 }
 0x283   :  { %v4514_v30 = vadd.f32 %v855_v26, %v847_v25 }
 0x285   :  { %3752 = vtanh.f32 %v4514_v30 }
 0x286   :  { %3754 = vpow2.f32 %v3154_v34 }
 0x287   :  { %3756 = vpow2.f32 %v3156_v35 }
 0x28b   :  { %v3751_v31 = vpop.eup %3750 }
 0x28c   :  { %738 = vrot.lane.b32.xlu0 %v3751_v31, %s4152_s29 }
 0x28f   :  { %v3753_v33 = vpop.eup %3752 }
 0x290   :  { %860 = vrot.lane.b32.xlu1 %v3753_v33, %s4152_s29  ;;  %v3755_v38 = vpop.eup %3754 }
 0x291   :  { %v719_v39 = vadd.f32 1.0, %v3755_v38  ;;  %v3757_v40 = vpop.eup %3756 }
 0x292   :  { %v841_v41 = vadd.f32 1.0, %v3757_v40 }
 0x293   :  { %3758 = vrcp.f32 %v719_v39 }
 0x294   :  { %3760 = vrcp.f32 %v841_v41 }
 0x29d   :  { %v3759_v42 = vpop.eup %3758 }
 0x29e   :  { %v3761_v45 = vpop.eup %3760 }
 0x2fe   :  { %v739_v43 = vpop.permute.xlu0 %738 }
 0x2ff   :  { %v4519_v44 = vmul.f32 %v3759_v42, %v739_v43 }
 0x301   :  { %3157 = vmatmul.mubr.msk.f32.vlgmr.msra.gmra.mrb[2].mxu0 %vm332_vm0, %v4519_v44 }
 0x302   :  { %3416 = vmatpush1.bf16.msra.mxu0 %v4364_v62  ;;  %1240 = vmatprep.mubr.f32.mxu0 %v4151_v0  ;;  %v861_v47 = vpop.permute.xlu1 %860 }
 0x303   :  { %3418 = vmatprep.subr.bf16.mxu0 %v4370_v3  ;;  %v4526_v48 = vmul.f32 %v3761_v45, %v861_v47 }
 0x305   :  { %3160 = vmatmul.mubr.msk.f32.vlgmr.msra.gmra.mrb[12].mxu1 %vm332_vm0, %v4526_v48 }
 0x306   :  { %3420 = vmatpush1.bf16.msra.mxu0 %v4391_v14  ;;  %3432 = vmatpush1.bf16.msra.mxu1 %v4367_v2 }
 0x307   :  { %3422 = vmatprep.subr.bf16.mxu0 %v4397_v16  ;;  %3434 = vmatprep.subr.bf16.mxu1 %v4379_v7 }
 0x308   :  { %1365 = vmatprep.mubr.f32.mxu1 %v4151_v0 }
 0x30a   :  { %3424 = vmatpush1.bf16.msra.mxu0 %v4419_v27  ;;  %3436 = vmatpush1.bf16.msra.mxu1 %v4395_v15 }
 0x30b   :  { %3426 = vmatprep.subr.bf16.mxu0 %v4425_v29  ;;  %3438 = vmatprep.subr.bf16.mxu1 %v4407_v20 }
 0x30e   :  { %3428 = vmatpush1.bf16.msra.mxu0 %v4441_v36  ;;  %3440 = vmatpush1.bf16.msra.mxu1 %v4423_v28 }
 0x30f   :  { %3446 = vmatprep.subr.bf16.mxu0 %v4348_v53  ;;  %3442 = vmatprep.subr.bf16.mxu1 %v4435_v32 }
 0x312   :  { %3444 = vmatpush1.bf16.msra.mxu1 %v4445_v37 }
 0x313   :  { %3462 = vmatprep.subr.bf16.mxu1 %v4356_v56 }
 0x3d4   :  { %v972_v49 = vpop.f32.mrb[2].mxu0 }
 0x3d5   :  { %v974_v50 = vpop.f32.mrb[3].mxu0  ;;  %v3655_v61 = vadd.f32 %v972_v49, %v4503_v60 }
 0x3d6   :  { %v3656_v52 = vadd.f32 %v974_v50, %v4495_v46 }
 0x3d7   :  { %v3158_v63 = vmul.f32 -1.442695, %v3655_v61 }
 0x3d8   :  { %3762 = vtanh.f32 %v3656_v52  ;;  %v1097_v54 = vpop.f32.mrb[12].mxu1  ;;  %v3159_v34 = vmul.f32 -1.442695, %v3656_v52 }
 0x3d9   :  { %v1099_v55 = vpop.f32.mrb[13].mxu1  ;;  %v3681_v56 = vadd.f32 %v1097_v54, %v4506_v1 }
 0x3da   :  { %v3682_v57 = vadd.f32 %v1099_v55, %v4498_v51 }
 0x3db   :  { %v3161_v4 = vmul.f32 -1.442695, %v3681_v56 }
 0x3dc   :  { %3764 = vtanh.f32 %v3682_v57 }
 0x3dd   :  { %3766 = vpow2.f32 %v3158_v63 }
 0x3de   :  { %3768 = vpow2.f32 %v3161_v4 }
 0x3e2   :  { %v3763_v58 = vpop.eup %3762 }
 0x3e3   :  { %994 = vrot.lane.b32.xlu0 %v3763_v58, %s4152_s29 }
 0x3e6   :  { %v3765_v59 = vpop.eup %3764 }
 0x3e7   :  { %1119 = vrot.lane.b32.xlu1 %v3765_v59, %s4152_s29  ;;  %v3767_v5 = vpop.eup %3766 }
 0x3e8   :  { %v985_v6 = vadd.f32 1.0, %v3767_v5  ;;  %v3769_v8 = vpop.eup %3768 }
 0x3e9   :  { %v1110_v9 = vadd.f32 1.0, %v3769_v8 }
 0x3ea   :  { %3770 = vrcp.f32 %v985_v6 }
 0x3eb   :  { %3772 = vrcp.f32 %v1110_v9 }
 0x3f4   :  { %v3771_v10 = vpop.eup %3770 }
 0x3f5   :  { %v3773_v13 = vpop.eup %3772  ;;  %v992_v19 = vmul.f32 %v3771_v10, %v4511_v24  ;;  %v3162_v24 = vmul.f32 -1.442695, %v3682_v57 }
 0x3f6   :  { %v1117_v23 = vmul.f32 %v3773_v13, %v4514_v30 }
 0x455   :  { %v995_v11 = vpop.permute.xlu0 %994 }
 0x456   :  { %v997_v12 = vmul.f32 %v3771_v10, %v995_v11 }
 0x458   :  { %999 = vrot.lane.b32.xlu0 %v997_v12, %s4152_s29 }
 0x459   :  { %v1120_v17 = vpop.permute.xlu1 %1119 }
 0x45a   :  { %v1122_v18 = vmul.f32 %v3773_v13, %v1120_v17 }
 0x45c   :  { %1124 = vrot.lane.b32.xlu1 %v1122_v18, %s4152_s29 }
 0x4ca   :  { %v1000_v21 = vpop.permute.xlu0 %999 }
 0x4cb   :  { %v4554_v22 = vadd.f32 %v1000_v21, %v992_v19 }
 0x4cd   :  { %3774 = vtanh.f32 %v4554_v22 }
 0x4ce   :  { %v1125_v25 = vpop.permute.xlu1 %1124 }
 0x4cf   :  { %v4558_v26 = vadd.f32 %v1125_v25, %v1117_v23 }
 0x4d1   :  { %3776 = vtanh.f32 %v4558_v26 }
 0x4d2   :  { %3778 = vpow2.f32 %v3159_v34 }
 0x4d3   :  { %3780 = vpow2.f32 %v3162_v24 }
 0x4d7   :  { %v3775_v31 = vpop.eup %3774 }
 0x4d8   :  { %1005 = vrot.lane.b32.xlu0 %v3775_v31, %s4152_s29 }
 0x4db   :  { %v3777_v33 = vpop.eup %3776 }
 0x4dc   :  { %1130 = vrot.lane.b32.xlu1 %v3777_v33, %s4152_s29  ;;  %v3779_v35 = vpop.eup %3778 }
 0x4dd   :  { %v986_v38 = vadd.f32 1.0, %v3779_v35  ;;  %v3781_v39 = vpop.eup %3780 }
 0x4de   :  { %v1111_v30 = vadd.f32 1.0, %v3781_v39 }
 0x4df   :  { %3782 = vrcp.f32 %v986_v38 }
 0x4e0   :  { %3784 = vrcp.f32 %v1111_v30 }
 0x4e9   :  { %v3783_v40 = vpop.eup %3782 }
 0x4ea   :  { %v3785_v43 = vpop.eup %3784 }
 0x54a   :  { %v1006_v41 = vpop.permute.xlu0 %1005 }
 0x54b   :  { %v4563_v42 = vmul.f32 %v3783_v40, %v1006_v41 }
 0x54d   :  { %3163 = vmatmul.mubr.msk.f32.vlgmr.msra.gmra.mrb[4].mxu0 %vm332_vm0, %v4563_v42 }
 0x54e   :  { %3448 = vmatpush1.bf16.msra.mxu0 %v4364_v62  ;;  %1510 = vmatprep.mubr.f32.mxu0 %v4151_v0  ;;  %v1131_v45 = vpop.permute.xlu1 %1130 }
 0x54f   :  { %3450 = vmatprep.subr.bf16.mxu0 %v4370_v3  ;;  %v4570_v47 = vmul.f32 %v3785_v43, %v1131_v45 }
 0x551   :  { %3166 = vmatmul.mubr.msk.f32.vlgmr.msra.gmra.mrb[10].mxu1 %vm332_vm0, %v4570_v47 }
 0x552   :  { %3452 = vmatpush1.bf16.msra.mxu0 %v4391_v14  ;;  %3464 = vmatpush1.bf16.msra.mxu1 %v4367_v2 }
 0x553   :  { %3454 = vmatprep.subr.bf16.mxu0 %v4397_v16  ;;  %3466 = vmatprep.subr.bf16.mxu1 %v4379_v7 }
 0x554   :  { %1635 = vmatprep.mubr.f32.mxu1 %v4151_v0 }
 0x556   :  { %3456 = vmatpush1.bf16.msra.mxu0 %v4419_v27  ;;  %3468 = vmatpush1.bf16.msra.mxu1 %v4395_v15 }
 0x557   :  { %3458 = vmatprep.subr.bf16.mxu0 %v4425_v29  ;;  %3470 = vmatprep.subr.bf16.mxu1 %v4407_v20 }
 0x55a   :  { %3460 = vmatpush1.bf16.msra.mxu0 %v4441_v36  ;;  %3472 = vmatpush1.bf16.msra.mxu1 %v4423_v28 }
 0x55b   :  { %3478 = vmatprep.subr.bf16.mxu0 %v4348_v53  ;;  %3474 = vmatprep.subr.bf16.mxu1 %v4435_v32 }
 0x55e   :  { %3476 = vmatpush1.bf16.msra.mxu1 %v4445_v37 }
 0x620   :  { %v1242_v2 = vpop.f32.mrb[4].mxu0 }
 0x621   :  { %v1244_v49 = vpop.f32.mrb[5].mxu0  ;;  %v3657_v53 = vadd.f32 %v1242_v2, %v4503_v60 }
 0x622   :  { %v3658_v50 = vadd.f32 %v1244_v49, %v4495_v46 }
 0x623   :  { %v3164_v59 = vmul.f32 -1.442695, %v3657_v53 }
 0x624   :  { %3786 = vtanh.f32 %v3658_v50  ;;  %v1367_v52 = vpop.f32.mrb[10].mxu1  ;;  %v3165_v34 = vmul.f32 -1.442695, %v3658_v50 }
 0x625   :  { %v1369_v54 = vpop.f32.mrb[11].mxu1  ;;  %v3679_v61 = vadd.f32 %v1367_v52, %v4506_v1 }
 0x626   :  { %v3680_v55 = vadd.f32 %v1369_v54, %v4498_v51 }
 0x627   :  { %v3167_v63 = vmul.f32 -1.442695, %v3679_v61 }
 0x628   :  { %3788 = vtanh.f32 %v3680_v55 }
 0x629   :  { %3790 = vpow2.f32 %v3164_v59 }
 0x62a   :  { %3792 = vpow2.f32 %v3167_v63 }
 0x62e   :  { %v3787_v57 = vpop.eup %3786 }
 0x62f   :  { %1264 = vrot.lane.b32.xlu0 %v3787_v57, %s4152_s29 }
 0x632   :  { %v3789_v58 = vpop.eup %3788 }
 0x633   :  { %1389 = vrot.lane.b32.xlu1 %v3789_v58, %s4152_s29  ;;  %v3791_v56 = vpop.eup %3790 }
 0x634   :  { %v1255_v4 = vadd.f32 1.0, %v3791_v56  ;;  %v3793_v5 = vpop.eup %3792 }
 0x635   :  { %v1380_v6 = vadd.f32 1.0, %v3793_v5 }
 0x636   :  { %3794 = vrcp.f32 %v1255_v4 }
 0x637   :  { %3796 = vrcp.f32 %v1380_v6  ;;  %v1823_v6 = vld [vmem:[#allocation11 + $0x8] sm:$0xff] }
 0x640   :  { %v3795_v8 = vpop.eup %3794 }
 0x641   :  { %v3797_v11 = vpop.eup %3796  ;;  %v1262_v17 = vmul.f32 %v3795_v8, %v4554_v22  ;;  %v3168_v22 = vmul.f32 -1.442695, %v3680_v55 }
 0x642   :  { %v1387_v21 = vmul.f32 %v3797_v11, %v4558_v26 }
 0x6a1   :  { %v1265_v9 = vpop.permute.xlu0 %1264 }
 0x6a2   :  { %v1267_v10 = vmul.f32 %v3795_v8, %v1265_v9  ;;  %v1825_v8 = vld [vmem:[#allocation11 + $0x18] sm:$0xff]  ;;  %v1822_v9 = vld [vmem:[#allocation11] sm:$0xff] }
 0x6a4   :  { %1269 = vrot.lane.b32.xlu0 %v1267_v10, %s4152_s29  ;;  %v4631_v10 = vpack.c.bf16 %v1825_v8, %v1823_v6  ;;  %v1960_v6 = vld [vmem:[%s5052_s7 + $0x28] sm:$0xff]  ;;  %v1962_v8 = vld [vmem:[%s5052_s7 + $0x38] sm:$0xff] }
 0x6a5   :  { %v1390_v12 = vpop.permute.xlu1 %1389 }
 0x6a6   :  { %v1392_v13 = vmul.f32 %v3797_v11, %v1390_v12  ;;  %v1824_v11 = vld [vmem:[#allocation11 + $0x10] sm:$0xff]  ;;  %3494 = vmatprep.subr.bf16.mxu1 %v4631_v10 }
 0x6a7   :  { %v4633_v12 = vpack.c.bf16 %v1824_v11, %v1822_v9  ;;  %v4704_v11 = vpack.c.bf16 %v1962_v8, %v1960_v6 }
 0x6a8   :  { %1394 = vrot.lane.b32.xlu1 %v1392_v13, %s4152_s29 }
 0x716   :  { %v1270_v18 = vpop.permute.xlu0 %1269 }
 0x717   :  { %v4597_v19 = vadd.f32 %v1270_v18, %v1262_v17 }
 0x719   :  { %3798 = vtanh.f32 %v4597_v19 }
 0x71a   :  { %v1395_v23 = vpop.permute.xlu1 %1394 }
 0x71b   :  { %v4601_v25 = vadd.f32 %v1395_v23, %v1387_v21 }
 0x71d   :  { %3800 = vtanh.f32 %v4601_v25 }
 0x71e   :  { %3802 = vpow2.f32 %v3165_v34 }
 0x71f   :  { %3804 = vpow2.f32 %v3168_v22 }
 0x723   :  { %v3799_v31 = vpop.eup %3798 }
 0x724   :  { %1275 = vrot.lane.b32.xlu0 %v3799_v31, %s4152_s29 }
 0x727   :  { %v3801_v33 = vpop.eup %3800 }
 0x728   :  { %1400 = vrot.lane.b32.xlu1 %v3801_v33, %s4152_s29  ;;  %v3803_v24 = vpop.eup %3802 }
 0x729   :  { %v1256_v35 = vadd.f32 1.0, %v3803_v24  ;;  %v3805_v38 = vpop.eup %3804 }
 0x72a   :  { %v1381_v26 = vadd.f32 1.0, %v3805_v38 }
 0x72b   :  { %3806 = vrcp.f32 %v1256_v35 }
 0x72c   :  { %3808 = vrcp.f32 %v1381_v26 }
 0x735   :  { %v3807_v39 = vpop.eup %3806 }
 0x736   :  { %v3809_v41 = vpop.eup %3808 }
 0x796   :  { %v1276_v30 = vpop.permute.xlu0 %1275 }
 0x797   :  { %v4606_v40 = vmul.f32 %v3807_v39, %v1276_v30 }
 0x799   :  { %3169 = vmatmul.mubr.msk.f32.vlgmr.msra.gmra.mrb[6].mxu0 %vm332_vm0, %v4606_v40 }
 0x79a   :  { %3480 = vmatpush1.bf16.msra.mxu0 %v4364_v62  ;;  %1780 = vmatprep.mubr.f32.mxu0 %v4151_v0  ;;  %v1401_v43 = vpop.permute.xlu1 %1400 }
 0x79b   :  { %3482 = vmatprep.subr.bf16.mxu0 %v4370_v3  ;;  %v4613_v45 = vmul.f32 %v3809_v41, %v1401_v43 }
 0x79d   :  { %3172 = vmatmul.mubr.msk.f32.vlgmr.msra.gmra.mrb[8].mxu1 %vm332_vm0, %v4613_v45 }
 0x79e   :  { %3484 = vmatpush1.bf16.msra.mxu0 %v4391_v14  ;;  %1905 = vmatprep.mubr.f32.mxu1 %v4151_v0 }
 0x79f   :  { %3486 = vmatprep.subr.bf16.mxu0 %v4397_v16  ;;  %3496 = vmatpush1.bf16.msra.mxu1 %v4633_v12 }
 0x7a0   :  { %3498 = vmatprep.subr.bf16.mxu1 %v4379_v7 }
 0x7a2   :  { %3488 = vmatpush1.bf16.msra.mxu0 %v4419_v27 }
 0x7a3   :  { %3490 = vmatprep.subr.bf16.mxu0 %v4425_v29  ;;  %3500 = vmatpush1.bf16.msra.mxu1 %v4395_v15 }
 0x7a4   :  { %3502 = vmatprep.subr.bf16.mxu1 %v4407_v20 }
 0x7a6   :  { %3492 = vmatpush1.bf16.msra.mxu0 %v4441_v36 }
 0x7a7   :  { %3504 = vmatpush1.bf16.msra.mxu1 %v4423_v28 }
 0x7a8   :  { %3506 = vmatprep.subr.bf16.mxu1 %v4435_v32 }
 0x7ab   :  { %3508 = vmatpush1.bf16.msra.mxu1 %v4445_v37 }
 0x7ac   :  { %3526 = vmatprep.subr.bf16.mxu1 %v4631_v10 }
 0x86c   :  { %v1512_v62 = vpop.f32.mrb[6].mxu0 }
 0x86d   :  { %v1514_v2 = vpop.f32.mrb[7].mxu0  ;;  %v3659_v27 = vadd.f32 %v1512_v62, %v4503_v60 }
 0x86e   :  { %v3660_v3 = vadd.f32 %v1514_v2, %v4495_v46 }
 0x86f   :  { %v3170_v29 = vmul.f32 -1.442695, %v3659_v27 }
 0x870   :  { %3810 = vtanh.f32 %v3660_v3  ;;  %v1637_v49 = vpop.f32.mrb[8].mxu1  ;;  %v3171_v32 = vmul.f32 -1.442695, %v3660_v3 }
 0x871   :  { %v1639_v50 = vpop.f32.mrb[9].mxu1  ;;  %v3677_v36 = vadd.f32 %v1637_v49, %v4506_v1 }
 0x872   :  { %v3678_v52 = vadd.f32 %v1639_v50, %v4498_v51 }
 0x873   :  { %v3173_v54 = vmul.f32 -1.442695, %v3677_v36 }
 0x874   :  { %3812 = vtanh.f32 %v3678_v52  ;;  %v3174_v37 = vmul.f32 -1.442695, %v3678_v52 }
 0x875   :  { %3814 = vpow2.f32 %v3170_v29 }
 0x876   :  { %3816 = vpow2.f32 %v3173_v54 }
 0x87a   :  { %v3811_v14 = vpop.eup %3810 }
 0x87b   :  { %1534 = vrot.lane.b32.xlu0 %v3811_v14, %s4152_s29 }
 0x87e   :  { %v3813_v16 = vpop.eup %3812 }
 0x87f   :  { %1659 = vrot.lane.b32.xlu1 %v3813_v16, %s4152_s29  ;;  %v3815_v55 = vpop.eup %3814 }
 0x880   :  { %v1525_v57 = vadd.f32 1.0, %v3815_v55  ;;  %v3817_v58 = vpop.eup %3816 }
 0x881   :  { %v1650_v53 = vadd.f32 1.0, %v3817_v58 }
 0x882   :  { %3818 = vrcp.f32 %v1525_v57 }
 0x883   :  { %3820 = vrcp.f32 %v1650_v53 }
 0x88c   :  { %v3819_v59 = vpop.eup %3818 }
 0x88d   :  { %v3821_v56 = vpop.eup %3820  ;;  %v1532_v13 = vmul.f32 %v3819_v59, %v4597_v19 }
 0x88e   :  { %v1657_v7 = vmul.f32 %v3821_v56, %v4601_v25 }
 0x8ed   :  { %v1535_v61 = vpop.permute.xlu0 %1534 }
 0x8ee   :  { %v1537_v63 = vmul.f32 %v3819_v59, %v1535_v61  ;;  %v1956_v61 = vld [vmem:[%s5052_s7 + $0x8] sm:$0xff] }
 0x8f0   :  { %1539 = vrot.lane.b32.xlu0 %v1537_v63, %s4152_s29  ;;  %v1958_v63 = vld [vmem:[%s5052_s7 + $0x18] sm:$0xff] }
 0x8f1   :  { %v1660_v4 = vpop.permute.xlu1 %1659 }
 0x8f2   :  { %v1662_v5 = vmul.f32 %v3821_v56, %v1660_v4  ;;  %v1955_v56 = vld [vmem:[%s5052_s7] sm:$0xff]  ;;  %v4691_v4 = vpack.c.bf16 %v1958_v63, %v1956_v61 }
 0x8f3   :  { %v2094_v61 = vld [vmem:[#allocation11 + $0x70] sm:$0xff] }
 0x8f4   :  { %1664 = vrot.lane.b32.xlu1 %v1662_v5, %s4152_s29  ;;  %v1957_v5 = vld [vmem:[%s5052_s7 + $0x10] sm:$0xff]  ;;  %3510 = vmatprep.subr.bf16.mxu0 %v4691_v4 }
 0x8f5   :  { %v4702_v9 = vpack.c.bf16 %v1957_v5, %v1955_v56 }
 0x962   :  { %v1540_v17 = vpop.permute.xlu0 %1539 }
 0x963   :  { %v4645_v18 = vadd.f32 %v1540_v17, %v1532_v13  ;;  %v1959_v13 = vld [vmem:[%s5052_s7 + $0x20] sm:$0xff]  ;;  %v1961_v17 = vld [vmem:[%s5052_s7 + $0x30] sm:$0xff] }
 0x965   :  { %3822 = vtanh.f32 %v4645_v18 }
 0x966   :  { %v1665_v15 = vpop.permute.xlu1 %1664 }
 0x967   :  { %v4649_v21 = vadd.f32 %v1665_v15, %v1657_v7  ;;  %v1964_v7 = vld [vmem:[%s5052_s7 + $0x48] sm:$0xff]  ;;  %v1966_v15 = vld [vmem:[%s5052_s7 + $0x58] sm:$0xff] }
 0x969   :  { %3824 = vtanh.f32 %v4649_v21 }
 0x96a   :  { %3826 = vpow2.f32 %v3171_v32  ;;  %v4720_v32 = vpack.c.bf16 %v1961_v17, %v1959_v13 }
 0x96b   :  { %3828 = vpow2.f32 %v3174_v37 }
 0x96f   :  { %v3823_v20 = vpop.eup %3822 }
 0x970   :  { %1545 = vrot.lane.b32.xlu0 %v3823_v20, %s4152_s29  ;;  %v2085_v20 = vld [vmem:[#allocation11 + $0x28] sm:$0xff] }
 0x973   :  { %v3825_v28 = vpop.eup %3824 }
 0x974   :  { %1670 = vrot.lane.b32.xlu1 %v3825_v28, %s4152_s29  ;;  %v3827_v19 = vpop.eup %3826  ;;  %v2087_v28 = vld [vmem:[#allocation11 + $0x38] sm:$0xff] }
 0x975   :  { %v1526_v23 = vadd.f32 1.0, %v3827_v19  ;;  %v3829_v31 = vpop.eup %3828  ;;  %v4722_v37 = vpack.c.bf16 %v2087_v28, %v2085_v20  ;;  %v1963_v19 = vld [vmem:[%s5052_s7 + $0x40] sm:$0xff] }
 0x976   :  { %v1651_v25 = vadd.f32 1.0, %v3829_v31  ;;  %v4728_v31 = vpack.c.bf16 %v1966_v15, %v1964_v7 }
 0x977   :  { %3830 = vrcp.f32 %v1526_v23  ;;  %v2084_v23 = vld [vmem:[#allocation11 + $0x20] sm:$0xff] }
 0x978   :  { %3832 = vrcp.f32 %v1651_v25  ;;  %v1965_v25 = vld [vmem:[%s5052_s7 + $0x50] sm:$0xff] }
 0x981   :  { %v3831_v33 = vpop.eup %3830 }
 0x982   :  { %v3833_v24 = vpop.eup %3832 }
 0x9e2   :  { %v1546_v34 = vpop.permute.xlu0 %1545 }
 0x9e3   :  { %v4654_v22 = vmul.f32 %v3831_v33, %v1546_v34  ;;  %v2086_v33 = vld [vmem:[#allocation11 + $0x30] sm:$0xff]  ;;  %v1968_v34 = vld [vmem:[%s5052_s7 + $0x68] sm:$0xff] }
 0x9e5   :  { %3175 = vmatmul.mubr.msk.f32.vlgmr.msra.gmra.mrb[8].mxu0 %vm332_vm0, %v4654_v22 }
 0x9e6   :  { %2038 = vmatprep.mubr.f32.mxu0 %v4151_v0  ;;  %v1671_v35 = vpop.permute.xlu1 %1670  ;;  %3512 = vmatpush1.bf16.msra.mxu0 %v4702_v9 }
 0x9e7   :  { %v4659_v38 = vmul.f32 %v3833_v24, %v1671_v35  ;;  %3514 = vmatprep.subr.bf16.mxu0 %v4704_v11  ;;  %v4737_v24 = vpack.c.bf16 %v2086_v33, %v2084_v23  ;;  %v1970_v35 = vld [vmem:[%s5052_s7 + $0x78] sm:$0xff] }
 0x9e9   :  { %3178 = vmatmul.mubr.msk.f32.vlgmr.msra.gmra.mrb[6].mxu1 %vm332_vm0, %v4659_v38 }
 0x9ea   :  { %3528 = vmatpush1.bf16.msra.mxu1 %v4633_v12  ;;  %2163 = vmatprep.mubr.f32.mxu1 %v4151_v0 }
 0x9eb   :  { %3530 = vmatprep.subr.bf16.mxu1 %v4722_v37  ;;  %3516 = vmatpush1.bf16.msra.mxu0 %v4720_v32 }
 0x9ec   :  { %3518 = vmatprep.subr.bf16.mxu0 %v4728_v31 }
 0x9ee   :  { %3532 = vmatpush1.bf16.msra.mxu1 %v4737_v24 }
 0xab8   :  { %v1782_v26 = vpop.f32.mrb[8].mxu0 }
 0xab9   :  { %v1784_v39 = vpop.f32.mrb[9].mxu0  ;;  %v3661_v49 = vadd.f32 %v1782_v26, %v4503_v60  ;;  %v2089_v26 = vld [vmem:[#allocation11 + $0x48] sm:$0xff] }
 0xaba   :  { %v4666_v30 = vadd.f32 %v1784_v39, %v4495_v46  ;;  %v2091_v39 = vld [vmem:[#allocation11 + $0x58] sm:$0xff] }
 0xabb   :  { %v3176_v50 = vmul.f32 -1.442695, %v3661_v49 }
 0xabc   :  { %3834 = vtanh.f32 %v4666_v30  ;;  %v1907_v41 = vpop.f32.mrb[6].mxu1  ;;  %v3177_v8 = vmul.f32 -1.442695, %v4666_v30 }
 0xabd   :  { %v1909_v43 = vpop.f32.mrb[7].mxu1  ;;  %v3675_v52 = vadd.f32 %v1907_v41, %v4506_v1  ;;  %v4742_v41 = vpack.c.bf16 %v2091_v39, %v2089_v26 }
 0xabe   :  { %v4670_v62 = vadd.f32 %v1909_v43, %v4498_v51  ;;  %v2088_v43 = vld [vmem:[#allocation11 + $0x40] sm:$0xff] }
 0xabf   :  { %v3179_v14 = vmul.f32 -1.442695, %v3675_v52  ;;  %3534 = vmatprep.subr.bf16.mxu1 %v4742_v41  ;;  %v1967_v52 = vld [vmem:[%s5052_s7 + $0x60] sm:$0xff] }
 0xac0   :  { %3836 = vtanh.f32 %v4670_v62 }
 0xac1   :  { %3838 = vpow2.f32 %v3176_v50  ;;  %v4751_v50 = vpack.c.bf16 %v1970_v35, %v1968_v34 }
 0xac2   :  { %3840 = vpow2.f32 %v3179_v14  ;;  %v1969_v14 = vld [vmem:[%s5052_s7 + $0x70] sm:$0xff] }
 0xac6   :  { %v3835_v2 = vpop.eup %3834 }
 0xac7   :  { %1804 = vrot.lane.b32.xlu0 %v3835_v2, %s4152_s29  ;;  %v2090_v2 = vld [vmem:[#allocation11 + $0x50] sm:$0xff] }
 0xac8   :  { %v4748_v49 = vpack.c.bf16 %v2090_v2, %v2088_v43 }
 0xaca   :  { %v3837_v3 = vpop.eup %3836  ;;  %3536 = vmatpush1.bf16.msra.mxu1 %v4748_v49 }
 0xacb   :  { %1929 = vrot.lane.b32.xlu1 %v3837_v3, %s4152_s29  ;;  %v3839_v16 = vpop.eup %3838  ;;  %v4745_v3 = vpack.c.bf16 %v1965_v25, %v1963_v19 }
 0xacc   :  { %v1795_v27 = vadd.f32 1.0, %v3839_v16  ;;  %v3841_v29 = vpop.eup %3840  ;;  %v4761_v16 = vpack.c.bf16 %v1969_v14, %v1967_v52 }
 0xacd   :  { %v1920_v36 = vadd.f32 1.0, %v3841_v29  ;;  %3520 = vmatpush1.bf16.msra.mxu0 %v4745_v3 }
 0xace   :  { %3842 = vrcp.f32 %v1795_v27  ;;  %3522 = vmatprep.subr.bf16.mxu0 %v4751_v50 }
 0xacf   :  { %3844 = vrcp.f32 %v1920_v36 }
 0xad1   :  { %3524 = vmatpush1.bf16.msra.mxu0 %v4761_v16 }
 0xad2   :  { %3542 = vmatprep.subr.bf16.mxu0 %v4691_v4 }
 0xad8   :  { %v3843_v54 = vpop.eup %3842 }
 0xad9   :  { %v4678_v58 = vpop.eup %3844  ;;  %v1802_v27 = vmul.f32 %v3843_v54, %v4645_v18 }
 0xada   :  { %v1927_v56 = vmul.f32 %v4678_v58, %v4649_v21  ;;  %v3180_v21 = vmul.f32 -1.442695, %v4670_v62 }
 0xb39   :  { %v1805_v55 = vpop.permute.xlu0 %1804 }
 0xb3a   :  { %v1807_v57 = vmul.f32 %v3843_v54, %v1805_v55  ;;  %v2093_v55 = vld [vmem:[#allocation11 + $0x68] sm:$0xff] }
 0xb3c   :  { %1809 = vrot.lane.b32.xlu0 %v1807_v57, %s4152_s29  ;;  %v2095_v57 = vld [vmem:[#allocation11 + $0x78] sm:$0xff] }
 0xb3d   :  { %v1930_v53 = vpop.permute.xlu1 %1929 }
 0xb3e   :  { %v1932_v59 = vmul.f32 %v4678_v58, %v1930_v53  ;;  %v4770_v53 = vpack.c.bf16 %v2095_v57, %v2093_v55 }
 0xb40   :  { %1934 = vrot.lane.b32.xlu1 %v1932_v59, %s4152_s29  ;;  %v2092_v59 = vld [vmem:[#allocation11 + $0x60] sm:$0xff]  ;;  %3538 = vmatprep.subr.bf16.mxu1 %v4770_v53 }
 0xb41   :  { %v4773_v63 = vpack.c.bf16 %v2094_v61, %v2092_v59 }
 0xb43   :  { %3540 = vmatpush1.bf16.msra.mxu1 %v4773_v63 }
 0xb44   :  { %3558 = vmatprep.subr.bf16.mxu1 %v4631_v10 }
 0xbae   :  { %v1810_v29 = vpop.permute.xlu0 %1809 }
 0xbaf   :  { %v4768_v36 = vadd.f32 %v1810_v29, %v1802_v27 }
 0xbb1   :  { %3846 = vtanh.f32 %v4768_v36 }
 0xbb2   :  { %v1935_v5 = vpop.permute.xlu1 %1934 }
 0xbb3   :  { %v4779_v18 = vadd.f32 %v1935_v5, %v1927_v56 }
 0xbb5   :  { %3848 = vtanh.f32 %v4779_v18 }
 0xbb6   :  { %3850 = vpow2.f32 %v3177_v8 }
 0xbb7   :  { %3852 = vpow2.f32 %v3180_v21 }
 0xbbb   :  { %v3847_v54 = vpop.eup %3846 }
 0xbbc   :  { %1815 = vrot.lane.b32.xlu0 %v3847_v54, %s4152_s29 }
 0xbbf   :  { %v3849_v6 = vpop.eup %3848 }
 0xbc0   :  { %1940 = vrot.lane.b32.xlu1 %v3849_v6, %s4152_s29  ;;  %v3851_v58 = vpop.eup %3850 }
 0xbc1   :  { %v1796_v13 = vadd.f32 1.0, %v3851_v58  ;;  %v3853_v17 = vpop.eup %3852 }
 0xbc2   :  { %v1921_v7 = vadd.f32 1.0, %v3853_v17 }
 0xbc3   :  { %3854 = vrcp.f32 %v1796_v13 }
 0xbc4   :  { %3856 = vrcp.f32 %v1921_v7 }
 0xbcd   :  { %v3855_v15 = vpop.eup %3854 }
 0xbce   :  { %v3857_v30 = vpop.eup %3856 }
 0xc2e   :  { %v1816_v20 = vpop.permute.xlu0 %1815 }
 0xc2f   :  { %v4787_v28 = vmul.f32 %v3855_v15, %v1816_v20 }
 0xc31   :  { %3181 = vmatmul.mubr.msk.f32.vlgmr.msra.gmra.mrb[10].mxu0 %vm332_vm0, %v4787_v28 }
 0xc32   :  { %3544 = vmatpush1.bf16.msra.mxu0 %v4702_v9  ;;  %2296 = vmatprep.mubr.f32.mxu0 %v4151_v0  ;;  %v1941_v62 = vpop.permute.xlu1 %1940 }
 0xc33   :  { %3546 = vmatprep.subr.bf16.mxu0 %v4704_v11  ;;  %v4794_v19 = vmul.f32 %v3857_v30, %v1941_v62 }
 0xc35   :  { %3184 = vmatmul.mubr.msk.f32.vlgmr.msra.gmra.mrb[4].mxu1 %vm332_vm0, %v4794_v19 }
 0xc36   :  { %3548 = vmatpush1.bf16.msra.mxu0 %v4720_v32  ;;  %3560 = vmatpush1.bf16.msra.mxu1 %v4633_v12 }
 0xc37   :  { %3550 = vmatprep.subr.bf16.mxu0 %v4728_v31  ;;  %3562 = vmatprep.subr.bf16.mxu1 %v4722_v37 }
 0xc38   :  { %2421 = vmatprep.mubr.f32.mxu1 %v4151_v0 }
 0xc3a   :  { %3552 = vmatpush1.bf16.msra.mxu0 %v4745_v3  ;;  %3564 = vmatpush1.bf16.msra.mxu1 %v4737_v24 }
 0xc3b   :  { %3554 = vmatprep.subr.bf16.mxu0 %v4751_v50  ;;  %3566 = vmatprep.subr.bf16.mxu1 %v4742_v41 }
 0xc3e   :  { %3556 = vmatpush1.bf16.msra.mxu0 %v4761_v16  ;;  %3568 = vmatpush1.bf16.msra.mxu1 %v4748_v49 }
 0xc3f   :  { %3574 = vmatprep.subr.bf16.mxu0 %v4691_v4  ;;  %3570 = vmatprep.subr.bf16.mxu1 %v4770_v53 }
 0xc42   :  { %3572 = vmatpush1.bf16.msra.mxu1 %v4773_v63 }
 0xc43   :  { %3590 = vmatprep.subr.bf16.mxu1 %v4631_v10 }
 0xd04   :  { %v2040_v23 = vpop.f32.mrb[10].mxu0 }
 0xd05   :  { %v2042_v25 = vpop.f32.mrb[11].mxu0  ;;  %v3663_v43 = vadd.f32 %v2040_v23, %v4503_v60 }
 0xd06   :  { %v3664_v33 = vadd.f32 %v2042_v25, %v4495_v46 }
 0xd07   :  { %v3182_v2 = vmul.f32 -1.442695, %v3663_v43 }
 0xd08   :  { %3858 = vtanh.f32 %v3664_v33  ;;  %v2165_v34 = vpop.f32.mrb[4].mxu1  ;;  %v3183_v20 = vmul.f32 -1.442695, %v3664_v33 }
 0xd09   :  { %v2167_v35 = vpop.f32.mrb[5].mxu1  ;;  %v3673_v10 = vadd.f32 %v2165_v34, %v4506_v1 }
 0xd0a   :  { %v3674_v26 = vadd.f32 %v2167_v35, %v4498_v51 }
 0xd0b   :  { %v3185_v52 = vmul.f32 -1.442695, %v3673_v10 }
 0xd0c   :  { %3860 = vtanh.f32 %v3674_v26 }
 0xd0d   :  { %3862 = vpow2.f32 %v3182_v2 }
 0xd0e   :  { %3864 = vpow2.f32 %v3185_v52 }
 0xd12   :  { %v3859_v39 = vpop.eup %3858 }
 0xd13   :  { %2062 = vrot.lane.b32.xlu0 %v3859_v39, %s4152_s29 }
 0xd16   :  { %v3861_v4 = vpop.eup %3860 }
 0xd17   :  { %2187 = vrot.lane.b32.xlu1 %v3861_v4, %s4152_s29  ;;  %v3863_v14 = vpop.eup %3862 }
 0xd18   :  { %v2053_v27 = vadd.f32 1.0, %v3863_v14  ;;  %v3865_v29 = vpop.eup %3864 }
 0xd19   :  { %v2178_v55 = vadd.f32 1.0, %v3865_v29 }
 0xd1a   :  { %3866 = vrcp.f32 %v2053_v27 }
 0xd1b   :  { %3868 = vrcp.f32 %v2178_v55 }
 0xd24   :  { %v3867_v57 = vpop.eup %3866 }
 0xd25   :  { %v3869_v56 = vpop.eup %3868  ;;  %v2060_v6 = vmul.f32 %v3867_v57, %v4768_v36  ;;  %v3186_v36 = vmul.f32 -1.442695, %v3674_v26 }
 0xd26   :  { %v2185_v58 = vmul.f32 %v3869_v56, %v4779_v18 }
 0xd85   :  { %v2063_v59 = vpop.permute.xlu0 %2062 }
 0xd86   :  { %v2065_v61 = vmul.f32 %v3867_v57, %v2063_v59 }
 0xd88   :  { %2067 = vrot.lane.b32.xlu0 %v2065_v61, %s4152_s29 }
 0xd89   :  { %v2188_v5 = vpop.permute.xlu1 %2187 }
 0xd8a   :  { %v2190_v54 = vmul.f32 %v3869_v56, %v2188_v5 }
 0xd8c   :  { %2192 = vrot.lane.b32.xlu1 %v2190_v54, %s4152_s29 }
 0xdfa   :  { %v2068_v8 = vpop.permute.xlu0 %2067 }
 0xdfb   :  { %v4822_v21 = vadd.f32 %v2068_v8, %v2060_v6 }
 0xdfd   :  { %3870 = vtanh.f32 %v4822_v21 }
 0xdfe   :  { %v2193_v13 = vpop.permute.xlu1 %2192 }
 0xdff   :  { %v4826_v17 = vadd.f32 %v2193_v13, %v2185_v58 }
 0xe01   :  { %3872 = vtanh.f32 %v4826_v17 }
 0xe02   :  { %3874 = vpow2.f32 %v3183_v20 }
 0xe03   :  { %3876 = vpow2.f32 %v3186_v36 }
 0xe07   :  { %v3871_v7 = vpop.eup %3870 }
 0xe08   :  { %2073 = vrot.lane.b32.xlu0 %v3871_v7, %s4152_s29 }
 0xe0b   :  { %v3873_v15 = vpop.eup %3872 }
 0xe0c   :  { %2198 = vrot.lane.b32.xlu1 %v3873_v15, %s4152_s29  ;;  %v3875_v30 = vpop.eup %3874 }
 0xe0d   :  { %v2054_v62 = vadd.f32 1.0, %v3875_v30  ;;  %v3877_v23 = vpop.eup %3876 }
 0xe0e   :  { %v2179_v18 = vadd.f32 1.0, %v3877_v23 }
 0xe0f   :  { %3878 = vrcp.f32 %v2054_v62 }
 0xe10   :  { %3880 = vrcp.f32 %v2179_v18  ;;  %v4153_v18 = vmov 0  }
 0xe11   :  { %3736 = vset.pattern.permute.xlu0 %v4153_v18  ;;  %3737 = vset.pattern.permute.xlu1 %v4153_v18 }
 0xe19   :  { %v3879_v25 = vpop.eup %3878 }
 0xe1a   :  { %v3881_v33 = vpop.eup %3880 }
 0xe7a   :  { %v2074_v34 = vpop.permute.xlu0 %2073 }
 0xe7b   :  { %v4831_v35 = vmul.f32 %v3879_v25, %v2074_v34 }
 0xe7d   :  { %3187 = vmatmul.mubr.msk.f32.vlgmr.msra.gmra.mrb[12].mxu0 %vm332_vm0, %v4831_v35 }
 0xe7e   :  { %3576 = vmatpush1.bf16.msra.mxu0 %v4702_v9  ;;  %2554 = vmatprep.mubr.f32.mxu0 %v4151_v0  ;;  %v2199_v26 = vpop.permute.xlu1 %2198 }
 0xe7f   :  { %3578 = vmatprep.subr.bf16.mxu0 %v4704_v11  ;;  %v4838_v39 = vmul.f32 %v3881_v33, %v2199_v26 }
 0xe81   :  { %3190 = vmatmul.mubr.msk.f32.vlgmr.msra.gmra.mrb[2].mxu1 %vm332_vm0, %v4838_v39 }
 0xe82   :  { %3580 = vmatpush1.bf16.msra.mxu0 %v4720_v32  ;;  %3592 = vmatpush1.bf16.msra.mxu1 %v4633_v12 }
 0xe83   :  { %3582 = vmatprep.subr.bf16.mxu0 %v4728_v31  ;;  %3594 = vmatprep.subr.bf16.mxu1 %v4722_v37 }
 0xe84   :  { %2678 = vmatprep.mubr.f32.mxu1 %v4151_v0 }
 0xe86   :  { %3584 = vmatpush1.bf16.msra.mxu0 %v4745_v3  ;;  %3596 = vmatpush1.bf16.msra.mxu1 %v4737_v24 }
 0xe87   :  { %3586 = vmatprep.subr.bf16.mxu0 %v4751_v50  ;;  %3598 = vmatprep.subr.bf16.mxu1 %v4742_v41 }
 0xe8a   :  { %3588 = vmatpush1.bf16.msra.mxu0 %v4761_v16  ;;  %3600 = vmatpush1.bf16.msra.mxu1 %v4748_v49 }
 0xe8b   :  { %3602 = vmatprep.subr.bf16.mxu1 %v4770_v53 }
 0xe8e   :  { %3604 = vmatpush1.bf16.msra.mxu1 %v4773_v63 }
 0xf50   :  { %v2298_v12 = vpop.f32.mrb[12].mxu0 }
 0xf51   :  { %v2300_v9 = vpop.f32.mrb[13].mxu0  ;;  %v3665_v3 = vadd.f32 %v2298_v12, %v4503_v60 }
 0xf52   :  { %v3666_v11 = vadd.f32 %v2300_v9, %v4495_v46 }
 0xf53   :  { %v3188_v49 = vmul.f32 -1.442695, %v3665_v3 }
 0xf54   :  { %3882 = vtanh.f32 %v3666_v11  ;;  %v2423_v32 = vpop.f32.mrb[2].mxu1  ;;  %v3189_v8 = vmul.f32 -1.442695, %v3666_v11  ;;  %v617_v11 = vld [vmem:[%s5048_s3] sm:$0xff] }
 0xf55   :  { %v2425_v37 = vpop.f32.mrb[3].mxu1  ;;  %v3671_v50 = vadd.f32 %v2423_v32, %v4506_v1  ;;  %vm865_vm1 = vcmp.gt.s32.totalorder %v617_v11, 0  ;;  %vm875_vm2 = vcmp.gt.s32.totalorder %v617_v11, 7  ;;  %vm1135_vm3 = vcmp.gt.s32.totalorder %v617_v11, 1 }
 0xf56   :  { %v3672_v31 = vadd.f32 %v2425_v37, %v4498_v51  ;;  %v866_v37 = vsel %vm865_vm1, 1, %v4153_v18  ;;  %vm1405_vm4 = vcmp.gt.s32.totalorder %v617_v11, 2  ;;  %vm1145_vm5 = vcmp.gt.s32.totalorder %v617_v11, 6 }
 0xf57   :  { %v3191_v16 = vmul.f32 -1.442695, %v3671_v50  ;;  %vm1675_vm6 = vcmp.gt.s32.totalorder %v617_v11, 3  ;;  %vm1415_vm7 = vcmp.gt.s32.totalorder %v617_v11, 5  ;;  %vm1685_vm8 = vcmp.gt.s32.totalorder %v617_v11, 4 }
 0xf58   :  { %3884 = vtanh.f32 %v3672_v31 }
 0xf59   :  { %3886 = vpow2.f32 %v3188_v49 }
 0xf5a   :  { %3888 = vpow2.f32 %v3191_v16 }
 0xf5e   :  { %v3883_v24 = vpop.eup %3882 }
 0xf5f   :  { %2320 = vrot.lane.b32.xlu0 %v3883_v24, %s4152_s29 }
 0xf62   :  { %v3885_v41 = vpop.eup %3884 }
 0xf63   :  { %2445 = vrot.lane.b32.xlu1 %v3885_v41, %s4152_s29  ;;  %v3887_v53 = vpop.eup %3886 }
 0xf64   :  { %v2311_v63 = vadd.f32 1.0, %v3887_v53  ;;  %v3889_v4 = vpop.eup %3888 }
 0xf65   :  { %v2436_v43 = vadd.f32 1.0, %v3889_v4 }
 0xf66   :  { %3890 = vrcp.f32 %v2311_v63 }
 0xf67   :  { %3892 = vrcp.f32 %v2436_v43 }
 0xf70   :  { %v3891_v2 = vpop.eup %3890 }
 0xf71   :  { %v3893_v14 = vpop.eup %3892  ;;  %v2318_v55 = vmul.f32 %v3891_v2, %v4822_v21  ;;  %v3192_v21 = vmul.f32 -1.442695, %v3672_v31  ;;  %v876_v31 = vsel %vm875_vm2, 1, %v4153_v18 }
 0xf72   :  { %v2443_v61 = vmul.f32 %v3893_v14, %v4826_v17 }
 0xfd1   :  { %v2321_v10 = vpop.permute.xlu0 %2320 }
 0xfd2   :  { %v2323_v52 = vmul.f32 %v3891_v2, %v2321_v10  ;;  %v1136_v2 = vsel %vm1135_vm3, 1, %v4153_v18  ;;  %vm154_vm3 = vcmask 521216  }
 0xfd4   :  { %2325 = vrot.lane.b32.xlu0 %v2323_v52, %s4152_s29  ;;  %v1406_v52 = vsel %vm1405_vm4, 1, %v4153_v18  ;;  %vm3006_vm4 = vcmask 1041409  }
 0xfd5   :  { %v2446_v27 = vpop.permute.xlu1 %2445 }
 0xfd6   :  { %v2448_v29 = vmul.f32 %v3893_v14, %v2446_v27  ;;  %v1146_v14 = vsel %vm1145_vm5, 1, %v4153_v18  ;;  %v2725_v27 = vcvt.s32.f32 %v617_v11  ;;  %v2740_v11 = vld [vmem:[#allocation12 + $0x18] sm:$0xff]  ;;  %vm3009_vm5 = vcmask 1042434  }
 0xfd8   :  { %2450 = vrot.lane.b32.xlu1 %v2448_v29, %s4152_s29  ;;  %v1676_v29 = vsel %vm1675_vm6, 1, %v4153_v18  ;;  %vm3012_vm6 = vcmask 1043459  }
0x1046   :  { %v2326_v57 = vpop.permute.xlu0 %2325 }
0x1047   :  { %v4864_v59 = vadd.f32 %v2326_v57, %v2318_v55  ;;  %v1416_v55 = vsel %vm1415_vm7, 1, %v4153_v18  ;;  %v2726_v57 = vmax.f32 %v2725_v27, 1.0  ;;  %vm3015_vm7 = vcmask 1044484  }
0x1049   :  { %3894 = vtanh.f32 %v4864_v59 }
0x104a   :  { %v2451_v56 = vpop.permute.xlu1 %2450 }
0x104b   :  { %v4868_v5 = vadd.f32 %v2451_v56, %v2443_v61  ;;  %v864_v61 = vld [vmem:[#allocation4] sm:$0xff] }
0x104d   :  { %3896 = vtanh.f32 %v4868_v5 }
0x104e   :  { %3898 = vpow2.f32 %v3189_v8 }
0x104f   :  { %3900 = vpow2.f32 %v3192_v21  ;;  %v874_v21 = vld [vmem:[#allocation5] sm:$0xff] }
0x1053   :  { %v3895_v54 = vpop.eup %3894 }
0x1054   :  { %2331 = vrot.lane.b32.xlu0 %v3895_v54, %s4152_s29  ;;  %v1686_v54 = vsel %vm1685_vm8, 1, %v4153_v18  ;;  %vm3018_vm8 = vcmask 1045509  }
0x1057   :  { %v3897_v6 = vpop.eup %3896 }
0x1058   :  { %2456 = vrot.lane.b32.xlu1 %v3897_v6, %s4152_s29  ;;  %v3899_v58 = vpop.eup %3898 }
0x1059   :  { %v2312_v13 = vadd.f32 1.0, %v3899_v58  ;;  %v3901_v7 = vpop.eup %3900 }
0x105a   :  { %v2437_v17 = vadd.f32 1.0, %v3901_v7 }
0x105b   :  { %3902 = vrcp.f32 %v2312_v13 }
0x105c   :  { %3904 = vrcp.f32 %v2437_v17  ;;  %v4154_v17 = vmov 0.0|0.0  }
0x105d   :  { %3617 = vmatprep.subr.bf16.mxu1 %v4154_v17  ;;  %3605 = vmatprep.subr.bf16.mxu0 %v4154_v17 }
0x1065   :  { %v3903_v15 = vpop.eup %3902 }
0x1066   :  { %v3905_v30 = vpop.eup %3904 }
0x10c6   :  { %v2332_v20 = vpop.permute.xlu0 %2331 }
0x10c7   :  { %v4873_v36 = vmul.f32 %v3903_v15, %v2332_v20  ;;  %v2737_v15 = vld [vmem:[#allocation12] sm:$0xff]  ;;  %v2738_v20 = vld [vmem:[#allocation12 + $0x8] sm:$0xff] }
0x10c9   :  { %3193 = vmatmul.mubr.msk.f32.vlgmr.msra.gmra.mrb[14].mxu0 %vm332_vm0, %v4873_v36 }
0x10ca   :  { %v2457_v62 = vpop.permute.xlu1 %2456  ;;  %3257 = vmatprep.mubr.msk.f32.mxu0 %vm4155_vm11, %v4151_v0 }
0x10cb   :  { %v4877_v23 = vmul.f32 %v3905_v30, %v2457_v62  ;;  %v3618_v62 = vpack.c.bf16 %v2738_v20, %v2737_v15 }
0x10cd   :  { %3196 = vmatmul.mubr.msk.f32.vlgmr.msra.gmra.mrb[0].mxu1 %vm332_vm0, %v4877_v23 }
0x10ce   :  { %3619 = vmatpush3.bf16.msra.mxu1 %v3618_v62  ;;  %3276 = vmatprep.mubr.msk.f32.mxu1 %vm4155_vm11, %v4151_v0 }
0x10cf   :  { %3620 = vmatprep.subr.bf16.mxu1 %v4154_v17 }
0x119c   :  { %v2556_v25 = vpop.f32.mrb[14].mxu0 }
0x119d   :  { %v2558_v34 = vpop.f32.mrb[15].mxu0 }
0x119e   :  { %v4882_v33 = vadd.f32 %v2558_v34, %v4495_v46  ;;  %v2739_v34 = vld [vmem:[#allocation12 + $0x10] sm:$0xff] }
0x11a0   :  { %3906 = vtanh.f32 %v4882_v33  ;;  %v2680_v26 = vpop.f32.mrb[0].mxu1 }
0x11a1   :  { %v2682_v12 = vpop.f32.mrb[1].mxu1  ;;  %v3669_v41 = vadd.f32 %v2680_v26, %v4506_v1 }
0x11a2   :  { %v4886_v9 = vadd.f32 %v2682_v12, %v4498_v51  ;;  %v3667_v51 = vadd.f32 %v2556_v25, %v4503_v60  ;;  %v2746_v25 = vld [vmem:[#allocation14 + $0x8] sm:$0xff] }
0x11a3   :  { %v3197_v3 = vmul.f32 -1.442695, %v3669_v41  ;;  %v2742_v41 = vld [vmem:[#allocation12 + $0x28] sm:$0xff] }
0x11a4   :  { %3908 = vtanh.f32 %v4886_v9  ;;  %v3194_v24 = vmul.f32 -1.442695, %v3667_v51  ;;  %v2741_v51 = vld [vmem:[#allocation12 + $0x20] sm:$0xff] }
0x11a6   :  { %3910 = vpow2.f32 %v3194_v24 }
0x11a7   :  { %3912 = vpow2.f32 %v3197_v3  ;;  %v3624_v3 = vpack.c.bf16 %v2742_v41, %v2741_v51 }
0x11aa   :  { %v3907_v32 = vpop.eup %3906 }
0x11ab   :  { %2578 = vrot.lane.b32.xlu0 %v3907_v32, %s4152_s29 }
0x11ae   :  { %v3909_v46 = vpop.eup %3908 }
0x11af   :  { %868 = vperm.xlu0 %3736, %v866_v37   ;;  %2702 = vrot.lane.b32.xlu1 %v3909_v46, %s4152_s29  ;;  %v3621_v37 = vpack.c.bf16 %v2740_v11, %v2739_v34 }
0x11b0   :  { %v3911_v49 = vpop.eup %3910 }
0x11b1   :  { %v2569_v50 = vadd.f32 1.0, %v3911_v49  ;;  %v3913_v16 = vpop.eup %3912  ;;  %3622 = vmatpush3.bf16.msra.mxu1 %v3621_v37  ;;  %v2750_v49 = vld [vmem:[#allocation14 + $0x28] sm:$0xff] }
0x11b2   :  { %v2693_v53 = vadd.f32 1.0, %v3913_v16  ;;  %3623 = vmatprep.subr.bf16.mxu1 %v4154_v17 }
0x11b3   :  { %878 = vperm.xlu1 %3737, %v876_v31   ;;  %3914 = vrcp.f32 %v2569_v50  ;;  %v2748_v31 = vld [vmem:[#allocation14 + $0x18] sm:$0xff]  ;;  %v2743_v50 = vld [vmem:[#allocation12 + $0x30] sm:$0xff] }
0x11b4   :  { %3916 = vrcp.f32 %v2693_v53  ;;  %v2744_v53 = vld [vmem:[#allocation12 + $0x38] sm:$0xff] }
0x11b5   :  { %3625 = vmatpush3.bf16.msra.mxu1 %v3624_v3  ;;  %v3198_v3 = vmul.f32 -1.442695, %v4886_v9 }
0x11b6   :  { %3626 = vmatprep.subr.bf16.mxu1 %v4154_v17 }
0x11bd   :  { %v3915_v63 = vpop.eup %3914 }
0x11be   :  { %v3917_v60 = vpop.eup %3916 }
0x11bf   :  { %v2700_v26 = vmul.f32 %v3917_v60, %v4868_v5  ;;  %v2749_v5 = vld [vmem:[#allocation14 + $0x20] sm:$0xff] }
0x11c0   :  { %v3612_v16 = vpack.c.bf16 %v2750_v49, %v2749_v5 }
0x121d   :  { %v2579_v4 = vpop.permute.xlu0 %2578 }
0x121e   :  { %v2581_v43 = vmul.f32 %v3915_v63, %v2579_v4  ;;  %v3627_v4 = vpack.c.bf16 %v2744_v53, %v2743_v50 }
0x1220   :  { %2583 = vrot.lane.b32.xlu1 %v2581_v43, %s4152_s29  ;;  %v211_v43 = vld [vmem:[%s5046_s1] sm:$0xff]  ;;  %3628 = vmatpush3.bf16.msra.mxu1 %v3627_v4 }
0x1221   :  { %v2703_v10 = vpop.permute.xlu1 %2702  ;;  %3641 = vmatprep.subr.bf16.mxu1 %v4154_v17 }
0x1222   :  { %v2705_v1 = vmul.f32 %v3917_v60, %v2703_v10  ;;  %v2752_v60 = vld [vmem:[#allocation14 + $0x38] sm:$0xff] }
0x1224   :  { %1138 = vperm.xlu1 %3737, %v1136_v2   ;;  %2707 = vrot.lane.b32.xlu0 %v2705_v1, %s4152_s29  ;;  %v2751_v2 = vld [vmem:[#allocation14 + $0x30] sm:$0xff] }
0x1225   :  { %v3615_v10 = vpack.c.bf16 %v2752_v60, %v2751_v2 }
0x1228   :  { %1408 = vperm.xlu1 %3737, %v1406_v52   ;;  %1148 = vperm.xlu0 %3736, %v1146_v14  }
0x122c   :  { %1678 = vperm.xlu1 %3737, %v1676_v29   ;;  %1418 = vperm.xlu0 %3736, %v1416_v55  }
0x122e   :  { %v4898_v56 = vpop.permute.xlu0 %868 }
0x122f   :  { %vm870_vm9 = vcmp.eq.s32.totalorder %v4898_v56, 1  ;;  %v2910_v56 = vld [vmem:[#allocation15 + $0x10] sm:$0xff] }
0x1230   :  { %v871_v6 = vsel %vm870_vm9, %v4519_v44, 0.0  ;;  %2730 = vperm.xlu1 %3737, %v2726_v57   ;;  %1688 = vperm.xlu0 %3736, %v1686_v54   ;;  %v2576_v44 = vmul.f32 %v3915_v63, %v4864_v59  ;;  %v2747_v59 = vld [vmem:[#allocation14 + $0x10] sm:$0xff] }
0x1231   :  { %v872_v8 = vadd.f32 %v871_v6, %v864_v61  ;;  %v3609_v24 = vpack.c.bf16 %v2748_v31, %v2747_v59 }
0x1232   :  { %v4905_v58 = vpop.permute.xlu1 %878 }
0x1233   :  { %873 = vst.msk [vmem:[#allocation4] sm:$0xff] %vm332_vm0, %v872_v8  ;;  %vm880_vm10 = vcmp.eq.s32.totalorder %v4905_v58, 1 }
0x1234   :  { %v881_v13 = vsel %vm880_vm10, %v4526_v48, 0.0  ;;  %v2745_v48 = vld [vmem:[#allocation14] sm:$0xff] }
0x1235   :  { %v882_v7 = vadd.f32 %v881_v13, %v874_v21  ;;  %v3606_v12 = vpack.c.bf16 %v2746_v25, %v2745_v48 }
0x1237   :  { %883 = vst.msk [vmem:[#allocation5] sm:$0xff] %vm332_vm0, %v882_v7  ;;  %3607 = vmatpush3.bf16.msra.mxu0 %v3606_v12 }
0x1238   :  { %3608 = vmatprep.subr.bf16.mxu0 %v4154_v17 }
0x123a   :  { %v1134_v14 = vld [vmem:[#allocation4] sm:$0xff] }
0x123b   :  { %3610 = vmatpush3.bf16.msra.mxu0 %v3609_v24 }
0x123c   :  { %3611 = vmatprep.subr.bf16.mxu0 %v4154_v17 }
0x123e   :  { %v1144_v61 = vld [vmem:[#allocation5] sm:$0xff] }
0x123f   :  { %3613 = vmatpush3.bf16.msra.mxu0 %v3612_v16  ;;  %v147_v16 = vld [vmem:[%s5045_s0 + $0x8] sm:$0x3f] }
0x1240   :  { %3614 = vmatprep.subr.bf16.mxu0 %v4154_v17  ;;  %v162_v2 = vsel %vm154_vm3, %v147_v16, 0.0 }
0x1243   :  { %3616 = vmatpush3.bf16.msra.mxu0 %v3615_v10 }
0x1244   :  { %3629 = vmatprep.subr.bf16.mxu0 %v4154_v17 }
0x1292   :  { %v2584_v30 = vpop.permute.xlu1 %2583 }
0x1293   :  { %v2586_v18 = vadd.f32 %v2584_v30, %v2576_v44 }
0x1295   :  { %3918 = vtanh.f32 %v2586_v18 }
0x1296   :  { %v2708_v32 = vpop.permute.xlu0 %2707 }
0x1297   :  { %v2710_v46 = vadd.f32 %v2708_v32, %v2700_v26 }
0x1299   :  { %3920 = vtanh.f32 %v2710_v46 }
0x129f   :  { %v3919_v63 = vpop.eup %3918 }
0x12a0   :  { %2589 = vrot.lane.b32.xlu0 %v3919_v63, %s4152_s29 }
0x12a3   :  { %v1139_v1 = vpop.permute.xlu1 %1138  ;;  %v3921_v52 = vpop.eup %3920 }
0x12a4   :  { %vm1140_vm12 = vcmp.eq.s32.totalorder %v1139_v1, 1  ;;  %214 = vperm.xlu0 %3736, %v211_v43   ;;  %2713 = vrot.lane.b32.xlu1 %v3921_v52, %s4152_s29  ;;  %v149_v52 = vld [vmem:[%s5045_s0 + $0x18] sm:$0x3f] }
0x12a5   :  { %v1141_v27 = vsel %vm1140_vm12, %v4563_v42, 0.0 }
0x12a6   :  { %v1142_v29 = vadd.f32 %v1141_v27, %v1134_v14  ;;  %v150_v27 = vld [vmem:[%s5045_s0 + $0x20] sm:$0x3f] }
0x12a7   :  { %v1149_v55 = vpop.permute.xlu0 %1148  ;;  %v1409_v57 = vpop.permute.xlu1 %1408 }
0x12a8   :  { %1143 = vst.msk [vmem:[#allocation4] sm:$0xff] %vm332_vm0, %v1142_v29  ;;  %vm1150_vm13 = vcmp.eq.s32.totalorder %v1149_v55, 1  ;;  %vm1410_vm14 = vcmp.eq.s32.totalorder %v1409_v57, 1  ;;  %v163_v55 = vrot.slane %v162_v2, 4 }
0x12a9   :  { %v1151_v54 = vsel %vm1150_vm13, %v4570_v47, 0.0  ;;  %v1411_v21 = vsel %vm1410_vm14, %v4606_v40, 0.0 }
0x12aa   :  { %v1152_v6 = vadd.f32 %v1151_v54, %v1144_v61  ;;  %v151_v54 = vld [vmem:[%s5045_s0 + $0x28] sm:$0x3f] }
0x12ab   :  { %v1419_v8 = vpop.permute.xlu0 %1418  ;;  %v1679_v7 = vpop.permute.xlu1 %1678 }
0x12ac   :  { %1153 = vst.msk [vmem:[#allocation5] sm:$0xff] %vm332_vm0, %v1152_v6  ;;  %vm1420_vm15 = vcmp.eq.s32.totalorder %v1419_v8, 1  ;;  %vm1680_vm1 = vcmp.eq.s32.totalorder %v1679_v7, 1  ;;  %v152_v8 = vld [vmem:[%s5045_s0 + $0x30] sm:$0x3f] }
0x12ad   :  { %v1421_v15 = vsel %vm1420_vm15, %v4613_v45, 0.0  ;;  %v1681_v62 = vsel %vm1680_vm1, %v4654_v22, 0.0  ;;  %v1949_v12 = vsel %vm1680_vm1, %v4794_v19, 0.0  ;;  %v2203_v32 = vsel %vm1420_vm15, %v4831_v35, 0.0 }
0x12ae   :  { %v2461_v19 = vsel %vm1150_vm13, %v4873_v36, 0.0  ;;  %v2465_v35 = vsel %vm1140_vm12, %v4877_v23, 0.0  ;;  %v146_v23 = vld [vmem:[%s5045_s0] sm:$0x3f] }
0x12af   :  { %v1404_v42 = vld [vmem:[#allocation4] sm:$0xff]  ;;  %v1689_v47 = vpop.permute.xlu0 %1688  ;;  %v2731_v53 = vpop.permute.xlu1 %2730  ;;  %v155_v43 = vsel %vm154_vm3, %v146_v23, 0.0 }
0x12b0   :  { %v1412_v13 = vadd.f32 %v1411_v21, %v1404_v42  ;;  %vm1690_vm2 = vcmp.eq.s32.totalorder %v1689_v47, 1  ;;  %v156_v29 = vrot.slane %v155_v43, 4  ;;  %v176_v42 = vsel %vm154_vm3, %v149_v52, 0.0  ;;  %v153_v21 = vld [vmem:[%s5045_s0 + $0x38] sm:$0x3f] }
0x12b1   :  { %v1691_v48 = vsel %vm1690_vm2, %v4659_v38, 0.0  ;;  %v1945_v34 = vsel %vm1690_vm2, %v4787_v28, 0.0  ;;  %v2207_v28 = vsel %vm1410_vm14, %v4838_v39, 0.0  ;;  %v3195_v39 = vmul.f32 -1.442695, %v4882_v33 }
0x12b2   :  { %1413 = vst.msk [vmem:[#allocation4] sm:$0xff] %vm332_vm0, %v1412_v13  ;;  %v148_v33 = vld [vmem:[%s5045_s0 + $0x10] sm:$0x3f]  ;;  %v183_v13 = vsel %vm154_vm3, %v150_v27, 0.0  ;;  %v190_v47 = vsel %vm154_vm3, %v151_v54, 0.0 }
0x12b3   :  { %v1414_v44 = vld [vmem:[#allocation5] sm:$0xff]  ;;  %3922 = vpow2.f32 %v3195_v39  ;;  %v169_v60 = vsel %vm154_vm3, %v148_v33, 0.0 }
0x12b4   :  { %v1422_v20 = vadd.f32 %v1421_v15, %v1414_v44  ;;  %3924 = vpow2.f32 %v3198_v3  ;;  %v170_v6 = vrot.slane %v169_v60, 4  ;;  %v157_v15 = vadd.f32 %v156_v29, %v155_v43 }
0x12b6   :  { %1423 = vst.msk [vmem:[#allocation5] sm:$0xff] %vm332_vm0, %v1422_v20  ;;  %v164_v20 = vadd.f32 %v163_v55, %v162_v2 }
0x12b9   :  { %v1674_v30 = vld [vmem:[#allocation4] sm:$0xff] }
0x12ba   :  { %v1682_v18 = vadd.f32 %v1681_v62, %v1674_v30  ;;  %v2908_v62 = vld [vmem:[#allocation15] sm:$0xff] }
0x12bc   :  { %1683 = vst.msk [vmem:[#allocation4] sm:$0xff] %vm332_vm0, %v1682_v18  ;;  %v2909_v18 = vld [vmem:[#allocation15 + $0x8] sm:$0xff] }
0x12bd   :  { %v1684_v40 = vld [vmem:[#allocation5] sm:$0xff]  ;;  %v3923_v5 = vpop.eup %3922 }
0x12be   :  { %v1692_v25 = vadd.f32 %v1691_v48, %v1684_v40  ;;  %v2570_v49 = vadd.f32 1.0, %v3923_v5  ;;  %v3925_v36 = vpop.eup %3924  ;;  %v171_v40 = vadd.f32 %v170_v6, %v169_v60  ;;  %v177_v48 = vrot.slane %v176_v42, 4  ;;  %v2914_v6 = vld [vmem:[#allocation15 + $0x30] sm:$0xff] }
0x12bf   :  { %v2694_v50 = vadd.f32 1.0, %v3925_v36  ;;  %v2916_v36 = vld [vmem:[#allocation17] sm:$0xff] }
0x12c0   :  { %1693 = vst.msk [vmem:[#allocation5] sm:$0xff] %vm332_vm0, %v1692_v25  ;;  %3926 = vrcp.f32 %v2570_v49  ;;  %v197_v25 = vsel %vm154_vm3, %v152_v8, 0.0 }
0x12c1   :  { %3928 = vrcp.f32 %v2694_v50  ;;  %v2917_v50 = vld [vmem:[#allocation17 + $0x8] sm:$0xff] }
0x12c2   :  { %3930 = vrcp.f32 %v2731_v53  ;;  %v3630_v52 = vpack.c.bf16 %v2917_v50, %v2916_v36 }
0x12c3   :  { %v1944_v45 = vld [vmem:[#allocation4] sm:$0xff] }
0x12c4   :  { %v1946_v26 = vadd.f32 %v1945_v34, %v1944_v45  ;;  %v184_v45 = vrot.slane %v183_v13, 4  ;;  %v204_v34 = vsel %vm154_vm3, %v153_v21, 0.0 }
0x12c6   :  { %1947 = vst.msk [vmem:[#allocation4] sm:$0xff] %vm332_vm0, %v1946_v26  ;;  %v191_v26 = vrot.slane %v190_v47, 4 }
0x12c7   :  { %v1948_v22 = vld [vmem:[#allocation5] sm:$0xff] }
0x12c8   :  { %v1950_v11 = vadd.f32 %v1949_v12, %v1948_v22  ;;  %v3642_v12 = vpack.c.bf16 %v2909_v18, %v2908_v62  ;;  %v2911_v22 = vld [vmem:[#allocation15 + $0x18] sm:$0xff] }
0x12c9   :  { %v3645_v39 = vpack.c.bf16 %v2911_v22, %v2910_v56 }
0x12ca   :  { %1951 = vst.msk [vmem:[#allocation5] sm:$0xff] %vm332_vm0, %v1950_v11  ;;  %v3927_v9 = vpop.eup %3926  ;;  %v158_v11 = vrot.slane %v157_v15, 2 }
0x12cb   :  { %v3929_v57 = vpop.eup %3928 }
0x12cc   :  { %v159_v5 = vadd.f32 %v158_v11, %v157_v15 }
0x12cd   :  { %v2202_v38 = vld [vmem:[#allocation4] sm:$0xff] }
0x12ce   :  { %v2204_v37 = vadd.f32 %v2203_v32, %v2202_v38  ;;  %v198_v32 = vrot.slane %v197_v25, 4  ;;  %v3931_v38 = vpop.eup %3930  ;;  %v160_v8 = vrot.slane %v159_v5, 1 }
0x12d0   :  { %2205 = vst.msk [vmem:[#allocation4] sm:$0xff] %vm332_vm0, %v2204_v37  ;;  %v199_v49 = vadd.f32 %v198_v32, %v197_v25 }
0x12d1   :  { %v2206_v46 = vld [vmem:[#allocation5] sm:$0xff] }
0x12d2   :  { %v2208_v59 = vadd.f32 %v2207_v28, %v2206_v46  ;;  %v2912_v28 = vld [vmem:[#allocation15 + $0x20] sm:$0xff]  ;;  %v2913_v46 = vld [vmem:[#allocation15 + $0x28] sm:$0xff]  ;;  %v200_v29 = vrot.slane %v199_v49, 2 }
0x12d3   :  { %v3648_v3 = vpack.c.bf16 %v2913_v46, %v2912_v28 }
0x12d4   :  { %2209 = vst.msk [vmem:[#allocation5] sm:$0xff] %vm332_vm0, %v2208_v59  ;;  %v165_v59 = vrot.slane %v164_v20, 2 }
0x12d6   :  { %v166_v16 = vadd.f32 %v165_v59, %v164_v20 }
0x12d7   :  { %v2460_v31 = vld [vmem:[#allocation4] sm:$0xff] }
0x12d8   :  { %v2462_v51 = vadd.f32 %v2461_v19, %v2460_v31  ;;  %v172_v19 = vrot.slane %v171_v40, 2  ;;  %v178_v31 = vadd.f32 %v177_v48, %v176_v42  ;;  %v167_v21 = vrot.slane %v166_v16, 1 }
0x12da   :  { %2463 = vst.msk [vmem:[#allocation4] sm:$0xff] %vm332_vm0, %v2462_v51  ;;  %v205_v51 = vrot.slane %v204_v34, 4  ;;  %v173_v33 = vadd.f32 %v172_v19, %v171_v40  ;;  %v168_v18 = vadd.f32 %v167_v21, %v166_v16 }
0x12db   :  { %v2464_v24 = vld [vmem:[#allocation5] sm:$0xff] }
0x12dc   :  { %v2466_v41 = vadd.f32 %v2465_v35, %v2464_v24  ;;  %v185_v24 = vadd.f32 %v184_v45, %v183_v13  ;;  %v206_v53 = vadd.f32 %v205_v51, %v204_v34 }
0x12de   :  { %2467 = vst.msk [vmem:[#allocation5] sm:$0xff] %vm332_vm0, %v2466_v41  ;;  %v192_v41 = vadd.f32 %v191_v26, %v190_v47  ;;  %v186_v60 = vrot.slane %v185_v24, 2  ;;  %v3136_v26 = vld [vmem:[%s5049_s4] ss:$0 sm:$0xff] }
0x12e0   :  { %v187_v42 = vadd.f32 %v186_v60, %v185_v24 }
0x12e1   :  { %v2717_v10 = vld [vmem:[#allocation4] sm:$0xff] }
0x12e2   :  { %v188_v62 = vrot.slane %v187_v42, 1 }
0x12e4   :  { %v189_v56 = vadd.f32 %v188_v62, %v187_v42 }
0x12e5   :  { %v2721_v7 = vld [vmem:[#allocation5] sm:$0xff] }
0x1312   :  { %v2590_v63 = vpop.permute.xlu0 %2589 }
0x1313   :  { %v2592_v4 = vmul.f32 %v3927_v9, %v2590_v63  ;;  %v179_v9 = vrot.slane %v178_v31, 2 }
0x1315   :  { %v2718_v1 = vsel %vm880_vm10, %v2592_v4, 0.0  ;;  %vm3024_vm10 = vcmask 1047559  }
0x1316   :  { %v2719_v14 = vadd.f32 %v2718_v1, %v2717_v10  ;;  %v2714_v61 = vpop.permute.xlu1 %2713  ;;  %v193_v1 = vrot.slane %v192_v41, 2 }
0x1317   :  { %v2716_v58 = vmul.f32 %v3929_v57, %v2714_v61  ;;  %v180_v57 = vadd.f32 %v179_v9, %v178_v31  ;;  %v207_v61 = vrot.slane %v206_v53, 2 }
0x1318   :  { %2720 = vst.msk [vmem:[#allocation4] sm:$0xff] %vm332_vm0, %v2719_v14  ;;  %v194_v13 = vadd.f32 %v193_v1, %v192_v41 }
0x1319   :  { %v2722_v44 = vsel %vm870_vm9, %v2716_v58, 0.0  ;;  %v2915_v58 = vld [vmem:[#allocation15 + $0x38] sm:$0xff]  ;;  %v181_v20 = vrot.slane %v180_v57, 1  ;;  %v208_v47 = vadd.f32 %v207_v61, %v206_v53  ;;  %vm3021_vm9 = vcmask 1046534  }
0x131a   :  { %v2723_v30 = vadd.f32 %v2722_v44, %v2721_v7  ;;  %v174_v7 = vrot.slane %v173_v33, 1  ;;  %v201_v44 = vadd.f32 %v200_v29, %v199_v49  ;;  %v3651_v15 = vpack.c.bf16 %v2915_v58, %v2914_v6 }
0x131b   :  { %v195_v40 = vrot.slane %v194_v13, 1  ;;  %v182_v45 = vadd.f32 %v181_v20, %v180_v57  ;;  %v209_v34 = vrot.slane %v208_v47, 1 }
0x131c   :  { %2724 = vst.msk [vmem:[#allocation5] sm:$0xff] %vm332_vm0, %v2723_v30  ;;  %v161_v30 = vadd.f32 %v160_v8, %v159_v5  ;;  %v175_v48 = vadd.f32 %v174_v7, %v173_v33  ;;  %v202_v25 = vrot.slane %v201_v44, 1 }
0x131d   :  { %v196_v32 = vadd.f32 %v195_v40, %v194_v13  ;;  %v210_v31 = vadd.f32 %v209_v34, %v208_v47  ;;  %v2920_v47 = vld [vmem:[#allocation17 + $0x20] sm:$0xff]  ;;  %v2923_v40 = vld [vmem:[#allocation17 + $0x38] sm:$0xff]  ;;  %v3201_v34 = vld [vmem:[%s5056_s11] ss:$0 sm:$0xff]  ;;  %s4156_s11 = smov [#allocation18]  }
0x131e   :  { %v203_v28 = vadd.f32 %v202_v25, %v201_v44  ;;  %v2918_v44 = vld [vmem:[#allocation17 + $0x10] sm:$0xff]  ;;  %s3124_s20 = sshll.u32 %s4156_s11, 4  ;;  %s3125_s20 = int_to_ptr.vmem [resolvable:$true] %s3124_s20 }
0x131f   :  { %v2727_v37 = vld [vmem:[#allocation4] sm:$0xff]  ;;  %p4111_p1 = scmp.lt.s32.totalorder %s3125_s20, %s3125_s20 }
0x1320   :  { %v2734_v35 = vmul.f32 %v3931_v38, %v2727_v37 }
0x1322   :  { %3277 = vmatmul.mubr.msk.f32.vlgmr.msra.gmra.mrb[16].mxu1 %vm332_vm0, %v2734_v35 }
0x1323   :  { %v215_v23 = vpop.permute.xlu0 %214  ;;  %3643 = vmatpush3.bf16.msra.mxu1 %v3642_v12  ;;  %3314 = vmatprep.mubr.msk.f32.mxu1 %vm4155_vm11, %v4151_v0  ;;  %v2735_v2 = vld [vmem:[#allocation5] sm:$0xff] }
0x1324   :  { %v216_v63 = vrot.slane %v215_v23, 1  ;;  %v217_v4 = vrot.slane %v215_v23, 2  ;;  %v218_v43 = vrot.slane %v215_v23, 3  ;;  %3644 = vmatprep.subr.bf16.mxu1 %v4154_v17  ;;  %v219_v10 = vrot.slane %v215_v23, 4 }
0x1325   :  { %3932 = vrcp.f32 %v215_v23  ;;  %v220_v14 = vrot.slane %v215_v23, 5  ;;  %v2736_v27 = vmul.f32 %v3931_v38, %v2735_v2  ;;  %v221_v55 = vrot.slane %v215_v23, 6 }
0x1326   :  { %3934 = vrcp.f32 %v216_v63  ;;  %v222_v54 = vrot.slane %v215_v23, 7 }
0x1327   :  { %3936 = vrcp.f32 %v217_v4  ;;  %3646 = vmatpush3.bf16.msra.mxu1 %v3645_v39  ;;  %3258 = vmatmul.mubr.msk.f32.vlgmr.msra.gmra.mrb[16].mxu0 %vm332_vm0, %v2736_v27 }
0x1328   :  { %3938 = vrcp.f32 %v218_v43  ;;  %3647 = vmatprep.subr.bf16.mxu1 %v4154_v17  ;;  %3631 = vmatpush3.bf16.msra.mxu0 %v3630_v52 }
0x1329   :  { %3940 = vrcp.f32 %v219_v10  ;;  %3295 = vmatprep.mubr.msk.f32.mxu0 %vm4155_vm11, %v4151_v0  ;;  %3632 = vmatprep.subr.bf16.mxu0 %v4154_v17 }
0x132a   :  { %3942 = vrcp.f32 %v220_v14 }
0x132b   :  { %3944 = vrcp.f32 %v221_v55  ;;  %3649 = vmatpush3.bf16.msra.mxu1 %v3648_v3 }
0x132c   :  { %3946 = vrcp.f32 %v222_v54  ;;  %3650 = vmatprep.subr.bf16.mxu1 %v4154_v17 }
0x132f   :  { %v3933_v0 = vpop.eup %3932  ;;  %3652 = vmatpush3.bf16.msra.mxu1 %v3651_v15  ;;  %v2919_v15 = vld [vmem:[#allocation17 + $0x18] sm:$0xff] }
0x1330   :  { %v3935_v12 = vpop.eup %3934  ;;  %v232_v22 = vmul.f32 %v3933_v0, %v161_v30  ;;  %v3633_v20 = vpack.c.bf16 %v2919_v15, %v2918_v44  ;;  %v2921_v30 = vld [vmem:[#allocation17 + $0x28] sm:$0xff] }
0x1331   :  { %v3937_v11 = vpop.eup %3936  ;;  %v234_v38 = vmul.f32 %v3935_v12, %v168_v18  ;;  %v3636_v62 = vpack.c.bf16 %v2921_v30, %v2920_v47  ;;  %v2922_v18 = vld [vmem:[#allocation17 + $0x30] sm:$0xff] }
0x1332   :  { %v3939_v37 = vpop.eup %3938  ;;  %v236_v46 = vmul.f32 %v3937_v11, %v175_v48  ;;  %v254_v59 = vadd.f32 %v3136_v26, %v232_v22  ;;  %3634 = vmatpush3.bf16.msra.mxu0 %v3633_v20  ;;  %v3639_v48 = vpack.c.bf16 %v2923_v40, %v2922_v18 }
0x1333   :  { %v3941_v19 = vpop.eup %3940  ;;  %v238_v51 = vmul.f32 %v3939_v37, %v182_v45  ;;  %v255_v35 = vadd.f32 %v3136_v26, %v234_v38  ;;  %3635 = vmatprep.subr.bf16.mxu0 %v4154_v17  ;;  %v3204_v38 = vld [vmem:[%s5059_s14] ss:$0 sm:$0xff]  ;;  %s4106_s14 = scalar_lea.vmem %s3125_s20, 128 }
0x1334   :  { %v3943_v24 = vpop.eup %3942  ;;  %v240_v41 = vmul.f32 %v3941_v19, %v189_v56  ;;  %v256_v39 = vadd.f32 %v3136_v26, %v236_v46  ;;  %v262_v33 = vmax.f32 %v254_v59, 0.0  ;;  %p4107_p0 = scmp.ne.s32.totalorder %s3125_s20, %s4106_s14  ;;  %p4112_p2 = scmp.lt.s32.totalorder %s4106_s14, %s4106_s14 }
0x1335   :  { %v3945_v3 = vpop.eup %3944  ;;  %v242_v5 = vmul.f32 %v3943_v24, %v196_v32  ;;  %v257_v49 = vadd.f32 %v3136_v26, %v238_v51  ;;  %v263_v36 = vmax.f32 %v255_v35, 0.0 }
0x1336   :  { %v3947_v50 = vpop.eup %3946  ;;  %v244_v23 = vmul.f32 %v3945_v3, %v203_v28  ;;  %v258_v16 = vadd.f32 %v3136_v26, %v240_v41  ;;  %v264_v9 = vmax.f32 %v256_v39, 0.0  ;;  %3637 = vmatpush3.bf16.msra.mxu0 %v3636_v62  ;;  %p4113_p3 = por %p4112_p2, %p4111_p1 }
0x1337   :  { %v246_v53 = vmul.f32 %v3947_v50, %v210_v31  ;;  %v259_v63 = vadd.f32 %v3136_v26, %v242_v5  ;;  %v265_v4 = vmax.f32 %v257_v49, 0.0  ;;  %v3005_v43 = vrot.slane %v263_v36, 7  ;;  %3638 = vmatprep.subr.bf16.mxu0 %v4154_v17 }
0x1338   :  { %v260_v2 = vadd.f32 %v3136_v26, %v244_v23  ;;  %v266_v60 = vmax.f32 %v258_v16, 0.0  ;;  %v3008_v10 = vrot.slane %v264_v9, 6  ;;  %p4114_p4 = pnand %p4113_p3, %p4107_p0 }
0x1339   :  { %v261_v1 = vadd.f32 %v3136_v26, %v246_v53  ;;  %v267_v52 = vmax.f32 %v259_v63, 0.0  ;;  %v3007_v14 = vsel %vm3006_vm4, %v3005_v43, %v262_v33  ;;  %v3011_v27 = vrot.slane %v265_v4, 5 }
0x133a   :  { %v268_v29 = vmax.f32 %v260_v2, 0.0  ;;  %v3010_v55 = vsel %vm3009_vm5, %v3008_v10, %v3007_v14  ;;  %v3014_v57 = vrot.slane %v266_v60, 4  ;;  %3640 = vmatpush3.bf16.msra.mxu0 %v3639_v48 }
0x133b   :  { %v269_v61 = vmax.f32 %v261_v1, 0.0  ;;  %v3013_v54 = vsel %vm3012_vm6, %v3011_v27, %v3010_v55  ;;  %v3017_v6 = vrot.slane %v267_v52, 3 }
0x133c   :  { %v3016_v58 = vsel %vm3015_vm7, %v3014_v57, %v3013_v54  ;;  %v3020_v8 = vrot.slane %v268_v29, 2 }
0x133d   :  { %v3019_v42 = vsel %vm3018_vm8, %v3017_v6, %v3016_v58  ;;  %v3023_v21 = vrot.slane %v269_v61, 1 }
0x133e   :  { %v3022_v13 = vsel %vm3021_vm9, %v3020_v8, %v3019_v42 }
0x133f   :  { %v3025_v7 = vsel %vm3024_vm10, %v3023_v21, %v3022_v13 }
0x1340   :  { %3315 = vmatmul.mubr.msk.f32.vlgmr.msra.gmra.mrb[18].mxu1 %vm332_vm0, %v3025_v7 }
0x13f5   :  { %v2895_v25 = vpop.f32.mrb[16].mxu1 }
0x13f6   :  { %v3278_v0 = vpop.f32.mrb[17].mxu1 }
0x13fa   :  { %v2822_v45 = vpop.f32.mrb[16].mxu0 }
0x13fb   :  { %v2896_v26 = vadd.f32 %v2895_v25, %v2822_v45  ;;  %v3259_v12 = vpop.f32.mrb[17].mxu0 }
0x13fd   :  { %v2906_v56 = vadd.f32 %v3201_v34, %v2896_v26 }
0x13ff   :  { %v2907_v22 = vmax.f32 %v2906_v56, 0.0 }
0x1401   :  { %3296 = vmatmul.mubr.msk.f32.vlgmr.msra.gmra.mrb[18].mxu0 %vm332_vm0, %v2907_v22 }
0x1413   :  { %v3094_v11 = vpop.f32.mrb[18].mxu1 }
0x1414   :  { %v3316_v32 = vpop.f32.mrb[19].mxu1 }
0x14d4   :  { %v2993_v17 = vpop.f32.mrb[18].mxu0 }
0x14d5   :  { %v3095_v37 = vadd.f32 %v3094_v11, %v2993_v17  ;;  %v3297_v28 = vpop.f32.mrb[19].mxu0 }
0x14d7   :  { %v3105_v46 = vadd.f32 %v3204_v38, %v3095_v37 }
0x14d9   :  { %3106 = vmax.xlane.f32.xlu1 %v3105_v46 }
0x1566   :  { %v3107_v59 = vpop.xlane.xlu1 %3106 }
0x1567   :  { %v3108_v19 = vsub.f32 %v3105_v46, %v3107_v59 }
0x1569   :  { %v3109_v31 = vmul.f32 1.442695, %v3108_v19 }
0x156b   :  { %3948 = vpow2.f32 %v3109_v31 }
0x1575   :  { %v3949_v51 = vpop.eup %3948 }
0x1576   :  { %3111 = vadd.xlane.f32.xlu0 %v3949_v51 }
0x1603   :  { %v3112_v35 = vpop.xlane.xlu0 %3111 }
0x1604   :  { %3950 = vlog2.f32 %v3112_v35 }
0x160e   :  { %v3951_v24 = vpop.eup %3950 }
0x160f   :  { %v3114_v41 = vmul.f32 0.6931472, %v3951_v24 }
0x1611   :  { %v3115_v39 = vadd.f32 %v3114_v41, %v3107_v59 }
0x1613   :  { %v3116_v3 = vsub.f32 %v3105_v46, %v3115_v39 }
0x1615   :  { %3117 = vst [vmem:[#allocation18] sm:$0xff] %v3116_v3 }
0x1616   :  { %4117 = shalt.err (!%p4114_p4)
}
0x1617   :  { %s5063_s7 = sld [smem:[#allocation24_spill]] }
0x161d   :  { %s4118_s24 = scalar_lea.hbm %s5063_s7, 128 }
0x161e   :  { %p4119_p5 = scmp.ne.s32.totalorder %s5063_s7, %s4118_s24  ;;  %p4122_p6 = scmp.lt.u32.totalorder %s4118_s24, %s5063_s7 }
0x1620   :  { %p4124_p7 = pnand %p4122_p6, %p4119_p5 }
0x1622   :  { %4127 = shalt.err (!%p4124_p7)
}
0x1623   :  { %3127 = dma.vmem_to_hbm [thread:$0]  %s3125_s20, 128, %s5063_s7, [#allocation8]  }
0x1624   :  { %4136 = dma.done.wait [#allocation8], 128  }
0x1625   :  { %4137 = vsyncadd [#allocation8], 4294967168 }
0x1626   :  { %3131 = vsyncpa [#allocation7], 1 }
0x1627   :  { %3132 = vsyncpa [#allocation10], 1 }
0x1628   :  { %3133 = vsyncpa [#allocation13], 1 }
0x1629   :  { %3134 = vsyncpa [#allocation16], 1 }
0x162a   :  { %3135 = vsyncpa [#allocation8], 1 }

</bundles_post_ra>
